<compile_context>
chip_gen: v6e
topology: v6e:2x2x1
jax: 0.10.0
libtpu: 0.0.40
codegen_flags: <defaults>
</compile_context>

<pallas_src>
import functools

import jax
import jax.numpy as jnp
from jax.experimental import pallas as pl
from jax.experimental.pallas import tpu as pltpu


# ----------------------------------------------------------------------------
# Fused kernel: conv (packed im2col matmul) + 4x4 max-pool + ReLU + fc1 + ReLU
# + fc2 + log_softmax, for block_b images per grid step.
# ----------------------------------------------------------------------------
def fused_cnn_kernel(p_ref, wc_ref, bc_ref, w1_ref, b1_ref, w2_ref, b2_ref,
                     o_ref):
    # p_ref  : (Bt*16, 900) bf16  im2col; row = b*16 + pool_pos,
    #                              col = window*25 + tap
    # wc_ref : (900, 576)   bf16  block conv weight; out col = ch*36 + window
    # bc_ref : (1, 576)     f32   conv bias, repeated per window
    # w1_ref : (576, 128)   bf16  fc1 weight (plain w_fc1.T, PyTorch order)
    # b1_ref : (1, 128)     f32
    # w2_ref : (128, 10)    bf16  fc2 weight (w_fc2.T)
    # b2_ref : (1, 10)      f32
    # o_ref  : (Bt, 10)     f32   log-softmax output
    bt = o_ref.shape[0]

    # Conv as one lane-dense MXU matmul; output col = ch*36 + window, which is
    # exactly PyTorch's x.view(-1, 576) flatten order.
    conv = jnp.dot(p_ref[...], wc_ref[...],
                   preferred_element_type=jnp.float32)       # (Bt*16, 576)
    conv = conv + bc_ref[...]

    # 4x4 max-pool = max over the 16 pool positions = max over 16 consecutive
    # rows (sublane-tile aligned, so the reshape is free), then ReLU.
    pooled = jnp.max(conv.reshape(bt, 16, 576), axis=1)      # (Bt, 576)
    feat = jnp.maximum(pooled, 0.0)

    # fc1 + ReLU + fc2 + log_softmax (bf16 matmul operands, f32 accumulate).
    h = jnp.dot(feat.astype(jnp.bfloat16), w1_ref[...],
                preferred_element_type=jnp.float32) + b1_ref[...]
    h = jnp.maximum(h, 0.0)                                   # (Bt, 128)
    z = jnp.dot(h.astype(jnp.bfloat16), w2_ref[...],
                preferred_element_type=jnp.float32) + b2_ref[...]  # (Bt, 10)

    m = jnp.max(z, axis=1, keepdims=True)
    lse = jnp.log(jnp.sum(jnp.exp(z - m), axis=1, keepdims=True)) + m
    o_ref[...] = z - lse


# ----------------------------------------------------------------------------
# Glue: im2col patch extraction (layout plumbing only, bf16).
#   row = b*16 + pos   (pos = pi*4 + pj, the position inside the 4x4 window)
#   col = win*25 + tap (win = wi*6 + wj, tap = ki*5 + kj)
# ----------------------------------------------------------------------------
def extract_patches(x):
    B = x.shape[0]
    xs = x[:, 0].astype(jnp.bfloat16)                            # (B, 28, 28)
    taps = [xs[:, ki:ki + 24, kj:kj + 24]
            for ki in range(5) for kj in range(5)]
    p = jnp.stack(taps, axis=-1)                                 # (B,24,24,25)
    p = p.reshape(B, 6, 4, 6, 4, 25)                             # b,wi,pi,wj,pj,tap
    p = p.transpose(0, 2, 4, 1, 3, 5)                            # b,pi,pj,wi,wj,tap
    return p.reshape(B * 16, 900)


def _choose_block_b(batch):
    # Multiple of 8 (output sublane alignment), <= 64 (VMEM), and sized so
    # batches >= 16 get at least 2 grid steps (both TensorCores on v7x).
    half = (batch + 1) // 2
    bb = ((half + 7) // 8) * 8
    return int(min(64, max(8, bb)))


@functools.partial(jax.jit, static_argnames=("block_b",))
def _cnn_forward(x, wc, bc, w1, b1, w2, b2, block_b):
    B = x.shape[0]
    b_pad = ((B + block_b - 1) // block_b) * block_b
    if b_pad != B:
        x = jnp.pad(x, ((0, b_pad - B), (0, 0), (0, 0), (0, 0)))
    patches = extract_patches(x)                                 # (b_pad*16, 900)

    out = pl.pallas_call(
        fused_cnn_kernel,
        out_shape=jax.ShapeDtypeStruct((b_pad, 10), jnp.float32),
        grid=(b_pad // block_b,),
        in_specs=[
            pl.BlockSpec((block_b * 16, 900), lambda b: (b, 0)),
            pl.BlockSpec((900, 576), lambda b: (0, 0)),
            pl.BlockSpec((1, 576), lambda b: (0, 0)),
            pl.BlockSpec((576, 128), lambda b: (0, 0)),
            pl.BlockSpec((1, 128), lambda b: (0, 0)),
            pl.BlockSpec((128, 10), lambda b: (0, 0)),
            pl.BlockSpec((1, 10), lambda b: (0, 0)),
        ],
        out_specs=pl.BlockSpec((block_b, 10), lambda b: (b, 0)),
        compiler_params=pltpu.CompilerParams(
            dimension_semantics=("parallel",)),
    )(patches, wc, bc, w1, b1, w2, b2)
    return out[:B]


def cnn_forward(x, wc, bc, w1, b1, w2, b2, block_b=None):
    if block_b is None:
        block_b = _choose_block_b(x.shape[0])
    return _cnn_forward(x, wc, bc, w1, b1, w2, b2, block_b=block_b)


# ----------------------------------------------------------------------------
# Host-side parameter relayout (one-time; keeps PyTorch semantics exactly).
# ----------------------------------------------------------------------------
def prep_kernel_params(w_conv, b_conv, w_fc1, b_fc1, w_fc2, b_fc2):
    # Block conv weight: Wc[win*25 + tap, ch*36 + win] = w_conv[ch, 0, ki, kj],
    # tap = ki*5 + kj; zero elsewhere.  Output columns land directly in
    # PyTorch's channel-major flatten order, so fc1 needs NO row permutation.
    wc_flat = w_conv.reshape(16, 25)                        # (ch, tap)
    win = jnp.arange(36)
    tap = jnp.arange(25)
    ch = jnp.arange(16)
    rows = win[:, None, None] * 25 + tap[None, :, None]     # (36, 25, 16)
    cols = ch[None, None, :] * 36 + win[:, None, None]      # (36, 25, 16)
    vals = jnp.broadcast_to(wc_flat.T[None, :, :], (36, 25, 16))
    wc_block = jnp.zeros((900, 576), jnp.float32).at[rows, cols].set(vals)
    bc_packed = jnp.repeat(b_conv, 36).reshape(1, 576)      # col = ch*36 + win
    return (wc_block.astype(jnp.bfloat16),
            bc_packed.astype(jnp.float32),
            w_fc1.T.astype(jnp.bfloat16),                   # (576, 128)
            b_fc1.reshape(1, 128).astype(jnp.float32),
            w_fc2.T.astype(jnp.bfloat16),                   # (128, 10)
            b_fc2.reshape(1, 10).astype(jnp.float32))


# ----------------------------------------------------------------------------
# Deterministic parameter init (kaiming-normal weights, synthetic biases).
# ----------------------------------------------------------------------------
def init_params(key):
    k1, k2, k3 = jax.random.split(key, 3)
    w_conv = jax.random.normal(k1, (16, 1, 5, 5), jnp.float32) * jnp.sqrt(2.0 / 25.0)
    b_conv = jnp.linspace(-0.1, 0.1, 16, dtype=jnp.float32)
    w_fc1 = jax.random.normal(k2, (128, 576), jnp.float32) * jnp.sqrt(2.0 / 576.0)
    b_fc1 = jnp.linspace(-0.05, 0.05, 128, dtype=jnp.float32)
    w_fc2 = jax.random.normal(k3, (10, 128), jnp.float32) * jnp.sqrt(2.0 / 128.0)
    b_fc2 = jnp.linspace(-0.05, 0.05, 10, dtype=jnp.float32)
    return w_conv, b_conv, w_fc1, b_fc1, w_fc2, b_fc2


def reference_forward(x, params):
    # Pure-JAX f32 NCHW reference mirroring the PyTorch module exactly.
    w_conv, b_conv, w_fc1, b_fc1, w_fc2, b_fc2 = params
    conv = jax.lax.conv_general_dilated(
        x, w_conv, window_strides=(1, 1), padding="VALID",
        dimension_numbers=("NCHW", "OIHW", "NCHW"))
    conv = conv + b_conv[None, :, None, None]                   # (B, 16, 24, 24)
    B = x.shape[0]
    pooled = conv.reshape(B, 16, 6, 4, 6, 4).max(axis=(3, 5))   # (B, 16, 6, 6)
    act = jnp.maximum(pooled, 0.0).reshape(B, 576)
    h = jnp.maximum(act @ w_fc1.T + b_fc1, 0.0)
    z = h @ w_fc2.T + b_fc2
    return jax.nn.log_softmax(z, axis=1)


if __name__ == "__main__":
    key = jax.random.PRNGKey(0)
    kx, kp = jax.random.split(key)

    # Batch of 2 MNIST-sized images (28x28 implied by in_features=576).
    x = jax.random.normal(kx, (2, 1, 28, 28), jnp.float32)

    params = init_params(kp)
    kparams = prep_kernel_params(*params)

    out = cnn_forward(x, *kparams)
    out = jax.block_until_ready(out)

    ref = reference_forward(x, params)
    assert out.shape == (2, 10)
    # bf16 matmul operands (f32 accumulation): loosened tolerance per review.
    err = jnp.max(jnp.abs(out - ref))
    assert err < 1e-1, (err, out, ref)

    print("KERNEL_OK")
</pallas_src>

<mosaic_0001>
module attributes {stable_mosaic.version = 11 : i64} {
  func.func @fused_cnn_kernel(%arg0: i32, %arg1: memref<128x900xbf16, #tpu.memory_space<vmem>>, %arg2: memref<900x576xbf16, #tpu.memory_space<vmem>>, %arg3: memref<1x576xf32, #tpu.memory_space<vmem>>, %arg4: memref<576x128xbf16, #tpu.memory_space<vmem>>, %arg5: memref<1x128xf32, #tpu.memory_space<vmem>>, %arg6: memref<128x10xbf16, #tpu.memory_space<vmem>>, %arg7: memref<1x10xf32, #tpu.memory_space<vmem>>, %arg8: memref<8x10xf32, #tpu.memory_space<vmem>>) attributes {dimension_semantics = [#tpu.dimension_semantics<parallel>], iteration_bounds = array<i64: 1>, scalar_prefetch = 0 : i64, scratch_operands = 0 : i64, tpu.core_type = #tpu.core_type<tc>, window_params = [{transform_indices = @transform_0, window_bounds = array<i64: 128, 900>}, {pipeline_mode = #tpu.pipeline_mode<synchronous>, transform_indices = @transform_1, window_bounds = array<i64: 900, 576>}, {pipeline_mode = #tpu.pipeline_mode<synchronous>, transform_indices = @transform_2, window_bounds = array<i64: 1, 576>}, {pipeline_mode = #tpu.pipeline_mode<synchronous>, transform_indices = @transform_3, window_bounds = array<i64: 576, 128>}, {pipeline_mode = #tpu.pipeline_mode<synchronous>, transform_indices = @transform_4, window_bounds = array<i64: 1, 128>}, {pipeline_mode = #tpu.pipeline_mode<synchronous>, transform_indices = @transform_5, window_bounds = array<i64: 128, 10>}, {pipeline_mode = #tpu.pipeline_mode<synchronous>, transform_indices = @transform_6, window_bounds = array<i64: 1, 10>}, {transform_indices = @transform_7, window_bounds = array<i64: 8, 10>}]} {
    %c0 = arith.constant 0 : index
    %c0_0 = arith.constant 0 : index
    %0 = vector.load %arg1[%c0, %c0_0] : memref<128x900xbf16, #tpu.memory_space<vmem>>, vector<128x900xbf16>
    %c0_1 = arith.constant 0 : index
    %c0_2 = arith.constant 0 : index
    %1 = vector.load %arg2[%c0_1, %c0_2] : memref<900x576xbf16, #tpu.memory_space<vmem>>, vector<900x576xbf16>
    %cst = arith.constant dense<0.000000e+00> : vector<128x576xf32>
    %2 = tpu.matmul %0, %1, %cst {dimension_numbers = #tpu.dot_dimension_numbers<[1], [0], [0], [1], [0, 0, 1, 1], [], []>} : vector<128x900xbf16>, vector<900x576xbf16>, vector<128x576xf32> -> vector<128x576xf32>
    %c0_3 = arith.constant 0 : index
    %c0_4 = arith.constant 0 : index
    %3 = vector.load %arg3[%c0_3, %c0_4] : memref<1x576xf32, #tpu.memory_space<vmem>>, vector<1x576xf32>
    %4 = vector.broadcast %3 : vector<1x576xf32> to vector<128x576xf32>
    %5 = arith.addf %2, %4 : vector<128x576xf32>
    %6 = vector.shape_cast %5 : vector<128x576xf32> to vector<8x16x576xf32>
    %cst_5 = arith.constant dense<0xFF800000> : vector<8x576xf32>
    %7 = vector.multi_reduction <maximumf>, %6, %cst_5 [1] : vector<8x16x576xf32> to vector<8x576xf32>
    %cst_6 = arith.constant 0.000000e+00 : f32
    %8 = vector.broadcast %cst_6 : f32 to vector<8x576xf32>
    %9 = arith.maximumf %7, %8 : vector<8x576xf32>
    %10 = arith.truncf %9 : vector<8x576xf32> to vector<8x576xbf16>
    %c0_7 = arith.constant 0 : index
    %c0_8 = arith.constant 0 : index
    %11 = vector.load %arg4[%c0_7, %c0_8] : memref<576x128xbf16, #tpu.memory_space<vmem>>, vector<576x128xbf16>
    %cst_9 = arith.constant dense<0.000000e+00> : vector<8x128xf32>
    %12 = tpu.matmul %10, %11, %cst_9 {dimension_numbers = #tpu.dot_dimension_numbers<[1], [0], [0], [1], [0, 0, 1, 1], [], []>} : vector<8x576xbf16>, vector<576x128xbf16>, vector<8x128xf32> -> vector<8x128xf32>
    %c0_10 = arith.constant 0 : index
    %c0_11 = arith.constant 0 : index
    %13 = vector.load %arg5[%c0_10, %c0_11] : memref<1x128xf32, #tpu.memory_space<vmem>>, vector<1x128xf32>
    %14 = vector.broadcast %13 : vector<1x128xf32> to vector<8x128xf32>
    %15 = arith.addf %12, %14 : vector<8x128xf32>
    %cst_12 = arith.constant 0.000000e+00 : f32
    %16 = vector.broadcast %cst_12 : f32 to vector<8x128xf32>
    %17 = arith.maximumf %15, %16 : vector<8x128xf32>
    %18 = arith.truncf %17 : vector<8x128xf32> to vector<8x128xbf16>
    %c0_13 = arith.constant 0 : index
    %c0_14 = arith.constant 0 : index
    %19 = vector.load %arg6[%c0_13, %c0_14] : memref<128x10xbf16, #tpu.memory_space<vmem>>, vector<128x10xbf16>
    %cst_15 = arith.constant dense<0.000000e+00> : vector<8x10xf32>
    %20 = tpu.matmul %18, %19, %cst_15 {dimension_numbers = #tpu.dot_dimension_numbers<[1], [0], [0], [1], [0, 0, 1, 1], [], []>} : vector<8x128xbf16>, vector<128x10xbf16>, vector<8x10xf32> -> vector<8x10xf32>
    %c0_16 = arith.constant 0 : index
    %c0_17 = arith.constant 0 : index
    %21 = vector.load %arg7[%c0_16, %c0_17] : memref<1x10xf32, #tpu.memory_space<vmem>>, vector<1x10xf32>
    %22 = vector.broadcast %21 : vector<1x10xf32> to vector<8x10xf32>
    %23 = arith.addf %20, %22 : vector<8x10xf32>
    %cst_18 = arith.constant dense<0xFF800000> : vector<8xf32>
    %24 = vector.multi_reduction <maximumf>, %23, %cst_18 [1] : vector<8x10xf32> to vector<8xf32>
    %25 = vector.shape_cast %24 : vector<8xf32> to vector<8x1xf32>
    %26 = vector.broadcast %25 : vector<8x1xf32> to vector<8x10xf32>
    %27 = arith.subf %23, %26 : vector<8x10xf32>
    %28 = math.exp %27 : vector<8x10xf32>
    %cst_19 = arith.constant dense<0.000000e+00> : vector<8xf32>
    %29 = vector.multi_reduction <add>, %28, %cst_19 [1] : vector<8x10xf32> to vector<8xf32>
    %30 = vector.shape_cast %29 : vector<8xf32> to vector<8x1xf32>
    %31 = math.log %30 : vector<8x1xf32>
    %32 = arith.addf %31, %25 : vector<8x1xf32>
    %33 = vector.broadcast %32 : vector<8x1xf32> to vector<8x10xf32>
    %34 = arith.subf %23, %33 : vector<8x10xf32>
    %c0_20 = arith.constant 0 : index
    %c0_21 = arith.constant 0 : index
    %35 = vector.load %arg8[%c0_20, %c0_21] : memref<8x10xf32, #tpu.memory_space<vmem>>, vector<8x10xf32>
    tpu.vector_store %arg8[%c0_20, %c0_21], %34 {strides = array<i32>} : memref<8x10xf32, #tpu.memory_space<vmem>>, vector<8x10xf32>,
    return
  }
  func.func @transform_0(%arg0: i32) -> (i32, i32) {
    %c0_i32 = arith.constant 0 : i32
    %c0_i32_0 = arith.constant 0 : i32
    return %arg0, %c0_i32 : i32, i32
  }
  func.func @transform_1(%arg0: i32) -> (i32, i32) {
    %c0_i32 = arith.constant 0 : i32
    %c0_i32_0 = arith.constant 0 : i32
    %c0_i32_1 = arith.constant 0 : i32
    return %c0_i32, %c0_i32_0 : i32, i32
  }
  func.func @transform_2(%arg0: i32) -> (i32, i32) {
    %c0_i32 = arith.constant 0 : i32
    %c0_i32_0 = arith.constant 0 : i32
    %c0_i32_1 = arith.constant 0 : i32
    return %c0_i32, %c0_i32_0 : i32, i32
  }
  func.func @transform_3(%arg0: i32) -> (i32, i32) {
    %c0_i32 = arith.constant 0 : i32
    %c0_i32_0 = arith.constant 0 : i32
    %c0_i32_1 = arith.constant 0 : i32
    return %c0_i32, %c0_i32_0 : i32, i32
  }
  func.func @transform_4(%arg0: i32) -> (i32, i32) {
    %c0_i32 = arith.constant 0 : i32
    %c0_i32_0 = arith.constant 0 : i32
    %c0_i32_1 = arith.constant 0 : i32
    return %c0_i32, %c0_i32_0 : i32, i32
  }
  func.func @transform_5(%arg0: i32) -> (i32, i32) {
    %c0_i32 = arith.constant 0 : i32
    %c0_i32_0 = arith.constant 0 : i32
    %c0_i32_1 = arith.constant 0 : i32
    return %c0_i32, %c0_i32_0 : i32, i32
  }
  func.func @transform_6(%arg0: i32) -> (i32, i32) {
    %c0_i32 = arith.constant 0 : i32
    %c0_i32_0 = arith.constant 0 : i32
    %c0_i32_1 = arith.constant 0 : i32
    return %c0_i32, %c0_i32_0 : i32, i32
  }
  func.func @transform_7(%arg0: i32) -> (i32, i32) {
    %c0_i32 = arith.constant 0 : i32
    %c0_i32_0 = arith.constant 0 : i32
    return %arg0, %c0_i32 : i32, i32
  }
}

</mosaic_0001>

<bundles_post_ra>
// kernel: _cnn_forward.1
= control target key start
LH: loop header
LB: loop body
LE: loop exit
PB: predicated region body
PF: predicated region fallthrough
CT: control target
= control target key end

     0   :  { %vm2263_vm0 = vcmask 1041408   ;;  %vm2238_vm1 = vcmask 31744   ;;  %vm4107_vm2 = vcmask 1041409   ;;  %vm4109_vm3 = vcmask 1042434   ;;  %s7821_s1 = inlined_call_operand.vmem [shape: bf16[900,576], index: 1, kind: input, shape index: {}]   ;;  %s7822_s0 = inlined_call_operand.vmem [shape: bf16[128,900], index: 0, kind: input, shape index: {}]   ;;  %s7823_s2 = inlined_call_operand.vmem [shape: f32[1,576], index: 2, kind: input, shape index: {}]   ;;  %s7824_s3 = inlined_call_operand.vmem [shape: bf16[576,128], index: 3, kind: input, shape index: {}]   ;;  %s7825_s5 = inlined_call_operand.vmem [shape: bf16[128,10], index: 5, kind: input, shape index: {}]   ;;  %s7826_s4 = inlined_call_operand.vmem [shape: f32[1,128], index: 4, kind: input, shape index: {}]   ;;  %s7827_s6 = inlined_call_operand.vmem [shape: f32[1,10], index: 6, kind: input, shape index: {}]   ;;  %s7828_s7 = inlined_call_operand.vmem [shape: f32[8,10], index: 7, kind: output, shape index: {}]  }
   0x1   :  { %v5336_v0 = vld [vmem:[%s7821_s1 + $0x11c] ss:$20 sps:$4 sm:$0xff]   ;;  %v5338_v1 = vld [vmem:[%s7821_s1 + $0x118] ss:$20 sps:$4 sm:$0xff]   ;;  %v5342_v4 = vld [vmem:[%s7821_s1 + $0xf4] ss:$20 sps:$4 sm:$0xff]  }
   0x2   :  { %2279 = vmatprep.subr.bf16.mxu0 %v5336_v0  ;;  %v5339_v2 = vld [vmem:[%s7821_s1 + $0x39c] ss:$20 sps:$4 sm:$0xff]   ;;  %v5341_v3 = vld [vmem:[%s7821_s1 + $0x398] ss:$20 sps:$4 sm:$0xff]   ;;  %v5345_v6 = vld [vmem:[%s7821_s1 + $0x374] ss:$20 sps:$4 sm:$0xff]  }
   0x3   :  { %2280 = vmatpush1.bf16.msra.mxu0 %v5338_v1  ;;  %v5344_v5 = vld [vmem:[%s7821_s1 + $0xf0] ss:$20 sps:$4 sm:$0xff]   ;;  %2392 = vmatprep.subr.bf16.mxu1 %v5339_v2  ;;  %v5348_v8 = vld [vmem:[%s7821_s1 + $0xcc] ss:$20 sps:$4 sm:$0xff]   ;;  %v5350_v9 = vld [vmem:[%s7821_s1 + $0xc8] ss:$20 sps:$4 sm:$0xff]  }
   0x4   :  { %2393 = vmatpush1.bf16.msra.mxu1 %v5341_v3  ;;  %2281 = vmatprep.subr.bf16.mxu0 %v5342_v4  ;;  %v5347_v7 = vld [vmem:[%s7821_s1 + $0x370] ss:$20 sps:$4 sm:$0xff]   ;;  %v5351_v10 = vld [vmem:[%s7821_s1 + $0x34c] ss:$20 sps:$4 sm:$0xff]   ;;  %v5353_v12 = vld [vmem:[%s7821_s1 + $0x348] ss:$20 sps:$4 sm:$0xff]  }
   0x5   :  { %2394 = vmatprep.subr.bf16.mxu1 %v5345_v6  ;;  %v5354_v11 = vld [vmem:[%s7821_s1 + $0xa4] ss:$20 sps:$4 sm:$0xff]   ;;  %v5356_v14 = vld [vmem:[%s7821_s1 + $0xa0] ss:$20 sps:$4 sm:$0xff]   ;;  %v5360_v15 = vld [vmem:[%s7821_s1 + $0x7c] ss:$20 sps:$4 sm:$0xff]  }
   0x6   :  { %v5357_v13 = vld [vmem:[%s7821_s1 + $0x324] ss:$20 sps:$4 sm:$0xff]   ;;  %v5359_v16 = vld [vmem:[%s7821_s1 + $0x320] ss:$20 sps:$4 sm:$0xff]   ;;  %v5363_v17 = vld [vmem:[%s7821_s1 + $0x2fc] ss:$20 sps:$4 sm:$0xff]  }
   0x7   :  { %2282 = vmatpush1.bf16.msra.mxu0 %v5344_v5  ;;  %v5362_v18 = vld [vmem:[%s7821_s1 + $0x78] ss:$20 sps:$4 sm:$0xff]   ;;  %v5366_v19 = vld [vmem:[%s7821_s1 + $0x54] ss:$20 sps:$4 sm:$0xff]   ;;  %v5368_v22 = vld [vmem:[%s7821_s1 + $0x50] ss:$20 sps:$4 sm:$0xff]  }
   0x8   :  { %2283 = vmatprep.subr.bf16.mxu0 %v5348_v8  ;;  %2395 = vmatpush1.bf16.msra.mxu1 %v5347_v7  ;;  %v5365_v20 = vld [vmem:[%s7821_s1 + $0x2f8] ss:$20 sps:$4 sm:$0xff]   ;;  %v5369_v21 = vld [vmem:[%s7821_s1 + $0x2d4] ss:$20 sps:$4 sm:$0xff]   ;;  %v5371_v24 = vld [vmem:[%s7821_s1 + $0x2d0] ss:$20 sps:$4 sm:$0xff]  }
   0x9   :  { %2396 = vmatprep.subr.bf16.mxu1 %v5351_v10  ;;  %v5372_v23 = vld [vmem:[%s7821_s1 + $0x2c] ss:$20 sps:$4 sm:$0xff]   ;;  %v5374_v26 = vld [vmem:[%s7821_s1 + $0x28] ss:$20 sps:$4 sm:$0xff]   ;;  %v5378_v27 = vld [vmem:[%s7821_s1 + $0x4] ss:$20 sps:$4 sm:$0xff]  }
   0xa   :  { %v5375_v25 = vld [vmem:[%s7821_s1 + $0x2ac] ss:$20 sps:$4 sm:$0xff]   ;;  %v5377_v28 = vld [vmem:[%s7821_s1 + $0x2a8] ss:$20 sps:$4 sm:$0xff]   ;;  %v5381_v29 = vld [vmem:[%s7821_s1 + $0x284] ss:$20 sps:$4 sm:$0xff]  }
   0xb   :  { %2284 = vmatpush1.bf16.msra.mxu0 %v5350_v9  ;;  %v5380_v30 = vld [vmem:[%s7821_s1] ss:$20 sps:$4 sm:$0xff]   ;;  %v5384_v31 = vld [vmem:[%s7821_s1 + $0x25c] ss:$20 sps:$4 sm:$0xff]   ;;  %v5386_v34 = vld [vmem:[%s7821_s1 + $0x258] ss:$20 sps:$4 sm:$0xff]  }
   0xc   :  { %2285 = vmatprep.subr.bf16.mxu0 %v5354_v11  ;;  %2397 = vmatpush1.bf16.msra.mxu1 %v5353_v12  ;;  %v5383_v32 = vld [vmem:[%s7821_s1 + $0x280] ss:$20 sps:$4 sm:$0xff]   ;;  %v5387_v33 = vld [vmem:[%s7821_s1 + $0x4dc] ss:$20 sps:$4 sm:$0xff]   ;;  %v5389_v36 = vld [vmem:[%s7821_s1 + $0x4d8] ss:$20 sps:$4 sm:$0xff]  }
   0xd   :  { %2398 = vmatprep.subr.bf16.mxu1 %v5357_v13  ;;  %v5390_v35 = vld [vmem:[%s7821_s1 + $0x234] ss:$20 sps:$4 sm:$0xff]   ;;  %v5392_v38 = vld [vmem:[%s7821_s1 + $0x230] ss:$20 sps:$4 sm:$0xff]   ;;  %v5396_v39 = vld [vmem:[%s7821_s1 + $0x20c] ss:$20 sps:$4 sm:$0xff]  }
   0xe   :  { %v5393_v37 = vld [vmem:[%s7821_s1 + $0x4b4] ss:$20 sps:$4 sm:$0xff]   ;;  %v5395_v40 = vld [vmem:[%s7821_s1 + $0x4b0] ss:$20 sps:$4 sm:$0xff]   ;;  %v5399_v41 = vld [vmem:[%s7821_s1 + $0x48c] ss:$20 sps:$4 sm:$0xff]  }
   0xf   :  { %2286 = vmatpush1.bf16.msra.mxu0 %v5356_v14  ;;  %v5398_v42 = vld [vmem:[%s7821_s1 + $0x208] ss:$20 sps:$4 sm:$0xff]   ;;  %v5402_v43 = vld [vmem:[%s7821_s1 + $0x1e4] ss:$20 sps:$4 sm:$0xff]   ;;  %v5404_v45 = vld [vmem:[%s7821_s1 + $0x1e0] ss:$20 sps:$4 sm:$0xff]  }
  0x10   :  { %2287 = vmatprep.subr.bf16.mxu0 %v5360_v15  ;;  %2399 = vmatpush1.bf16.msra.mxu1 %v5359_v16  ;;  %v5401_v44 = vld [vmem:[%s7821_s1 + $0x488] ss:$20 sps:$4 sm:$0xff]   ;;  %v5405_v46 = vld [vmem:[%s7821_s1 + $0x464] ss:$20 sps:$4 sm:$0xff]   ;;  %v5407_v54 = vld [vmem:[%s7821_s1 + $0x460] ss:$20 sps:$4 sm:$0xff]  }
  0x11   :  { %2400 = vmatprep.subr.bf16.mxu1 %v5363_v17  ;;  %v27_v47 = vld [vmem:[%s7822_s0] sm:$0xff]  ;;  %v28_v49 = vld [vmem:[%s7822_s0 + $0x8] sm:$0xff]  ;;  %v5408_v51 = vld [vmem:[%s7821_s1 + $0x1bc] ss:$20 sps:$4 sm:$0xff]   ;;  %vm4111_vm4 = vcmask 1043459   ;;  %vm4113_vm5 = vcmask 1044484  }
  0x12   :  { %v31_v48 = vld [vmem:[%s7822_s0 + $0x20] sm:$0xff]  ;;  %v32_v50 = vld [vmem:[%s7822_s0 + $0x28] sm:$0xff]  ;;  %v5411_v55 = vld [vmem:[%s7821_s1 + $0x43c] ss:$20 sps:$4 sm:$0xff]   ;;  %vm4115_vm6 = vcmask 1045509   ;;  %vm4117_vm7 = vcmask 1046534  }
  0x13   :  { %2288 = vmatpush1.bf16.msra.mxu0 %v5362_v18  ;;  %v5982_v52 = vcombine.high %v27_v47, %v31_v48  ;;  %v5984_v53 = vcombine.high %v28_v49, %v32_v50  ;;  %v5410_v56 = vld [vmem:[%s7821_s1 + $0x1b8] ss:$20 sps:$4 sm:$0xff]   ;;  %v5414_v57 = vld [vmem:[%s7821_s1 + $0x194] ss:$20 sps:$4 sm:$0xff]   ;;  %v5416_v60 = vld [vmem:[%s7821_s1 + $0x190] ss:$20 sps:$4 sm:$0xff]   ;;  %v6048_v10 = vcombine.low %v27_v47, %v31_v48  ;;  %v6061_v15 = vcombine.low %v28_v49, %v32_v50 }
  0x14   :  { %2289 = vmatprep.subr.bf16.mxu0 %v5366_v19  ;;  %2401 = vmatpush1.bf16.msra.mxu1 %v5365_v20  ;;  %v5413_v58 = vld [vmem:[%s7821_s1 + $0x438] ss:$20 sps:$4 sm:$0xff]   ;;  %v5417_v59 = vld [vmem:[%s7821_s1 + $0x414] ss:$20 sps:$4 sm:$0xff]   ;;  %v5419_v62 = vld [vmem:[%s7821_s1 + $0x410] ss:$20 sps:$4 sm:$0xff]  }
  0x15   :  { %2402 = vmatprep.subr.bf16.mxu1 %v5369_v21  ;;  %2311 = vmatprep.mubr.bf16.mxu0 %v5982_v52  ;;  %v5420_v61 = vld [vmem:[%s7821_s1 + $0x16c] ss:$20 sps:$4 sm:$0xff]   ;;  %v5422_v0 = vld [vmem:[%s7821_s1 + $0x168] ss:$20 sps:$4 sm:$0xff]   ;;  %v5426_v1 = vld [vmem:[%s7821_s1 + $0x144] ss:$20 sps:$4 sm:$0xff]  }
  0x16   :  { %2424 = vmatprep.mubr.bf16.mxu1 %v5984_v53  ;;  %v5423_v63 = vld [vmem:[%s7821_s1 + $0x3ec] ss:$20 sps:$4 sm:$0xff]   ;;  %v5425_v2 = vld [vmem:[%s7821_s1 + $0x3e8] ss:$20 sps:$4 sm:$0xff]   ;;  %v5429_v4 = vld [vmem:[%s7821_s1 + $0x3c4] ss:$20 sps:$4 sm:$0xff]  }
  0x17   :  { %2290 = vmatpush1.bf16.msra.mxu0 %v5368_v22  ;;  %v5428_v3 = vld [vmem:[%s7821_s1 + $0x140] ss:$20 sps:$4 sm:$0xff]   ;;  %v5434_v6 = vld [vmem:[%s7821_s1 + $0x61c] ss:$20 sps:$4 sm:$0xff]   ;;  %v36_v11 = vld [vmem:[%s7822_s0 + $0x48] sm:$0xff]  ;;  %vm4119_vm8 = vcmask 1047559  }
  0x18   :  { %2291 = vmatprep.subr.bf16.mxu0 %v5372_v23  ;;  %2403 = vmatpush1.bf16.msra.mxu1 %v5371_v24  ;;  %v5431_v5 = vld [vmem:[%s7821_s1 + $0x3c0] ss:$20 sps:$4 sm:$0xff]   ;;  %v5440_v9 = vld [vmem:[%s7821_s1 + $0x89c] ss:$20 sps:$4 sm:$0xff]   ;;  %v40_v12 = vld [vmem:[%s7822_s0 + $0x68] sm:$0xff]  ;;  %vm5785_vm9 = vmmov 0  }
  0x19   :  { %2404 = vmatprep.subr.bf16.mxu1 %v5375_v25  ;;  %v35_v7 = vld [vmem:[%s7822_s0 + $0x40] sm:$0xff]  ;;  %v5432_v13 = vld [vmem:[%s7821_s1 + $0x618] ss:$20 sps:$4 sm:$0xff]   ;;  %v5437_v16 = vld [vmem:[%s7821_s1 + $0x5f4] ss:$20 sps:$4 sm:$0xff]   ;;  %v6069_v18 = vcombine.high %v36_v11, %v40_v12  ;;  %vm3599_vm10 = vcmask 523264  }
  0x1a   :  { %v39_v8 = vld [vmem:[%s7822_s0 + $0x60] sm:$0xff]  ;;  %v5438_v17 = vld [vmem:[%s7821_s1 + $0x898] ss:$20 sps:$4 sm:$0xff]   ;;  %v5449_v20 = vld [vmem:[%s7821_s1 + $0x874] ss:$20 sps:$4 sm:$0xff]   ;;  %vm4610_vm11 = vcmask 80896  }
  0x1b   :  { %2292 = vmatpush1.bf16.msra.mxu0 %v5374_v26  ;;  %v6059_v14 = vcombine.high %v35_v7, %v39_v8  ;;  %v5435_v19 = vld [vmem:[%s7821_s1 + $0x5f0] ss:$20 sps:$4 sm:$0xff]   ;;  %v5443_v21 = vld [vmem:[%s7821_s1 + $0x5cc] ss:$20 sps:$4 sm:$0xff]   ;;  %v6096_v26 = vcombine.low %v35_v7, %v39_v8  ;;  %v5455_v48 = vld [vmem:[%s7821_s1 + $0x554] ss:$20 sps:$4 sm:$0xff]  }
  0x1c   :  { %2293 = vmatprep.subr.bf16.mxu0 %v5378_v27  ;;  %2405 = vmatpush1.bf16.msra.mxu1 %v5377_v28  ;;  %v43_v22 = vld [vmem:[%s7822_s0 + $0x80] sm:$0xff]  ;;  %v44_v25 = vld [vmem:[%s7822_s0 + $0x88] sm:$0xff]  ;;  %v5470_v8 = vld [vmem:[%s7821_s1 + $0x75c] ss:$20 sps:$4 sm:$0xff]  }
  0x1d   :  { %2406 = vmatprep.subr.bf16.mxu1 %v5381_v29  ;;  %v47_v23 = vld [vmem:[%s7822_s0 + $0xa0] sm:$0xff]  ;;  %v48_v27 = vld [vmem:[%s7822_s0 + $0xa8] sm:$0xff] }
  0x1e   :  { %v5447_v24 = vld [vmem:[%s7821_s1 + $0x870] ss:$20 sps:$4 sm:$0xff]   ;;  %v5458_v28 = vld [vmem:[%s7821_s1 + $0x84c] ss:$20 sps:$4 sm:$0xff]   ;;  %v5441_v29 = vld [vmem:[%s7821_s1 + $0x5c8] ss:$20 sps:$4 sm:$0xff]   ;;  %v6157_v47 = vcombine.low %v44_v25, %v48_v27 }
  0x1f   :  { %2294 = vmatpush1.bf16.msra.mxu0 %v5380_v30  ;;  %v6107_v30 = vcombine.high %v43_v22, %v47_v23  ;;  %v5471_v50 = vld [vmem:[%s7821_s1 + $0x7f8] ss:$20 sps:$4 sm:$0xff]   ;;  %v427_v7 = vld [vmem:[%s7821_s1 + $0x8c0] sm:$0x33] }
  0x20   :  { %2295 = vmatprep.subr.bf16.mxu0 %v5384_v31  ;;  %2407 = vmatpush1.bf16.msra.mxu1 %v5383_v32  ;;  %v6109_v31 = vcombine.low %v36_v11, %v40_v12  ;;  %v5446_v32 = vld [vmem:[%s7821_s1 + $0x5a4] ss:$20 sps:$4 sm:$0xff]   ;;  %v5498_v12 = vld [vmem:[%s7821_s1 + $0x780] ss:$20 sps:$4 sm:$0xff]  }
  0x21   :  { %2408 = vmatprep.subr.bf16.mxu1 %v5387_v33  ;;  %v6114_v33 = vcombine.high %v44_v25, %v48_v27  ;;  %v71_v11 = vld [vmem:[%s7822_s0 + $0x160] sm:$0xff] }
  0x23   :  { %2296 = vmatpush2.bf16.msra.mxu0 %v5386_v34  ;;  %v5456_v34 = vld [vmem:[%s7821_s1 + $0x848] ss:$20 sps:$4 sm:$0xff]  }
  0x24   :  { %2297 = vmatprep.subr.bf16.mxu0 %v5390_v35  ;;  %2409 = vmatpush2.bf16.msra.mxu1 %v5389_v36  ;;  %v5444_v35 = vld [vmem:[%s7821_s1 + $0x5a0] ss:$20 sps:$4 sm:$0xff]   ;;  %v5467_v36 = vld [vmem:[%s7821_s1 + $0x824] ss:$20 sps:$4 sm:$0xff]  }
  0x25   :  { %2410 = vmatprep.subr.bf16.mxu1 %v5393_v37  ;;  %v5452_v37 = vld [vmem:[%s7821_s1 + $0x57c] ss:$20 sps:$4 sm:$0xff]  }
  0x27   :  { %2298 = vmatpush2.bf16.msra.mxu0 %v5392_v38  ;;  %v51_v38 = vld [vmem:[%s7822_s0 + $0xc0] sm:$0xff] }
  0x28   :  { %2299 = vmatprep.subr.bf16.mxu0 %v5396_v39  ;;  %2411 = vmatpush2.bf16.msra.mxu1 %v5395_v40  ;;  %v55_v39 = vld [vmem:[%s7822_s0 + $0xe0] sm:$0xff]  ;;  %v52_v40 = vld [vmem:[%s7822_s0 + $0xc8] sm:$0xff] }
  0x29   :  { %2412 = vmatprep.subr.bf16.mxu1 %v5399_v41  ;;  %v5465_v41 = vld [vmem:[%s7821_s1 + $0x820] ss:$20 sps:$4 sm:$0xff]  }
  0x2b   :  { %2300 = vmatpush2.bf16.msra.mxu0 %v5398_v42  ;;  %v6144_v42 = vcombine.low %v43_v22, %v47_v23 }
  0x2c   :  { %2301 = vmatprep.subr.bf16.mxu0 %v5402_v43  ;;  %2413 = vmatpush2.bf16.msra.mxu1 %v5401_v44  ;;  %v56_v43 = vld [vmem:[%s7822_s0 + $0xe8] sm:$0xff]  ;;  %v5473_v44 = vld [vmem:[%s7821_s1 + $0x7fc] ss:$20 sps:$4 sm:$0xff]  }
  0x2d   :  { %2414 = vmatprep.subr.bf16.mxu1 %v5405_v46  ;;  %v6155_v46 = vcombine.high %v51_v38, %v55_v39  ;;  %v6162_v49 = vcombine.high %v52_v40, %v56_v43 }
  0x2f   :  { %2302 = vmatpush2.bf16.msra.mxu0 %v5404_v45  ;;  %v5450_v45 = vld [vmem:[%s7821_s1 + $0x578] ss:$20 sps:$4 sm:$0xff]  }
  0x30   :  { %2303 = vmatprep.subr.bf16.mxu0 %v5408_v51  ;;  %2415 = vmatpush2.bf16.msra.mxu1 %v5407_v54  ;;  %v5453_v51 = vld [vmem:[%s7821_s1 + $0x550] ss:$20 sps:$4 sm:$0xff]   ;;  %v5482_v54 = vld [vmem:[%s7821_s1 + $0x7d4] ss:$20 sps:$4 sm:$0xff]  }
  0x31   :  { %2416 = vmatprep.subr.bf16.mxu1 %v5411_v55  ;;  %v5461_v55 = vld [vmem:[%s7821_s1 + $0x52c] ss:$20 sps:$4 sm:$0xff]  }
  0x33   :  { %2304 = vmatpush2.bf16.msra.mxu0 %v5410_v56  ;;  %v59_v56 = vld [vmem:[%s7822_s0 + $0x100] sm:$0xff] }
  0x34   :  { %2305 = vmatprep.subr.bf16.mxu0 %v5414_v57  ;;  %2417 = vmatpush2.bf16.msra.mxu1 %v5413_v58  ;;  %v63_v57 = vld [vmem:[%s7822_s0 + $0x120] sm:$0xff] }
  0x35   :  { %2418 = vmatprep.subr.bf16.mxu1 %v5417_v59  ;;  %v5480_v58 = vld [vmem:[%s7821_s1 + $0x7d0] ss:$20 sps:$4 sm:$0xff]   ;;  %v6189_v59 = vcombine.low %v51_v38, %v55_v39  ;;  %v80_v38 = vld [vmem:[%s7822_s0 + $0x1a8] sm:$0xff] }
  0x36   :  { %v5477_v39 = vld [vmem:[%s7821_s1 + $0x708] ss:$20 sps:$4 sm:$0xff]  }
  0x37   :  { %2306 = vmatpush2.bf16.msra.mxu0 %v5416_v60  ;;  %v60_v60 = vld [vmem:[%s7822_s0 + $0x108] sm:$0xff] }
  0x38   :  { %2307 = vmatprep.subr.bf16.mxu0 %v5420_v61  ;;  %2419 = vmatpush2.bf16.msra.mxu1 %v5419_v62  ;;  %v64_v61 = vld [vmem:[%s7822_s0 + $0x128] sm:$0xff] }
  0x39   :  { %2420 = vmatprep.subr.bf16.mxu1 %v5423_v63  ;;  %v5491_v62 = vld [vmem:[%s7821_s1 + $0x7ac] ss:$20 sps:$4 sm:$0xff]   ;;  %v5459_v63 = vld [vmem:[%s7821_s1 + $0x528] ss:$20 sps:$4 sm:$0xff]   ;;  %v6253_v23 = vcombine.low %v60_v60, %v64_v61 }
  0x3b   :  { %2308 = vmatpush2.bf16.msra.mxu0 %v5422_v0  ;;  %v6203_v0 = vcombine.high %v59_v56, %v63_v57 }
  0x3c   :  { %2309 = vmatprep.subr.bf16.mxu0 %v5426_v1  ;;  %2421 = vmatpush2.bf16.msra.mxu1 %v5425_v2  ;;  %v6205_v1 = vcombine.low %v52_v40, %v56_v43  ;;  %v5464_v2 = vld [vmem:[%s7821_s1 + $0x504] ss:$20 sps:$4 sm:$0xff]  }
  0x3d   :  { %2422 = vmatprep.subr.bf16.mxu1 %v5429_v4  ;;  %v5489_v4 = vld [vmem:[%s7821_s1 + $0x7a8] ss:$20 sps:$4 sm:$0xff]   ;;  %v5485_v43 = vld [vmem:[%s7821_s1 + $0x6e4] ss:$20 sps:$4 sm:$0xff]  }
  0x3f   :  { %2310 = vmatpush2.bf16.msra.mxu0 %v5428_v3  ;;  %v6210_v3 = vcombine.high %v60_v60, %v64_v61  ;;  %v5494_v61 = vld [vmem:[%s7821_s1 + $0x694] ss:$20 sps:$4 sm:$0xff]  }
  0x40   :  { %2505 = vmatprep.subr.bf16.mxu0 %v5434_v6  ;;  %2423 = vmatpush2.bf16.msra.mxu1 %v5431_v5  ;;  %v5462_v5 = vld [vmem:[%s7821_s1 + $0x500] ss:$20 sps:$4 sm:$0xff]   ;;  %v5500_v6 = vld [vmem:[%s7821_s1 + $0x784] ss:$20 sps:$4 sm:$0xff]  }
  0x41   :  { %2618 = vmatprep.subr.bf16.mxu1 %v5440_v9  ;;  %v67_v9 = vld [vmem:[%s7822_s0 + $0x140] sm:$0xff] }
  0x42   :  { %2312 = vmatmul.mubr.bf16.vlgmr.msra.gmra.mxu0 %v6048_v10  ;;  %v6251_v22 = vcombine.high %v67_v9, %v71_v11 }
  0x43   :  { %2506 = vmatpush1.bf16.msra.mxu0 %v5432_v13  ;;  %2321 = vmatprep.mubr.bf16.mxu0 %v6059_v14  ;;  %v6240_v13 = vcombine.low %v59_v56, %v63_v57  ;;  %v88_v56 = vld [vmem:[%s7822_s0 + $0x1e8] sm:$0xff] }
  0x44   :  { %2425 = vmatmul.mubr.bf16.vlgmr.msra.gmra.mxu1 %v6061_v15  ;;  %2507 = vmatprep.subr.bf16.mxu0 %v5437_v16  ;;  %v68_v16 = vld [vmem:[%s7822_s0 + $0x148] sm:$0xff] }
  0x45   :  { %2619 = vmatpush1.bf16.msra.mxu1 %v5438_v17  ;;  %2434 = vmatprep.mubr.bf16.mxu1 %v6069_v18  ;;  %v72_v17 = vld [vmem:[%s7822_s0 + $0x168] sm:$0xff] }
  0x46   :  { %2620 = vmatprep.subr.bf16.mxu1 %v5449_v20  ;;  %v4973_v20 = vcombine.low %v427_v7, %v427_v7  ;;  %v6258_v25 = vcombine.high %v68_v16, %v72_v17  ;;  %v5486_v57 = vld [vmem:[%s7821_s1 + $0x6b8] ss:$20 sps:$4 sm:$0xff]  }
  0x47   :  { %2508 = vmatpush1.bf16.msra.mxu0 %v5435_v19  ;;  %v4974_v19 = vcombine.high %v427_v7, %v427_v7  ;;  %v30_v7 = vld [vmem:[%s7822_s0 + $0x18] sm:$0xff] }
  0x48   :  { %2509 = vmatprep.subr.bf16.mxu0 %v5443_v21  ;;  %v5468_v21 = vld [vmem:[%s7821_s1 + $0x758] ss:$20 sps:$4 sm:$0xff]   ;;  %v2265_v27 = vsel %vm2263_vm0, %v4973_v20, 0 }
  0x49   :  { %2621 = vmatpush1.bf16.msra.mxu1 %v5447_v24  ;;  %v5476_v24 = vld [vmem:[%s7821_s1 + $0x734] ss:$20 sps:$4 sm:$0xff]   ;;  %v5508_v20 = vld [vmem:[%s7821_s1 + $0x124] ss:$20 sps:$4 sm:$0xff]  }
  0x4a   :  { %2322 = vmatmul.mubr.bf16.gmra.mxu0 %v6096_v26  ;;  %2622 = vmatprep.subr.bf16.mxu1 %v5458_v28  ;;  %v5511_v28 = vld [vmem:[%s7821_s1 + $0x3a4] ss:$20 sps:$4 sm:$0xff]  }
  0x4b   :  { %2510 = vmatpush1.bf16.msra.mxu0 %v5441_v29  ;;  %2331 = vmatprep.mubr.bf16.mxu0 %v6107_v30  ;;  %v5474_v29 = vld [vmem:[%s7821_s1 + $0x730] ss:$20 sps:$4 sm:$0xff]  }
  0x4c   :  { %2435 = vmatmul.mubr.bf16.gmra.mxu1 %v6109_v31  ;;  %2511 = vmatprep.subr.bf16.mxu0 %v5446_v32  ;;  %v5479_v32 = vld [vmem:[%s7821_s1 + $0x70c] ss:$20 sps:$4 sm:$0xff]  }
  0x4d   :  { %2444 = vmatprep.mubr.bf16.mxu1 %v6114_v33  ;;  %2623 = vmatpush1.bf16.msra.mxu1 %v5456_v34  ;;  %v75_v34 = vld [vmem:[%s7822_s0 + $0x180] sm:$0xff] }
  0x4e   :  { %2624 = vmatprep.subr.bf16.mxu1 %v5467_v36  ;;  %v6281_v36 = vcombine.low %v67_v9, %v71_v11  ;;  %v5495_v9 = vld [vmem:[%s7821_s1 + $0x668] ss:$20 sps:$4 sm:$0xff]  }
  0x4f   :  { %2512 = vmatpush1.bf16.msra.mxu0 %v5444_v35  ;;  %v79_v35 = vld [vmem:[%s7822_s0 + $0x1a0] sm:$0xff] }
  0x50   :  { %2513 = vmatprep.subr.bf16.mxu0 %v5452_v37  ;;  %7884 = vst [vmem:[#allocation2_spill] sm:$0xff] %v6281_v36  ;;  %v76_v37 = vld [vmem:[%s7822_s0 + $0x188] sm:$0xff]  ;;  %v6292_v40 = vcombine.high %v75_v34, %v79_v35 }
  0x51   :  { %2625 = vmatpush1.bf16.msra.mxu1 %v5465_v41  ;;  %v6294_v41 = vcombine.low %v68_v16, %v72_v17  ;;  %v6330_v60 = vcombine.low %v76_v37, %v80_v38  ;;  %v5503_v16 = vld [vmem:[%s7821_s1 + $0x644] ss:$20 sps:$4 sm:$0xff]  }
  0x52   :  { %2332 = vmatmul.mubr.bf16.gmra.mxu0 %v6144_v42  ;;  %2626 = vmatprep.subr.bf16.mxu1 %v5473_v44  ;;  %7885 = vst [vmem:[#allocation3_spill] sm:$0xff] %v6292_v40  ;;  %v6299_v44 = vcombine.high %v76_v37, %v80_v38  ;;  %v5514_v37 = vld [vmem:[%s7821_s1 + $0xfc] ss:$20 sps:$4 sm:$0xff]   ;;  %v5509_v38 = vld [vmem:[%s7821_s1 + $0x3a0] ss:$20 sps:$4 sm:$0xff]  }
  0x53   :  { %2514 = vmatpush1.bf16.msra.mxu0 %v5450_v45  ;;  %2341 = vmatprep.mubr.bf16.mxu0 %v6155_v46  ;;  %7886 = vst [vmem:[#allocation4_spill] sm:$0xff] %v6294_v41  ;;  %v5483_v45 = vld [vmem:[%s7821_s1 + $0x6e0] ss:$20 sps:$4 sm:$0xff]   ;;  %7890 = vst [vmem:[#allocation8_spill] sm:$0xff] %v6330_v60 }
  0x54   :  { %2445 = vmatmul.mubr.bf16.gmra.mxu1 %v6157_v47  ;;  %2515 = vmatprep.subr.bf16.mxu0 %v5455_v48  ;;  %7887 = vst [vmem:[#allocation5_spill] sm:$0xff] %v6299_v44  ;;  %v5488_v48 = vld [vmem:[%s7821_s1 + $0x6bc] ss:$20 sps:$4 sm:$0xff]  }
  0x55   :  { %2454 = vmatprep.mubr.bf16.mxu1 %v6162_v49  ;;  %2627 = vmatpush1.bf16.msra.mxu1 %v5471_v50  ;;  %v83_v50 = vld [vmem:[%s7822_s0 + $0x1c0] sm:$0xff] }
  0x56   :  { %2628 = vmatprep.subr.bf16.mxu1 %v5482_v54  ;;  %v6317_v54 = vcombine.low %v75_v34, %v79_v35 }
  0x57   :  { %2516 = vmatpush1.bf16.msra.mxu0 %v5453_v51  ;;  %v87_v51 = vld [vmem:[%s7822_s0 + $0x1e0] sm:$0xff] }
  0x58   :  { %2517 = vmatprep.subr.bf16.mxu0 %v5461_v55  ;;  %7888 = vst [vmem:[#allocation6_spill] sm:$0xff] %v6317_v54  ;;  %v84_v55 = vld [vmem:[%s7822_s0 + $0x1c8] sm:$0xff] }
  0x59   :  { %2629 = vmatpush1.bf16.msra.mxu1 %v5480_v58  ;;  %v6328_v58 = vcombine.high %v83_v50, %v87_v51 }
  0x5a   :  { %2342 = vmatmul.mubr.bf16.gmra.mxu0 %v6189_v59  ;;  %2630 = vmatprep.subr.bf16.mxu1 %v5491_v62  ;;  %v6335_v62 = vcombine.high %v84_v55, %v88_v56 }
  0x5b   :  { %2518 = vmatpush1.bf16.msra.mxu0 %v5459_v63  ;;  %2351 = vmatprep.mubr.bf16.mxu0 %v6203_v0  ;;  %7889 = vst [vmem:[#allocation7_spill] sm:$0xff] %v6328_v58  ;;  %v5492_v63 = vld [vmem:[%s7821_s1 + $0x690] ss:$20 sps:$4 sm:$0xff]  }
  0x5c   :  { %2455 = vmatmul.mubr.bf16.gmra.mxu1 %v6205_v1  ;;  %2519 = vmatprep.subr.bf16.mxu0 %v5464_v2  ;;  %7891 = vst [vmem:[#allocation9_spill] sm:$0xff] %v6335_v62  ;;  %v5497_v2 = vld [vmem:[%s7821_s1 + $0x66c] ss:$20 sps:$4 sm:$0xff]  }
  0x5d   :  { %2464 = vmatprep.mubr.bf16.mxu1 %v6210_v3  ;;  %2631 = vmatpush1.bf16.msra.mxu1 %v5489_v4  ;;  %v29_v4 = vld [vmem:[%s7822_s0 + $0x10] sm:$0xff] }
  0x5e   :  { %2632 = vmatprep.subr.bf16.mxu1 %v5500_v6  ;;  %v6353_v6 = vcombine.low %v83_v50, %v87_v51  ;;  %v45_v50 = vld [vmem:[%s7822_s0 + $0x90] sm:$0xff] }
  0x5f   :  { %2520 = vmatpush1.bf16.msra.mxu0 %v5462_v5  ;;  %v33_v5 = vld [vmem:[%s7822_s0 + $0x30] sm:$0xff] }
  0x60   :  { %2521 = vmatprep.subr.bf16.mxu0 %v5470_v8  ;;  %7892 = vst [vmem:[#allocation10_spill] sm:$0xff] %v6353_v6  ;;  %v34_v8 = vld [vmem:[%s7822_s0 + $0x38] sm:$0xff]  ;;  %v6364_v11 = vcombine.high %v29_v4, %v33_v5  ;;  %v49_v51 = vld [vmem:[%s7822_s0 + $0xb0] sm:$0xff] }
  0x61   :  { %2633 = vmatpush1.bf16.msra.mxu1 %v5498_v12  ;;  %v6366_v12 = vcombine.low %v84_v55, %v88_v56  ;;  %v6371_v17 = vcombine.high %v30_v7, %v34_v8  ;;  %v6403_v35 = vcombine.low %v30_v7, %v34_v8  ;;  %v5515_v55 = vld [vmem:[%s7821_s1 + $0x378] ss:$20 sps:$4 sm:$0xff]   ;;  %v5523_v56 = vld [vmem:[%s7821_s1 + $0x354] ss:$20 sps:$4 sm:$0xff]   ;;  %v5521_v8 = vld [vmem:[%s7821_s1 + $0x350] ss:$20 sps:$4 sm:$0xff]  }
  0x62   :  { %2352 = vmatmul.mubr.bf16.gmra.mxu0 %v6240_v13  ;;  %4978 = vmatprep.subr.msk.bf16.mxu1 %vm2263_vm0, %v4974_v19  ;;  %7893 = vst [vmem:[#allocation11_spill] sm:$0xff] %v6364_v11  ;;  %v5501_v19 = vld [vmem:[%s7821_s1 + $0x640] ss:$20 sps:$4 sm:$0xff]  }
  0x63   :  { %2522 = vmatpush2.bf16.msra.mxu0 %v5468_v21  ;;  %2361 = vmatprep.mubr.bf16.mxu0 %v6251_v22  ;;  %7894 = vst [vmem:[#allocation12_spill] sm:$0xff] %v6366_v12  ;;  %7895 = vst [vmem:[#allocation13_spill] sm:$0xff] %v6371_v17  ;;  %v37_v21 = vld [vmem:[%s7822_s0 + $0x50] sm:$0xff]  ;;  %v5526_v7 = vld [vmem:[%s7821_s1 + $0xac] ss:$20 sps:$4 sm:$0xff]  }
  0x64   :  { %2465 = vmatmul.mubr.bf16.gmra.mxu1 %v6253_v23  ;;  %2523 = vmatprep.subr.bf16.mxu0 %v5476_v24  ;;  %v41_v24 = vld [vmem:[%s7822_s0 + $0x70] sm:$0xff]  ;;  %7898 = vst [vmem:[#allocation16_spill] sm:$0xff] %v6403_v35 }
  0x65   :  { %2474 = vmatprep.mubr.bf16.mxu1 %v6258_v25  ;;  %2649 = vmatpush2.bf16.msra.mxu1 %v2265_v27  ;;  %v6390_v27 = vcombine.low %v29_v4, %v33_v5  ;;  %v6401_v34 = vcombine.high %v37_v21, %v41_v24  ;;  %v6450_v4 = vcombine.high %v45_v50, %v49_v51 }
  0x66   :  { %2844 = vmatprep.subr.bf16.mxu1 %v5511_v28  ;;  %v38_v28 = vld [vmem:[%s7822_s0 + $0x58] sm:$0xff] }
  0x67   :  { %2524 = vmatpush2.bf16.msra.mxu0 %v5474_v29  ;;  %7896 = vst [vmem:[#allocation14_spill] sm:$0xff] %v6390_v27  ;;  %v42_v29 = vld [vmem:[%s7822_s0 + $0x78] sm:$0xff]  ;;  %7897 = vst [vmem:[#allocation15_spill] sm:$0xff] %v6401_v34 }
  0x68   :  { %2525 = vmatprep.subr.bf16.mxu0 %v5479_v32  ;;  %v5506_v32 = vld [vmem:[%s7821_s1 + $0x120] ss:$20 sps:$4 sm:$0xff]   ;;  %7901 = vst [vmem:[#allocation19_spill] sm:$0xff] %v6450_v4  ;;  %v6452_v5 = vcombine.low %v38_v28, %v42_v29 }
  0x6a   :  { %2362 = vmatmul.mubr.bf16.gmra.mxu0 %v6281_v36  ;;  %7902 = vst [vmem:[#allocation20_spill] sm:$0xff] %v6452_v5 }
  0x6b   :  { %2526 = vmatpush2.bf16.msra.mxu0 %v5477_v39  ;;  %2371 = vmatprep.mubr.bf16.mxu0 %v6292_v40  ;;  %v6411_v39 = vcombine.high %v38_v28, %v42_v29  ;;  %v5527_v28 = vld [vmem:[%s7821_s1 + $0x328] ss:$20 sps:$4 sm:$0xff]   ;;  %v5535_v29 = vld [vmem:[%s7821_s1 + $0x304] ss:$20 sps:$4 sm:$0xff]  }
  0x6c   :  { %2475 = vmatmul.mubr.bf16.gmra.mxu1 %v6294_v41  ;;  %2527 = vmatprep.subr.bf16.mxu0 %v5485_v43  ;;  %v5517_v43 = vld [vmem:[%s7821_s1 + $0x37c] ss:$20 sps:$4 sm:$0xff]  }
  0x6d   :  { %2484 = vmatprep.mubr.bf16.mxu1 %v6299_v44  ;;  %7899 = vst [vmem:[#allocation17_spill] sm:$0xff] %v6411_v39 }
  0x6f   :  { %2528 = vmatpush2.bf16.msra.mxu0 %v5483_v45  ;;  %v5512_v45 = vld [vmem:[%s7821_s1 + $0xf8] ss:$20 sps:$4 sm:$0xff]  }
  0x70   :  { %2529 = vmatprep.subr.bf16.mxu0 %v5488_v48  ;;  %v5520_v48 = vld [vmem:[%s7821_s1 + $0xd4] ss:$20 sps:$4 sm:$0xff]  }
  0x72   :  { %2372 = vmatmul.mubr.bf16.gmra.mxu0 %v6317_v54 }
  0x73   :  { %2530 = vmatpush2.bf16.msra.mxu0 %v5486_v57  ;;  %2381 = vmatprep.mubr.bf16.mxu0 %v6328_v58  ;;  %v6439_v57 = vcombine.low %v37_v21, %v41_v24  ;;  %v53_v21 = vld [vmem:[%s7822_s0 + $0xd0] sm:$0xff] }
  0x74   :  { %2485 = vmatmul.mubr.bf16.gmra.mxu1 %v6330_v60  ;;  %2531 = vmatprep.subr.bf16.mxu0 %v5494_v61  ;;  %v46_v61 = vld [vmem:[%s7822_s0 + $0x98] sm:$0xff]  ;;  %v57_v24 = vld [vmem:[%s7822_s0 + $0xf0] sm:$0xff] }
  0x75   :  { %2494 = vmatprep.mubr.bf16.mxu1 %v6335_v62  ;;  %7900 = vst [vmem:[#allocation18_spill] sm:$0xff] %v6439_v57 }
  0x77   :  { %2532 = vmatpush2.bf16.msra.mxu0 %v5492_v63  ;;  %v50_v63 = vld [vmem:[%s7822_s0 + $0xb8] sm:$0xff] }
  0x78   :  { %2533 = vmatprep.subr.bf16.mxu0 %v5497_v2  ;;  %v5518_v2 = vld [vmem:[%s7821_s1 + $0xd0] ss:$20 sps:$4 sm:$0xff]  }
  0x7a   :  { %2382 = vmatmul.mubr.bf16.gmra.mxu0 %v6353_v6 }
  0x7b   :  { %2534 = vmatpush2.bf16.msra.mxu0 %v5495_v9  ;;  %2537 = vmatprep.mubr.bf16.mxu0 %v6364_v11  ;;  %v5524_v9 = vld [vmem:[%s7821_s1 + $0xa8] ss:$20 sps:$4 sm:$0xff]  }
  0x7c   :  { %2495 = vmatmul.mubr.bf16.gmra.mxu1 %v6366_v12  ;;  %2535 = vmatprep.subr.bf16.mxu0 %v5503_v16  ;;  %v6463_v16 = vcombine.high %v46_v61, %v50_v63 }
  0x7d   :  { %4979 = vmatprep.mubr.msk.bf16.mxu1 %vm2238_vm1, %v6371_v17 }
  0x7e   :  { %7903 = vst [vmem:[#allocation21_spill] sm:$0xff] %v6463_v16 }
  0x7f   :  { %2536 = vmatpush2.bf16.msra.mxu0 %v5501_v19  ;;  %v5529_v19 = vld [vmem:[%s7821_s1 + $0x32c] ss:$20 sps:$4 sm:$0xff]  }
  0x80   :  { %2731 = vmatprep.subr.bf16.mxu0 %v5508_v20  ;;  %v5532_v20 = vld [vmem:[%s7821_s1 + $0x84] ss:$20 sps:$4 sm:$0xff]  }
  0x82   :  { %2538 = vmatmul.mubr.bf16.vlgmr.msra.gmra.mxu0 %v6390_v27 }
  0x83   :  { %2732 = vmatpush1.bf16.msra.mxu0 %v5506_v32  ;;  %2547 = vmatprep.mubr.bf16.mxu0 %v6401_v34  ;;  %v6488_v32 = vcombine.low %v45_v50, %v49_v51  ;;  %v5538_v50 = vld [vmem:[%s7821_s1 + $0x5c] ss:$20 sps:$4 sm:$0xff]   ;;  %v5533_v51 = vld [vmem:[%s7821_s1 + $0x300] ss:$20 sps:$4 sm:$0xff]  }
  0x84   :  { %2651 = vmatmul.mubr.bf16.vlgmr.msra.gmra.mxu1 %v6403_v35  ;;  %2733 = vmatprep.subr.bf16.mxu0 %v5514_v37  ;;  %v54_v37 = vld [vmem:[%s7822_s0 + $0xd8] sm:$0xff] }
  0x85   :  { %2845 = vmatpush1.bf16.msra.mxu1 %v5509_v38  ;;  %4980 = vmatprep.mubr.msk.bf16.mxu1 %vm2238_vm1, %v6411_v39  ;;  %7904 = vst [vmem:[#allocation22_spill] sm:$0xff] %v6488_v32  ;;  %v58_v38 = vld [vmem:[%s7822_s0 + $0xf8] sm:$0xff] }
  0x86   :  { %2846 = vmatprep.subr.bf16.mxu1 %v5517_v43  ;;  %v5530_v43 = vld [vmem:[%s7821_s1 + $0x80] ss:$20 sps:$4 sm:$0xff]  }
  0x87   :  { %2734 = vmatpush1.bf16.msra.mxu0 %v5512_v45  ;;  %v6499_v45 = vcombine.high %v53_v21, %v57_v24 }
  0x88   :  { %2735 = vmatprep.subr.bf16.mxu0 %v5520_v48  ;;  %v6501_v48 = vcombine.low %v46_v61, %v50_v63  ;;  %v5541_v61 = vld [vmem:[%s7821_s1 + $0x2dc] ss:$20 sps:$4 sm:$0xff]   ;;  %v5544_v63 = vld [vmem:[%s7821_s1 + $0x34] ss:$20 sps:$4 sm:$0xff]  }
  0x89   :  { %2847 = vmatpush1.bf16.msra.mxu1 %v5515_v55  ;;  %7905 = vst [vmem:[#allocation23_spill] sm:$0xff] %v6499_v45  ;;  %v5536_v55 = vld [vmem:[%s7821_s1 + $0x58] ss:$20 sps:$4 sm:$0xff]  }
  0x8a   :  { %2548 = vmatmul.mubr.bf16.gmra.mxu0 %v6439_v57  ;;  %2848 = vmatprep.subr.bf16.mxu1 %v5523_v56  ;;  %7906 = vst [vmem:[#allocation24_spill] sm:$0xff] %v6501_v48  ;;  %v6512_v56 = vcombine.high %v54_v37, %v58_v38 }
  0x8b   :  { %2736 = vmatpush1.bf16.msra.mxu0 %v5518_v2  ;;  %2557 = vmatprep.mubr.bf16.mxu0 %v6450_v4  ;;  %v61_v2 = vld [vmem:[%s7822_s0 + $0x110] sm:$0xff] }
  0x8c   :  { %2661 = vmatmul.mubr.bf16.gmra.mxu1 %v6452_v5  ;;  %2737 = vmatprep.subr.bf16.mxu0 %v5526_v7  ;;  %7907 = vst [vmem:[#allocation25_spill] sm:$0xff] %v6512_v56  ;;  %v65_v7 = vld [vmem:[%s7822_s0 + $0x130] sm:$0xff] }
  0x8d   :  { %2849 = vmatpush1.bf16.msra.mxu1 %v5521_v8  ;;  %4981 = vmatprep.mubr.msk.bf16.mxu1 %vm2238_vm1, %v6463_v16  ;;  %v5539_v8 = vld [vmem:[%s7821_s1 + $0x2d8] ss:$20 sps:$4 sm:$0xff]  }
  0x8e   :  { %2850 = vmatprep.subr.bf16.mxu1 %v5529_v19  ;;  %v6537_v19 = vcombine.low %v53_v21, %v57_v24  ;;  %v5550_v21 = vld [vmem:[%s7821_s1 + $0xc] ss:$20 sps:$4 sm:$0xff]   ;;  %v5545_v24 = vld [vmem:[%s7821_s1 + $0x2b0] ss:$20 sps:$4 sm:$0xff]  }
  0x8f   :  { %2738 = vmatpush1.bf16.msra.mxu0 %v5524_v9  ;;  %v5547_v9 = vld [vmem:[%s7821_s1 + $0x2b4] ss:$20 sps:$4 sm:$0xff]  }
  0x90   :  { %2739 = vmatprep.subr.bf16.mxu0 %v5532_v20  ;;  %7908 = vst [vmem:[#allocation26_spill] sm:$0xff] %v6537_v19  ;;  %v62_v20 = vld [vmem:[%s7822_s0 + $0x118] sm:$0xff] }
  0x91   :  { %2851 = vmatpush1.bf16.msra.mxu1 %v5527_v28  ;;  %v66_v28 = vld [vmem:[%s7822_s0 + $0x138] sm:$0xff] }
  0x92   :  { %2558 = vmatmul.mubr.bf16.gmra.mxu0 %v6488_v32  ;;  %2852 = vmatprep.subr.bf16.mxu1 %v5535_v29  ;;  %v5542_v29 = vld [vmem:[%s7821_s1 + $0x30] ss:$20 sps:$4 sm:$0xff]  }
  0x93   :  { %2740 = vmatpush1.bf16.msra.mxu0 %v5530_v43  ;;  %2567 = vmatprep.mubr.bf16.mxu0 %v6499_v45  ;;  %v6548_v43 = vcombine.high %v61_v2, %v65_v7 }
  0x94   :  { %2671 = vmatmul.mubr.bf16.gmra.mxu1 %v6501_v48  ;;  %2741 = vmatprep.subr.bf16.mxu0 %v5538_v50  ;;  %v6550_v50 = vcombine.low %v54_v37, %v58_v38  ;;  %v5553_v37 = vld [vmem:[%s7821_s1 + $0x28c] ss:$20 sps:$4 sm:$0xff]   ;;  %v5556_v38 = vld [vmem:[%s7821_s1 + $0x264] ss:$20 sps:$4 sm:$0xff]  }
  0x95   :  { %2853 = vmatpush1.bf16.msra.mxu1 %v5533_v51  ;;  %4982 = vmatprep.mubr.msk.bf16.mxu1 %vm2238_vm1, %v6512_v56  ;;  %7909 = vst [vmem:[#allocation27_spill] sm:$0xff] %v6548_v43  ;;  %v5548_v51 = vld [vmem:[%s7821_s1 + $0x8] ss:$20 sps:$4 sm:$0xff]  }
  0x96   :  { %2854 = vmatprep.subr.bf16.mxu1 %v5541_v61  ;;  %7910 = vst [vmem:[#allocation28_spill] sm:$0xff] %v6550_v50  ;;  %v69_v61 = vld [vmem:[%s7822_s0 + $0x150] sm:$0xff] }
  0x97   :  { %2742 = vmatpush1.bf16.msra.mxu0 %v5536_v55  ;;  %v6561_v55 = vcombine.high %v62_v20, %v66_v28 }
  0x98   :  { %2743 = vmatprep.subr.bf16.mxu0 %v5544_v63  ;;  %v73_v63 = vld [vmem:[%s7822_s0 + $0x170] sm:$0xff] }
  0x99   :  { %2855 = vmatpush1.bf16.msra.mxu1 %v5539_v8  ;;  %7911 = vst [vmem:[#allocation29_spill] sm:$0xff] %v6561_v55  ;;  %v5551_v8 = vld [vmem:[%s7821_s1 + $0x288] ss:$20 sps:$4 sm:$0xff]  }
  0x9a   :  { %2568 = vmatmul.mubr.bf16.gmra.mxu0 %v6537_v19  ;;  %2856 = vmatprep.subr.bf16.mxu1 %v5547_v9  ;;  %v5559_v9 = vld [vmem:[%s7821_s1 + $0x4e4] ss:$20 sps:$4 sm:$0xff]  }
  0x9b   :  { %2744 = vmatpush1.bf16.msra.mxu0 %v5542_v29  ;;  %2577 = vmatprep.mubr.bf16.mxu0 %v6548_v43  ;;  %v6586_v29 = vcombine.low %v61_v2, %v65_v7  ;;  %v6599_v43 = vcombine.low %v62_v20, %v66_v28  ;;  %v5562_v2 = vld [vmem:[%s7821_s1 + $0x23c] ss:$20 sps:$4 sm:$0xff]   ;;  %v5557_v7 = vld [vmem:[%s7821_s1 + $0x4e0] ss:$20 sps:$4 sm:$0xff]  }
  0x9c   :  { %2681 = vmatmul.mubr.bf16.gmra.mxu1 %v6550_v50  ;;  %2745 = vmatprep.subr.bf16.mxu0 %v5550_v21  ;;  %v70_v21 = vld [vmem:[%s7822_s0 + $0x158] sm:$0xff]  ;;  %v6597_v50 = vcombine.high %v69_v61, %v73_v63  ;;  %v5568_v28 = vld [vmem:[%s7821_s1 + $0x214] ss:$20 sps:$4 sm:$0xff]  }
  0x9d   :  { %2857 = vmatpush1.bf16.msra.mxu1 %v5545_v24  ;;  %4983 = vmatprep.mubr.msk.bf16.mxu1 %vm2238_vm1, %v6561_v55  ;;  %7912 = vst [vmem:[#allocation30_spill] sm:$0xff] %v6586_v29  ;;  %v74_v24 = vld [vmem:[%s7822_s0 + $0x178] sm:$0xff]  ;;  %v5554_v55 = vld [vmem:[%s7821_s1 + $0x260] ss:$20 sps:$4 sm:$0xff]   ;;  %7914 = vst [vmem:[#allocation32_spill] sm:$0xff] %v6599_v43 }
  0x9e   :  { %2858 = vmatprep.subr.bf16.mxu1 %v5553_v37  ;;  %7913 = vst [vmem:[#allocation31_spill] sm:$0xff] %v6597_v50  ;;  %v6610_v37 = vcombine.high %v70_v21, %v74_v24  ;;  %v5565_v20 = vld [vmem:[%s7821_s1 + $0x4bc] ss:$20 sps:$4 sm:$0xff]  }
  0x9f   :  { %2746 = vmatpush1.bf16.msra.mxu0 %v5548_v51  ;;  %v5560_v51 = vld [vmem:[%s7821_s1 + $0x238] ss:$20 sps:$4 sm:$0xff]  }
  0xa0   :  { %2747 = vmatprep.subr.bf16.mxu0 %v5556_v38  ;;  %7915 = vst [vmem:[#allocation33_spill] sm:$0xff] %v6610_v37  ;;  %v77_v38 = vld [vmem:[%s7822_s0 + $0x190] sm:$0xff] }
  0xa1   :  { %2859 = vmatpush1.bf16.msra.mxu1 %v5551_v8  ;;  %v81_v8 = vld [vmem:[%s7822_s0 + $0x1b0] sm:$0xff] }
  0xa2   :  { %2578 = vmatmul.mubr.bf16.gmra.mxu0 %v6586_v29  ;;  %2860 = vmatprep.subr.bf16.mxu1 %v5559_v9  ;;  %v5563_v9 = vld [vmem:[%s7821_s1 + $0x4b8] ss:$20 sps:$4 sm:$0xff]   ;;  %v6648_v29 = vcombine.low %v70_v21, %v74_v24  ;;  %v5575_v24 = vld [vmem:[%s7821_s1 + $0x468] ss:$20 sps:$4 sm:$0xff]  }
  0xa3   :  { %2748 = vmatpush2.bf16.msra.mxu0 %v5554_v55  ;;  %2587 = vmatprep.mubr.bf16.mxu0 %v6597_v50  ;;  %v5571_v55 = vld [vmem:[%s7821_s1 + $0x494] ss:$20 sps:$4 sm:$0xff]   ;;  %v6635_v50 = vcombine.low %v69_v61, %v73_v63  ;;  %v5574_v61 = vld [vmem:[%s7821_s1 + $0x1ec] ss:$20 sps:$4 sm:$0xff]   ;;  %v5569_v63 = vld [vmem:[%s7821_s1 + $0x490] ss:$20 sps:$4 sm:$0xff]  }
  0xa4   :  { %2691 = vmatmul.mubr.bf16.gmra.mxu1 %v6599_v43  ;;  %2749 = vmatprep.subr.bf16.mxu0 %v5562_v2  ;;  %v78_v2 = vld [vmem:[%s7822_s0 + $0x198] sm:$0xff]  ;;  %v6646_v43 = vcombine.high %v77_v38, %v81_v8  ;;  %7918 = vst [vmem:[#allocation36_spill] sm:$0xff] %v6648_v29  ;;  %v5577_v21 = vld [vmem:[%s7821_s1 + $0x46c] ss:$20 sps:$4 sm:$0xff]  }
  0xa5   :  { %2861 = vmatpush2.bf16.msra.mxu1 %v5557_v7  ;;  %4984 = vmatprep.mubr.msk.bf16.mxu1 %vm2238_vm1, %v6610_v37  ;;  %7916 = vst [vmem:[#allocation34_spill] sm:$0xff] %v6635_v50  ;;  %v82_v7 = vld [vmem:[%s7822_s0 + $0x1b8] sm:$0xff]  ;;  %v5566_v37 = vld [vmem:[%s7821_s1 + $0x210] ss:$20 sps:$4 sm:$0xff]  }
  0xa6   :  { %2862 = vmatprep.subr.bf16.mxu1 %v5565_v20  ;;  %7917 = vst [vmem:[#allocation35_spill] sm:$0xff] %v6646_v43  ;;  %v6656_v20 = vcombine.high %v78_v2, %v82_v7 }
  0xa7   :  { %2750 = vmatpush2.bf16.msra.mxu0 %v5560_v51  ;;  %v5572_v51 = vld [vmem:[%s7821_s1 + $0x1e8] ss:$20 sps:$4 sm:$0xff]  }
  0xa8   :  { %2751 = vmatprep.subr.bf16.mxu0 %v5568_v28  ;;  %7919 = vst [vmem:[#allocation37_spill] sm:$0xff] %v6656_v20  ;;  %v5580_v28 = vld [vmem:[%s7821_s1 + $0x1c4] ss:$20 sps:$4 sm:$0xff]  }
  0xa9   :  { %2863 = vmatpush2.bf16.msra.mxu1 %v5563_v9  ;;  %v85_v9 = vld [vmem:[%s7822_s0 + $0x1d0] sm:$0xff] }
  0xaa   :  { %2588 = vmatmul.mubr.bf16.gmra.mxu0 %v6635_v50  ;;  %2864 = vmatprep.subr.bf16.mxu1 %v5571_v55  ;;  %v5583_v55 = vld [vmem:[%s7821_s1 + $0x444] ss:$20 sps:$4 sm:$0xff]   ;;  %v6697_v50 = vcombine.low %v78_v2, %v82_v7  ;;  %v5592_v7 = vld [vmem:[%s7821_s1 + $0x174] ss:$20 sps:$4 sm:$0xff]  }
  0xab   :  { %2752 = vmatpush2.bf16.msra.mxu0 %v5566_v37  ;;  %2597 = vmatprep.mubr.bf16.mxu0 %v6646_v43  ;;  %v89_v37 = vld [vmem:[%s7822_s0 + $0x1f0] sm:$0xff]  ;;  %v6684_v43 = vcombine.low %v77_v38, %v81_v8  ;;  %v5584_v2 = vld [vmem:[%s7821_s1 + $0x198] ss:$20 sps:$4 sm:$0xff]  }
  0xac   :  { %2701 = vmatmul.mubr.bf16.gmra.mxu1 %v6648_v29  ;;  %2753 = vmatprep.subr.bf16.mxu0 %v5574_v61  ;;  %v86_v29 = vld [vmem:[%s7822_s0 + $0x1d8] sm:$0xff]  ;;  %7922 = vst [vmem:[#allocation40_spill] sm:$0xff] %v6697_v50  ;;  %v5581_v8 = vld [vmem:[%s7821_s1 + $0x440] ss:$20 sps:$4 sm:$0xff]  }
  0xad   :  { %2865 = vmatpush2.bf16.msra.mxu1 %v5569_v63  ;;  %4985 = vmatprep.mubr.msk.bf16.mxu1 %vm2238_vm1, %v6656_v20  ;;  %7920 = vst [vmem:[#allocation38_spill] sm:$0xff] %v6684_v43  ;;  %v90_v61 = vld [vmem:[%s7822_s0 + $0x1f8] sm:$0xff]  ;;  %v5578_v63 = vld [vmem:[%s7821_s1 + $0x1c0] ss:$20 sps:$4 sm:$0xff]   ;;  %v6695_v20 = vcombine.high %v85_v9, %v89_v37 }
  0xae   :  { %2866 = vmatprep.subr.bf16.mxu1 %v5577_v21  ;;  %v5586_v38 = vld [vmem:[%s7821_s1 + $0x19c] ss:$20 sps:$4 sm:$0xff]   ;;  %v6705_v21 = vcombine.high %v86_v29, %v90_v61 }
  0xaf   :  { %2754 = vmatpush2.bf16.msra.mxu0 %v5572_v51  ;;  %7921 = vst [vmem:[#allocation39_spill] sm:$0xff] %v6695_v20  ;;  %v5589_v51 = vld [vmem:[%s7821_s1 + $0x41c] ss:$20 sps:$4 sm:$0xff]  }
  0xb0   :  { %2755 = vmatprep.subr.bf16.mxu0 %v5580_v28  ;;  %7923 = vst [vmem:[#allocation41_spill] sm:$0xff] %v6705_v21  ;;  %v6724_v28 = vcombine.low %v85_v9, %v89_v37  ;;  %v5593_v9 = vld [vmem:[%s7821_s1 + $0x3f0] ss:$20 sps:$4 sm:$0xff]   ;;  %v5601_v37 = vld [vmem:[%s7821_s1 + $0x3cc] ss:$20 sps:$4 sm:$0xff]  }
  0xb1   :  { %2867 = vmatpush2.bf16.msra.mxu1 %v5575_v24  ;;  %v5587_v24 = vld [vmem:[%s7821_s1 + $0x418] ss:$20 sps:$4 sm:$0xff]  }
  0xb2   :  { %2598 = vmatmul.mubr.bf16.gmra.mxu0 %v6684_v43  ;;  %2868 = vmatprep.subr.bf16.mxu1 %v5583_v55  ;;  %v5595_v55 = vld [vmem:[%s7821_s1 + $0x3f4] ss:$20 sps:$4 sm:$0xff]  }
  0xb3   :  { %2756 = vmatpush2.bf16.msra.mxu0 %v5578_v63  ;;  %2607 = vmatprep.mubr.bf16.mxu0 %v6695_v20  ;;  %v5590_v63 = vld [vmem:[%s7821_s1 + $0x170] ss:$20 sps:$4 sm:$0xff]  }
  0xb4   :  { %2711 = vmatmul.mubr.bf16.gmra.mxu1 %v6697_v50  ;;  %2757 = vmatprep.subr.bf16.mxu0 %v5586_v38  ;;  %v6732_v38 = vcombine.low %v86_v29, %v90_v61  ;;  %v5596_v29 = vld [vmem:[%s7821_s1 + $0x148] ss:$20 sps:$4 sm:$0xff]   ;;  %v5604_v61 = vld [vmem:[%s7821_s1 + $0x624] ss:$20 sps:$4 sm:$0xff]  }
  0xb5   :  { %2869 = vmatpush2.bf16.msra.mxu1 %v5581_v8  ;;  %4986 = vmatprep.mubr.msk.bf16.mxu1 %vm2238_vm1, %v6705_v21  ;;  %v5598_v8 = vld [vmem:[%s7821_s1 + $0x14c] ss:$20 sps:$4 sm:$0xff]  }
  0xb6   :  { %2870 = vmatprep.subr.bf16.mxu1 %v5589_v51  ;;  %v5599_v51 = vld [vmem:[%s7821_s1 + $0x3c8] ss:$20 sps:$4 sm:$0xff]  }
  0xb7   :  { %2758 = vmatpush2.bf16.msra.mxu0 %v5584_v2  ;;  %v5610_v2 = vld [vmem:[%s7821_s1 + $0x8a4] ss:$20 sps:$4 sm:$0xff]  }
  0xb8   :  { %2759 = vmatprep.subr.bf16.mxu0 %v5592_v7  ;;  %v5602_v7 = vld [vmem:[%s7821_s1 + $0x620] ss:$20 sps:$4 sm:$0xff]  }
  0xb9   :  { %2871 = vmatpush2.bf16.msra.mxu1 %v5587_v24  ;;  %v5607_v24 = vld [vmem:[%s7821_s1 + $0x5fc] ss:$20 sps:$4 sm:$0xff]  }
  0xba   :  { %2608 = vmatmul.mubr.bf16.gmra.mxu0 %v6724_v28  ;;  %2872 = vmatprep.subr.bf16.mxu1 %v5595_v55  ;;  %v5608_v55 = vld [vmem:[%s7821_s1 + $0x8a0] ss:$20 sps:$4 sm:$0xff]  }
  0xbb   :  { %2760 = vmatpush2.bf16.msra.mxu0 %v5590_v63  ;;  %2763 = vmatprep.mubr.bf16.mxu0 %v5982_v52  ;;  %v5619_v63 = vld [vmem:[%s7821_s1 + $0x87c] ss:$20 sps:$4 sm:$0xff]  }
  0xbc   :  { %2721 = vmatmul.mubr.bf16.gmra.mxu1 %v6732_v38  ;;  %2761 = vmatprep.subr.bf16.mxu0 %v5598_v8  ;;  %v5605_v8 = vld [vmem:[%s7821_s1 + $0x5f8] ss:$20 sps:$4 sm:$0xff]  }
  0xbd   :  { %2873 = vmatpush2.bf16.msra.mxu1 %v5593_v9  ;;  %2876 = vmatprep.mubr.bf16.mxu1 %v5984_v53  ;;  %v5613_v9 = vld [vmem:[%s7821_s1 + $0x5d4] ss:$20 sps:$4 sm:$0xff]  }
  0xbe   :  { %2874 = vmatprep.subr.bf16.mxu1 %v5601_v37  ;;  %v5617_v37 = vld [vmem:[%s7821_s1 + $0x878] ss:$20 sps:$4 sm:$0xff]  }
  0xbf   :  { %2762 = vmatpush2.bf16.msra.mxu0 %v5596_v29  ;;  %v5628_v29 = vld [vmem:[%s7821_s1 + $0x854] ss:$20 sps:$4 sm:$0xff]  }
  0xc0   :  { %2957 = vmatprep.subr.bf16.mxu0 %v5604_v61  ;;  %v5611_v61 = vld [vmem:[%s7821_s1 + $0x5d0] ss:$20 sps:$4 sm:$0xff]  }
  0xc1   :  { %2875 = vmatpush2.bf16.msra.mxu1 %v5599_v51  ;;  %v5616_v51 = vld [vmem:[%s7821_s1 + $0x5ac] ss:$20 sps:$4 sm:$0xff]  }
  0xc2   :  { %2764 = vmatmul.mubr.bf16.vlgmr.msra.gmra.mxu0 %v6048_v10  ;;  %3070 = vmatprep.subr.bf16.mxu1 %v5610_v2  ;;  %v5614_v2 = vld [vmem:[%s7821_s1 + $0x5a8] ss:$20 sps:$4 sm:$0xff]  }
  0xc3   :  { %2958 = vmatpush1.bf16.msra.mxu0 %v5602_v7  ;;  %2773 = vmatprep.mubr.bf16.mxu0 %v6059_v14  ;;  %v5626_v7 = vld [vmem:[%s7821_s1 + $0x850] ss:$20 sps:$4 sm:$0xff]  }
  0xc4   :  { %2877 = vmatmul.mubr.bf16.vlgmr.msra.gmra.mxu1 %v6061_v15  ;;  %2959 = vmatprep.subr.bf16.mxu0 %v5607_v24  ;;  %v5637_v24 = vld [vmem:[%s7821_s1 + $0x82c] ss:$20 sps:$4 sm:$0xff]  }
  0xc5   :  { %3071 = vmatpush1.bf16.msra.mxu1 %v5608_v55  ;;  %2886 = vmatprep.mubr.bf16.mxu1 %v6069_v18  ;;  %v5622_v55 = vld [vmem:[%s7821_s1 + $0x584] ss:$20 sps:$4 sm:$0xff]  }
  0xc6   :  { %3072 = vmatprep.subr.bf16.mxu1 %v5619_v63  ;;  %v5635_v63 = vld [vmem:[%s7821_s1 + $0x828] ss:$20 sps:$4 sm:$0xff]  }
  0xc7   :  { %2960 = vmatpush1.bf16.msra.mxu0 %v5605_v8  ;;  %v5620_v8 = vld [vmem:[%s7821_s1 + $0x580] ss:$20 sps:$4 sm:$0xff]  }
  0xc8   :  { %2961 = vmatprep.subr.bf16.mxu0 %v5613_v9  ;;  %v5643_v9 = vld [vmem:[%s7821_s1 + $0x804] ss:$20 sps:$4 sm:$0xff]  }
  0xc9   :  { %3073 = vmatpush1.bf16.msra.mxu1 %v5617_v37  ;;  %v5625_v37 = vld [vmem:[%s7821_s1 + $0x55c] ss:$20 sps:$4 sm:$0xff]  }
  0xca   :  { %2774 = vmatmul.mubr.bf16.gmra.mxu0 %v6096_v26  ;;  %3074 = vmatprep.subr.bf16.mxu1 %v5628_v29  ;;  %v5641_v29 = vld [vmem:[%s7821_s1 + $0x800] ss:$20 sps:$4 sm:$0xff]  }
  0xcb   :  { %2962 = vmatpush1.bf16.msra.mxu0 %v5611_v61  ;;  %2783 = vmatprep.mubr.bf16.mxu0 %v6107_v30  ;;  %v5652_v61 = vld [vmem:[%s7821_s1 + $0x7dc] ss:$20 sps:$4 sm:$0xff]  }
  0xcc   :  { %2887 = vmatmul.mubr.bf16.gmra.mxu1 %v6109_v31  ;;  %2963 = vmatprep.subr.bf16.mxu0 %v5616_v51  ;;  %v5623_v51 = vld [vmem:[%s7821_s1 + $0x558] ss:$20 sps:$4 sm:$0xff]  }
  0xcd   :  { %2896 = vmatprep.mubr.bf16.mxu1 %v6114_v33  ;;  %3075 = vmatpush1.bf16.msra.mxu1 %v5626_v7  ;;  %v5650_v7 = vld [vmem:[%s7821_s1 + $0x7d8] ss:$20 sps:$4 sm:$0xff]  }
  0xce   :  { %3076 = vmatprep.subr.bf16.mxu1 %v5637_v24  ;;  %v5661_v24 = vld [vmem:[%s7821_s1 + $0x7b4] ss:$20 sps:$4 sm:$0xff]  }
  0xcf   :  { %2964 = vmatpush1.bf16.msra.mxu0 %v5614_v2  ;;  %v5631_v2 = vld [vmem:[%s7821_s1 + $0x534] ss:$20 sps:$4 sm:$0xff]  }
  0xd0   :  { %2965 = vmatprep.subr.bf16.mxu0 %v5622_v55  ;;  %v5629_v55 = vld [vmem:[%s7821_s1 + $0x530] ss:$20 sps:$4 sm:$0xff]  }
  0xd1   :  { %3077 = vmatpush1.bf16.msra.mxu1 %v5635_v63  ;;  %v5634_v63 = vld [vmem:[%s7821_s1 + $0x50c] ss:$20 sps:$4 sm:$0xff]  }
  0xd2   :  { %2784 = vmatmul.mubr.bf16.gmra.mxu0 %v6144_v42  ;;  %3078 = vmatprep.subr.bf16.mxu1 %v5643_v9  ;;  %v5670_v9 = vld [vmem:[%s7821_s1 + $0x78c] ss:$20 sps:$4 sm:$0xff]  }
  0xd3   :  { %2966 = vmatpush1.bf16.msra.mxu0 %v5620_v8  ;;  %2793 = vmatprep.mubr.bf16.mxu0 %v6155_v46  ;;  %v5659_v8 = vld [vmem:[%s7821_s1 + $0x7b0] ss:$20 sps:$4 sm:$0xff]  }
  0xd4   :  { %2897 = vmatmul.mubr.bf16.gmra.mxu1 %v6157_v47  ;;  %2967 = vmatprep.subr.bf16.mxu0 %v5625_v37  ;;  %v5632_v37 = vld [vmem:[%s7821_s1 + $0x508] ss:$20 sps:$4 sm:$0xff]  }
  0xd5   :  { %2906 = vmatprep.mubr.bf16.mxu1 %v6162_v49  ;;  %3079 = vmatpush1.bf16.msra.mxu1 %v5641_v29  ;;  %v428_v29 = vld [vmem:[%s7821_s1 + $0x8c8] sm:$0x33] }
  0xd6   :  { %3080 = vmatprep.subr.bf16.mxu1 %v5652_v61  ;;  %v5640_v61 = vld [vmem:[%s7821_s1 + $0x764] ss:$20 sps:$4 sm:$0xff]  }
  0xd7   :  { %2968 = vmatpush1.bf16.msra.mxu0 %v5623_v51  ;;  %v5668_v51 = vld [vmem:[%s7821_s1 + $0x788] ss:$20 sps:$4 sm:$0xff]  }
  0xd8   :  { %2969 = vmatprep.subr.bf16.mxu0 %v5631_v2  ;;  %v4976_v2 = vcombine.high %v428_v29, %v428_v29 }
  0xd9   :  { %3081 = vmatpush1.bf16.msra.mxu1 %v5650_v7  ;;  %v4975_v7 = vcombine.low %v428_v29, %v428_v29  ;;  %v5647_v29 = vld [vmem:[%s7821_s1 + $0x710] ss:$20 sps:$4 sm:$0xff]  }
  0xda   :  { %2794 = vmatmul.mubr.bf16.gmra.mxu0 %v6189_v59  ;;  %3082 = vmatprep.subr.bf16.mxu1 %v5661_v24  ;;  %v5638_v24 = vld [vmem:[%s7821_s1 + $0x760] ss:$20 sps:$4 sm:$0xff]  }
  0xdb   :  { %2970 = vmatpush1.bf16.msra.mxu0 %v5629_v55  ;;  %2803 = vmatprep.mubr.bf16.mxu0 %v6203_v0  ;;  %v5646_v55 = vld [vmem:[%s7821_s1 + $0x73c] ss:$20 sps:$4 sm:$0xff]  }
  0xdc   :  { %2907 = vmatmul.mubr.bf16.gmra.mxu1 %v6205_v1  ;;  %2971 = vmatprep.subr.bf16.mxu0 %v5634_v63  ;;  %v2271_v63 = vsel %vm2263_vm0, %v4975_v7, 0  ;;  %v5656_v7 = vld [vmem:[%s7821_s1 + $0x6c0] ss:$20 sps:$4 sm:$0xff]  }
  0xdd   :  { %2916 = vmatprep.mubr.bf16.mxu1 %v6210_v3  ;;  %3083 = vmatpush1.bf16.msra.mxu1 %v5659_v8  ;;  %v5678_v8 = vld [vmem:[%s7821_s1 + $0x4e8] ss:$20 sps:$4 sm:$0xff]  }
  0xde   :  { %3084 = vmatprep.subr.bf16.mxu1 %v5670_v9  ;;  %v5644_v9 = vld [vmem:[%s7821_s1 + $0x738] ss:$20 sps:$4 sm:$0xff]  }
  0xdf   :  { %2972 = vmatpush1.bf16.msra.mxu0 %v5632_v37  ;;  %v5649_v37 = vld [vmem:[%s7821_s1 + $0x714] ss:$20 sps:$4 sm:$0xff]  }
  0xe0   :  { %2973 = vmatprep.subr.bf16.mxu0 %v5640_v61  ;;  %v5655_v61 = vld [vmem:[%s7821_s1 + $0x6ec] ss:$20 sps:$4 sm:$0xff]  }
  0xe1   :  { %3085 = vmatpush1.bf16.msra.mxu1 %v5668_v51  ;;  %v5653_v51 = vld [vmem:[%s7821_s1 + $0x6e8] ss:$20 sps:$4 sm:$0xff]  }
  0xe2   :  { %2804 = vmatmul.mubr.bf16.gmra.mxu0 %v6240_v13  ;;  %4987 = vmatprep.subr.msk.bf16.mxu1 %vm2263_vm0, %v4976_v2  ;;  %v5658_v2 = vld [vmem:[%s7821_s1 + $0x6c4] ss:$20 sps:$4 sm:$0xff]  }
  0xe3   :  { %2974 = vmatpush2.bf16.msra.mxu0 %v5638_v24  ;;  %2813 = vmatprep.mubr.bf16.mxu0 %v6251_v22  ;;  %v5664_v24 = vld [vmem:[%s7821_s1 + $0x69c] ss:$20 sps:$4 sm:$0xff]  }
  0xe4   :  { %2917 = vmatmul.mubr.bf16.gmra.mxu1 %v6253_v23  ;;  %2975 = vmatprep.subr.bf16.mxu0 %v5646_v55  ;;  %v5662_v55 = vld [vmem:[%s7821_s1 + $0x698] ss:$20 sps:$4 sm:$0xff]  }
  0xe5   :  { %2926 = vmatprep.mubr.bf16.mxu1 %v6258_v25  ;;  %3101 = vmatpush2.bf16.msra.mxu1 %v2271_v63  ;;  %v432_v63 = vlaneseq }
  0xe6   :  { %5115 = vmatprep.subr.bf16.mxu1 %v5678_v8  ;;  %v5667_v8 = vld [vmem:[%s7821_s1 + $0x674] ss:$20 sps:$4 sm:$0xff]  }
  0xe7   :  { %2976 = vmatpush2.bf16.msra.mxu0 %v5644_v9  ;;  %v5665_v9 = vld [vmem:[%s7821_s1 + $0x670] ss:$20 sps:$4 sm:$0xff]  }
  0xe8   :  { %2977 = vmatprep.subr.bf16.mxu0 %v5649_v37  ;;  %v6927_v37 = vshrl.u32 %v432_v63, 7  ;;  %v5677_v63 = vld [vmem:[%s7821_s1 + $0x128] ss:$20 sps:$4 sm:$0xff]  }
  0xea   :  { %2814 = vmatmul.mubr.bf16.gmra.mxu0 %v6281_v36  ;;  %7924 = vst [vmem:[#allocation42_spill] sm:$0xff] %v6927_v37 }
  0xeb   :  { %2978 = vmatpush2.bf16.msra.mxu0 %v5647_v29  ;;  %2823 = vmatprep.mubr.bf16.mxu0 %v6292_v40  ;;  %v5673_v29 = vld [vmem:[%s7821_s1 + $0x64c] ss:$20 sps:$4 sm:$0xff]  }
  0xec   :  { %2927 = vmatmul.mubr.bf16.gmra.mxu1 %v6294_v41  ;;  %2979 = vmatprep.subr.bf16.mxu0 %v5655_v61  ;;  %v5671_v61 = vld [vmem:[%s7821_s1 + $0x648] ss:$20 sps:$4 sm:$0xff]  }
  0xed   :  { %2936 = vmatprep.mubr.bf16.mxu1 %v6299_v44  ;;  %v7934_v41 = vld [vmem:[#allocation35_spill] sm:$0xff] }
  0xef   :  { %2980 = vmatpush2.bf16.msra.mxu0 %v5653_v51  ;;  %v434_v51 = vsub.s32 0, %v6927_v37 }
  0xf0   :  { %2981 = vmatprep.subr.bf16.mxu0 %v5658_v2  ;;  %v430_v2 = vld [vmem:[%s7823_s2] sm:$0x1f] }
  0xf2   :  { %2824 = vmatmul.mubr.bf16.gmra.mxu0 %v6317_v54  ;;  %v7928_v54 = vld [vmem:[#allocation30_spill] sm:$0xff] }
  0xf3   :  { %2982 = vmatpush2.bf16.msra.mxu0 %v5656_v7  ;;  %2833 = vmatprep.mubr.bf16.mxu0 %v6328_v58  ;;  %v5676_v7 = vld [vmem:[%s7821_s1 + $0x268] ss:$20 sps:$4 sm:$0xff]  }
  0xf4   :  { %2937 = vmatmul.mubr.bf16.gmra.mxu1 %v6330_v60  ;;  %2983 = vmatprep.subr.bf16.mxu0 %v5664_v24  ;;  %v438_v24 = vsub.s32 1, %v6927_v37  ;;  %v7874_v37 = vmov 0  }
  0xf5   :  { %2946 = vmatprep.mubr.bf16.mxu1 %v6335_v62  ;;  %v7926_v62 = vld [vmem:[#allocation28_spill] sm:$0xff] }
  0xf7   :  { %2984 = vmatpush2.bf16.msra.mxu0 %v5662_v55  ;;  %v6948_v55 = vrot.slane %v430_v2, %v434_v51 }
  0xf8   :  { %2985 = vmatprep.subr.bf16.mxu0 %v5667_v8  ;;  %v5680_v8 = vld [vmem:[%s7821_s1 + $0x240] ss:$20 sps:$4 sm:$0xff]  }
  0xfa   :  { %2834 = vmatmul.mubr.bf16.gmra.mxu0 %v6353_v6 }
  0xfb   :  { %2986 = vmatpush2.bf16.msra.mxu0 %v5665_v9  ;;  %2989 = vmatprep.mubr.bf16.mxu0 %v6364_v11  ;;  %v6956_v9 = vrot.slane %v430_v2, %v438_v24  ;;  %v5681_v2 = vld [vmem:[%s7821_s1 + $0x100] ss:$20 sps:$4 sm:$0xff]  }
  0xfc   :  { %2947 = vmatmul.mubr.bf16.gmra.mxu1 %v6366_v12  ;;  %2987 = vmatprep.subr.bf16.mxu0 %v5673_v29  ;;  %v5679_v29 = vld [vmem:[%s7821_s1 + $0x3a8] ss:$20 sps:$4 sm:$0xff]  }
  0xfd   :  { %4988 = vmatprep.mubr.msk.bf16.mxu1 %vm2238_vm1, %v6371_v17 }
  0xff   :  { %2988 = vmatpush2.bf16.msra.mxu0 %v5671_v61  ;;  %v5682_v61 = vld [vmem:[%s7821_s1 + $0x4c0] ss:$20 sps:$4 sm:$0xff]  }
 0x100   :  { %5051 = vmatprep.subr.bf16.mxu0 %v5676_v7 }
 0x102   :  { %v2313_v17 = vpop.f32.mrf.mxu0  ;;  %2990 = vmatmul.mubr.bf16.vlgmr.msra.gmra.mxu0 %v6390_v27  ;;  %v5684_v27 = vld [vmem:[%s7821_s1 + $0x218] ss:$20 sps:$4 sm:$0xff]  }
 0x103   :  { %v2314_v51 = vadd.f32 %v2313_v17, %v6948_v55  ;;  %5052 = vmatpush3.bf16.msra.mxu0 %v5677_v63  ;;  %2999 = vmatprep.mubr.bf16.mxu0 %v6401_v34  ;;  %v5683_v63 = vld [vmem:[%s7821_s1 + $0x380] ss:$20 sps:$4 sm:$0xff]  }
 0x104   :  { %v2426_v7 = vpop.f32.mrf.mxu1  ;;  %3103 = vmatmul.mubr.bf16.vlgmr.msra.gmra.mxu1 %v6403_v35  ;;  %v2315_v24 = vpop.f32.mrf.mxu0  ;;  %5053 = vmatprep.subr.bf16.mxu0 %v5680_v8  ;;  %v5686_v8 = vld [vmem:[%s7821_s1 + $0x498] ss:$20 sps:$4 sm:$0xff]  }
 0x105   :  { %v6974_v12 = vadd.f32 %v2426_v7, %v2314_v51  ;;  %v2316_v17 = vadd.f32 %v2315_v24, %v6956_v9  ;;  %5116 = vmatpush3.bf16.msra.mxu1 %v5679_v29  ;;  %4989 = vmatprep.mubr.msk.bf16.mxu1 %vm2238_vm1, %v6411_v39  ;;  %v5685_v29 = vld [vmem:[%s7821_s1 + $0xd8] ss:$20 sps:$4 sm:$0xff]  }
 0x106   :  { %v2428_v34 = vpop.f32.mrf.mxu1  ;;  %v2317_v35 = vpop.f32.mrf.mxu0  ;;  %5117 = vmatprep.subr.bf16.mxu1 %v5682_v61  ;;  %v5688_v61 = vld [vmem:[%s7821_s1 + $0x1f0] ss:$20 sps:$4 sm:$0xff]  }
 0x107   :  { %v6985_v11 = vadd.f32 %v2428_v34, %v2316_v17  ;;  %v2318_v51 = vadd.f32 %v2317_v35, %v6948_v55  ;;  %5054 = vmatpush3.bf16.msra.mxu0 %v5681_v2  ;;  %v5687_v34 = vld [vmem:[%s7821_s1 + $0x358] ss:$20 sps:$4 sm:$0xff]  }
 0x108   :  { %v2430_v7 = vpop.f32.mrf.mxu1  ;;  %v2319_v24 = vpop.f32.mrf.mxu0  ;;  %5055 = vmatprep.subr.bf16.mxu0 %v5684_v27  ;;  %v5690_v27 = vld [vmem:[%s7821_s1 + $0x470] ss:$20 sps:$4 sm:$0xff]  }
 0x109   :  { %v6994_v39 = vadd.f32 %v2430_v7, %v2318_v51  ;;  %v2320_v6 = vadd.f32 %v2319_v24, %v6956_v9  ;;  %5118 = vmatpush3.bf16.msra.mxu1 %v5683_v63  ;;  %v5689_v63 = vld [vmem:[%s7821_s1 + $0xb0] ss:$20 sps:$4 sm:$0xff]  }
 0x10a   :  { %v2432_v35 = vpop.f32.mrf.mxu1  ;;  %v2323_v2 = vpop.f32.mrf.mxu0  ;;  %3000 = vmatmul.mubr.bf16.gmra.mxu0 %v6439_v57  ;;  %5119 = vmatprep.subr.bf16.mxu1 %v5686_v8  ;;  %v5692_v8 = vld [vmem:[%s7821_s1 + $0x1c8] ss:$20 sps:$4 sm:$0xff]  }
 0x10b   :  { %v7004_v17 = vadd.f32 %v2432_v35, %v2320_v6  ;;  %v2324_v51 = vadd.f32 %v2323_v2, %v6948_v55  ;;  %3009 = vmatprep.mubr.bf16.mxu0 %v6450_v4  ;;  %5056 = vmatpush3.bf16.msra.mxu0 %v5685_v29  ;;  %v5691_v29 = vld [vmem:[%s7821_s1 + $0x330] ss:$20 sps:$4 sm:$0xff]  }
 0x10c   :  { %v2436_v7 = vpop.f32.mrf.mxu1  ;;  %3113 = vmatmul.mubr.bf16.gmra.mxu1 %v6452_v5  ;;  %v2325_v24 = vpop.f32.mrf.mxu0  ;;  %5057 = vmatprep.subr.bf16.mxu0 %v5688_v61  ;;  %v5694_v61 = vld [vmem:[%s7821_s1 + $0x448] ss:$20 sps:$4 sm:$0xff]  }
 0x10d   :  { %v7015_v6 = vadd.f32 %v2436_v7, %v2324_v51  ;;  %v2326_v35 = vadd.f32 %v2325_v24, %v6956_v9  ;;  %4990 = vmatprep.mubr.msk.bf16.mxu1 %vm2238_vm1, %v6463_v16  ;;  %5120 = vmatpush3.bf16.msra.mxu1 %v5687_v34  ;;  %v5693_v34 = vld [vmem:[%s7821_s1 + $0x88] ss:$20 sps:$4 sm:$0xff]  }
 0x10e   :  { %v2438_v2 = vpop.f32.mrf.mxu1  ;;  %v2327_v5 = vpop.f32.mrf.mxu0  ;;  %5121 = vmatprep.subr.bf16.mxu1 %v5690_v27  ;;  %v5696_v27 = vld [vmem:[%s7821_s1 + $0x1a0] ss:$20 sps:$4 sm:$0xff]  }
 0x10f   :  { %v7026_v4 = vadd.f32 %v2438_v2, %v2326_v35  ;;  %v2328_v51 = vadd.f32 %v2327_v5, %v6948_v55  ;;  %5058 = vmatpush3.bf16.msra.mxu0 %v5689_v63  ;;  %v5695_v5 = vld [vmem:[%s7821_s1 + $0x308] ss:$20 sps:$4 sm:$0xff]  }
 0x110   :  { %v2440_v7 = vpop.f32.mrf.mxu1  ;;  %v2329_v24 = vpop.f32.mrf.mxu0  ;;  %5059 = vmatprep.subr.bf16.mxu0 %v5692_v8  ;;  %v5698_v8 = vld [vmem:[%s7821_s1 + $0x420] ss:$20 sps:$4 sm:$0xff]  }
 0x111   :  { %v7035_v16 = vadd.f32 %v2440_v7, %v2328_v51  ;;  %v2330_v57 = vadd.f32 %v2329_v24, %v6956_v9  ;;  %5122 = vmatpush3.bf16.msra.mxu1 %v5691_v29  ;;  %v5697_v29 = vld [vmem:[%s7821_s1 + $0x60] ss:$20 sps:$4 sm:$0xff]  }
 0x112   :  { %v2442_v63 = vpop.f32.mrf.mxu1  ;;  %v2333_v35 = vpop.f32.mrf.mxu0  ;;  %3010 = vmatmul.mubr.bf16.gmra.mxu0 %v6488_v32  ;;  %5123 = vmatprep.subr.bf16.mxu1 %v5694_v61  ;;  %v5700_v61 = vld [vmem:[%s7821_s1 + $0x178] ss:$20 sps:$4 sm:$0xff]  }
 0x113   :  { %v7045_v2 = vadd.f32 %v2442_v63, %v2330_v57  ;;  %v2334_v51 = vadd.f32 %v2333_v35, %v6948_v55  ;;  %3019 = vmatprep.mubr.bf16.mxu0 %v6499_v45  ;;  %5060 = vmatpush3.bf16.msra.mxu0 %v5693_v34  ;;  %v5699_v34 = vld [vmem:[%s7821_s1 + $0x2e0] ss:$20 sps:$4 sm:$0xff]  }
 0x114   :  { %v2446_v7 = vpop.f32.mrf.mxu1  ;;  %3123 = vmatmul.mubr.bf16.gmra.mxu1 %v6501_v48  ;;  %v2335_v24 = vpop.f32.mrf.mxu0  ;;  %5061 = vmatprep.subr.bf16.mxu0 %v5696_v27  ;;  %v5702_v27 = vld [vmem:[%s7821_s1 + $0x3f8] ss:$20 sps:$4 sm:$0xff]  }
 0x115   :  { %v7056_v57 = vadd.f32 %v2446_v7, %v2334_v51  ;;  %v2336_v63 = vadd.f32 %v2335_v24, %v6956_v9  ;;  %4991 = vmatprep.mubr.msk.bf16.mxu1 %vm2238_vm1, %v6512_v56  ;;  %5124 = vmatpush3.bf16.msra.mxu1 %v5695_v5  ;;  %v5701_v5 = vld [vmem:[%s7821_s1 + $0x38] ss:$20 sps:$4 sm:$0xff]  }
 0x116   :  { %v2448_v35 = vpop.f32.mrf.mxu1  ;;  %v2337_v48 = vpop.f32.mrf.mxu0  ;;  %5125 = vmatprep.subr.bf16.mxu1 %v5698_v8  ;;  %v5704_v8 = vld [vmem:[%s7821_s1 + $0x150] ss:$20 sps:$4 sm:$0xff]  }
 0x117   :  { %v7067_v45 = vadd.f32 %v2448_v35, %v2336_v63  ;;  %v2338_v51 = vadd.f32 %v2337_v48, %v6948_v55  ;;  %5062 = vmatpush3.bf16.msra.mxu0 %v5697_v29  ;;  %v5703_v48 = vld [vmem:[%s7821_s1 + $0x2b8] ss:$20 sps:$4 sm:$0xff]  }
 0x118   :  { %v2450_v7 = vpop.f32.mrf.mxu1  ;;  %v2339_v24 = vpop.f32.mrf.mxu0  ;;  %5063 = vmatprep.subr.bf16.mxu0 %v5700_v61  ;;  %v5706_v61 = vld [vmem:[%s7821_s1 + $0x3d0] ss:$20 sps:$4 sm:$0xff]  }
 0x119   :  { %v7076_v56 = vadd.f32 %v2450_v7, %v2338_v51  ;;  %v2340_v32 = vadd.f32 %v2339_v24, %v6956_v9  ;;  %5126 = vmatpush3.bf16.msra.mxu1 %v5699_v34  ;;  %v7925_v7 = vld [vmem:[#allocation27_spill] sm:$0xff]  ;;  %v5705_v34 = vld [vmem:[%s7821_s1 + $0x10] ss:$20 sps:$4 sm:$0xff]  }
 0x11a   :  { %v2452_v29 = vpop.f32.mrf.mxu1  ;;  %v2343_v63 = vpop.f32.mrf.mxu0  ;;  %3020 = vmatmul.mubr.bf16.gmra.mxu0 %v6537_v19  ;;  %5127 = vmatprep.subr.bf16.mxu1 %v5702_v27  ;;  %v5708_v27 = vld [vmem:[%s7821_s1 + $0x768] ss:$20 sps:$4 sm:$0xff]  }
 0x11b   :  { %v7086_v35 = vadd.f32 %v2452_v29, %v2340_v32  ;;  %v2344_v51 = vadd.f32 %v2343_v63, %v6948_v55  ;;  %3029 = vmatprep.mubr.bf16.mxu0 %v7925_v7  ;;  %5064 = vmatpush3.bf16.msra.mxu0 %v5701_v5  ;;  %v7927_v63 = vld [vmem:[#allocation29_spill] sm:$0xff]  ;;  %v5707_v5 = vld [vmem:[%s7821_s1 + $0x290] ss:$20 sps:$4 sm:$0xff]  }
 0x11c   :  { %v2456_v24 = vpop.f32.mrf.mxu1  ;;  %3133 = vmatmul.mubr.bf16.gmra.mxu1 %v7926_v62  ;;  %v2345_v19 = vpop.f32.mrf.mxu0  ;;  %5065 = vmatprep.subr.bf16.mxu0 %v5704_v8 }
 0x11d   :  { %v7097_v32 = vadd.f32 %v2456_v24, %v2344_v51  ;;  %v2346_v29 = vadd.f32 %v2345_v19, %v6956_v9  ;;  %4992 = vmatprep.mubr.msk.bf16.mxu1 %vm2238_vm1, %v7927_v63  ;;  %5128 = vmatpush3.bf16.msra.mxu1 %v5703_v48 }
 0x11e   :  { %v2458_v7 = vpop.f32.mrf.mxu1  ;;  %v2347_v62 = vpop.f32.mrf.mxu0  ;;  %5129 = vmatprep.subr.bf16.mxu1 %v5706_v61 }
 0x11f   :  { %v7105_v8 = vadd.f32 %v2458_v7, %v2346_v29  ;;  %v2348_v60 = vadd.f32 %v2347_v62, %v6948_v55  ;;  %5066 = vmatpush3.bf16.msra.mxu0 %v5705_v34  ;;  %v7929_v7 = vld [vmem:[#allocation31_spill] sm:$0xff] }
 0x120   :  { %v2460_v51 = vpop.f32.mrf.mxu1  ;;  %v2349_v24 = vpop.f32.mrf.mxu0  ;;  %5179 = vmatprep.subr.bf16.mxu0 %v5708_v27  ;;  %v7930_v27 = vld [vmem:[#allocation32_spill] sm:$0xff] }
 0x121   :  { %v7108_v19 = vadd.f32 %v2460_v51, %v2348_v60  ;;  %v2350_v63 = vadd.f32 %v2349_v24, %v6956_v9  ;;  %5130 = vmatpush3.bf16.msra.mxu1 %v5707_v5  ;;  %v7931_v51 = vld [vmem:[#allocation33_spill] sm:$0xff] }
 0x122   :  { %v2462_v48 = vpop.f32.mrf.mxu1  ;;  %v2353_v58 = vpop.f32.mrf.mxu0  ;;  %3030 = vmatmul.mubr.bf16.gmra.mxu0 %v7928_v54  ;;  %3474 = vmatprep.subr.bf16.mxu1 %v7874_v37 }
 0x123   :  { %v7113_v61 = vadd.f32 %v2462_v48, %v2350_v63  ;;  %v2354_v62 = vadd.f32 %v2353_v58, %v6948_v55  ;;  %3039 = vmatprep.mubr.bf16.mxu0 %v7929_v7 }
 0x124   :  { %v2466_v34 = vpop.f32.mrf.mxu1  ;;  %3143 = vmatmul.mubr.bf16.gmra.mxu1 %v7930_v27  ;;  %v2355_v60 = vpop.f32.mrf.mxu0 }
 0x125   :  { %v7118_v29 = vadd.f32 %v2466_v34, %v2354_v62  ;;  %v2356_v5 = vadd.f32 %v2355_v60, %v6956_v9  ;;  %4993 = vmatprep.mubr.msk.bf16.mxu1 %vm2238_vm1, %v7931_v51  ;;  %v7932_v34 = vld [vmem:[#allocation34_spill] sm:$0xff] }
 0x126   :  { %v2468_v24 = vpop.f32.mrf.mxu1  ;;  %v2357_v54 = vpop.f32.mrf.mxu0 }
 0x127   :  { %v7123_v37 = vadd.f32 %v2468_v24, %v2356_v5  ;;  %v2358_v63 = vadd.f32 %v2357_v54, %v6948_v55  ;;  %v7935_v24 = vld [vmem:[#allocation36_spill] sm:$0xff] }
 0x128   :  { %v2470_v58 = vpop.f32.mrf.mxu1  ;;  %v2359_v48 = vpop.f32.mrf.mxu0 }
 0x129   :  { %v7126_v7 = vadd.f32 %v2470_v58, %v2358_v63  ;;  %v2360_v27 = vadd.f32 %v2359_v48, %v6956_v9  ;;  %v7936_v58 = vld [vmem:[#allocation37_spill] sm:$0xff] }
 0x12a   :  { %v2472_v44 = vpop.f32.mrf.mxu1  ;;  %v2363_v62 = vpop.f32.mrf.mxu0  ;;  %3040 = vmatmul.mubr.bf16.gmra.mxu0 %v7932_v34 }
 0x12b   :  { %v7130_v60 = vadd.f32 %v2472_v44, %v2360_v27  ;;  %v2364_v51 = vadd.f32 %v2363_v62, %v6948_v55  ;;  %3049 = vmatprep.mubr.bf16.mxu0 %v7934_v41 }
 0x12c   :  { %v2476_v5 = vpop.f32.mrf.mxu1  ;;  %3153 = vmatmul.mubr.bf16.gmra.mxu1 %v7935_v24  ;;  %v2365_v54 = vpop.f32.mrf.mxu0 }
 0x12d   :  { %7933 = vst [vmem:[#allocation43_spill] sm:$0xff] %v7130_v60  ;;  %v7135_v40 = vadd.f32 %v2476_v5, %v2364_v51  ;;  %v2366_v63 = vadd.f32 %v2365_v54, %v6956_v9  ;;  %4994 = vmatprep.mubr.msk.bf16.mxu1 %vm2238_vm1, %v7936_v58 }
 0x12e   :  { %v2478_v48 = vpop.f32.mrf.mxu1  ;;  %v2367_v36 = vpop.f32.mrf.mxu0 }
 0x12f   :  { %v7140_v34 = vadd.f32 %v2478_v48, %v2366_v63  ;;  %v2368_v44 = vadd.f32 %v2367_v36, %v6948_v55 }
 0x130   :  { %v2480_v27 = vpop.f32.mrf.mxu1  ;;  %v2369_v62 = vpop.f32.mrf.mxu0 }
 0x131   :  { %v7143_v41 = vadd.f32 %v2480_v27, %v2368_v44  ;;  %v2370_v24 = vadd.f32 %v2369_v62, %v6956_v9 }
 0x132   :  { %v2482_v60 = vpop.f32.mrf.mxu1  ;;  %v2373_v51 = vpop.f32.mrf.mxu0  ;;  %3050 = vmatmul.mubr.bf16.gmra.mxu0 %v6684_v43 }
 0x133   :  { %v7147_v5 = vadd.f32 %v2482_v60, %v2370_v24  ;;  %v2374_v54 = vadd.f32 %v2373_v51, %v6948_v55  ;;  %3059 = vmatprep.mubr.bf16.mxu0 %v6695_v20 }
 0x134   :  { %v2486_v63 = vpop.f32.mrf.mxu1  ;;  %3163 = vmatmul.mubr.bf16.gmra.mxu1 %v6697_v50  ;;  %v2375_v36 = vpop.f32.mrf.mxu0 }
 0x135   :  { %v7152_v48 = vadd.f32 %v2486_v63, %v2374_v54  ;;  %v2376_v44 = vadd.f32 %v2375_v36, %v6956_v9  ;;  %4995 = vmatprep.mubr.msk.bf16.mxu1 %vm2238_vm1, %v6705_v21 }
 0x136   :  { %v2488_v27 = vpop.f32.mrf.mxu1  ;;  %v2377_v62 = vpop.f32.mrf.mxu0 }
 0x137   :  { %v7157_v43 = vadd.f32 %v2488_v27, %v2376_v44  ;;  %v2378_v60 = vadd.f32 %v2377_v62, %v6948_v55 }
 0x138   :  { %v2490_v24 = vpop.f32.mrf.mxu1  ;;  %v2379_v51 = vpop.f32.mrf.mxu0 }
 0x139   :  { %v7160_v20 = vadd.f32 %v2490_v24, %v2378_v60  ;;  %v2380_v50 = vadd.f32 %v2379_v51, %v6956_v9 }
 0x13a   :  { %v2492_v58 = vpop.f32.mrf.mxu1  ;;  %v2383_v54 = vpop.f32.mrf.mxu0  ;;  %3060 = vmatmul.mubr.bf16.gmra.mxu0 %v6724_v28 }
 0x13b   :  { %v7164_v63 = vadd.f32 %v2492_v58, %v2380_v50  ;;  %v2384_v36 = vadd.f32 %v2383_v54, %v6948_v55  ;;  %3215 = vmatprep.mubr.bf16.mxu0 %v5982_v52  ;;  %v5709_v52 = vld [vmem:[%s7821_s1 + $0x628] ss:$20 sps:$4 sm:$0xff]  }
 0x13c   :  { %v2496_v44 = vpop.f32.mrf.mxu1  ;;  %3173 = vmatmul.mubr.bf16.gmra.mxu1 %v6732_v38  ;;  %v2385_v27 = vpop.f32.mrf.mxu0 }
 0x13d   :  { %v7169_v62 = vadd.f32 %v2496_v44, %v2384_v36  ;;  %v2386_v60 = vadd.f32 %v2385_v27, %v6956_v9  ;;  %3312 = vmatprep.mubr.bf16.mxu1 %v5984_v53  ;;  %v5711_v36 = vld [vmem:[%s7821_s1 + $0x740] ss:$20 sps:$4 sm:$0xff]   ;;  %v5710_v27 = vld [vmem:[%s7821_s1 + $0x8a8] ss:$20 sps:$4 sm:$0xff]  }
 0x13e   :  { %v2498_v24 = vpop.f32.mrf.mxu1  ;;  %v2387_v51 = vpop.f32.mrf.mxu0 }
 0x13f   :  { %v7173_v21 = vadd.f32 %v2498_v24, %v2386_v60  ;;  %v2388_v50 = vadd.f32 %v2387_v51, %v6948_v55 }
 0x140   :  { %v2500_v58 = vpop.f32.mrf.mxu1  ;;  %v2389_v54 = vpop.f32.mrf.mxu0 }
 0x141   :  { %v7182_v44 = vadd.f32 %v2500_v58, %v2388_v50  ;;  %v2390_v53 = vadd.f32 %v2389_v54, %v6956_v9  ;;  %v5712_v50 = vld [vmem:[%s7821_s1 + $0x600] ss:$20 sps:$4 sm:$0xff]  }
 0x142   :  { %v2502_v60 = vpop.f32.mrf.mxu1  ;;  %v2539_v55 = vpop.f32.mrf.mxu0  ;;  %3216 = vmatmul.mubr.bf16.vlgmr.msra.gmra.mxu0 %v6048_v10  ;;  %v5714_v10 = vld [vmem:[%s7821_s1 + $0x718] ss:$20 sps:$4 sm:$0xff]  }
 0x143   :  { %v7189_v24 = vadd.f32 %v2502_v60, %v2390_v53  ;;  %v2540_v51 = vadd.f32 %v2539_v55, %v6974_v12  ;;  %5180 = vmatpush3.bf16.msra.mxu0 %v5709_v52  ;;  %3223 = vmatprep.mubr.bf16.mxu0 %v6059_v14  ;;  %v5713_v14 = vld [vmem:[%s7821_s1 + $0x880] ss:$20 sps:$4 sm:$0xff]   ;;  %v7937_v60 = vmov 0   ;;  %v5715_v55 = vld [vmem:[%s7821_s1 + $0x5d8] ss:$20 sps:$4 sm:$0xff]  }
 0x144   :  { %v2652_v9 = vpop.f32.mrf.mxu1  ;;  %3313 = vmatmul.mubr.bf16.vlgmr.msra.gmra.mxu1 %v6061_v15  ;;  %v2541_v58 = vpop.f32.mrf.mxu0  ;;  %5181 = vmatprep.subr.bf16.mxu0 %v5711_v36 }
 0x145   :  { %v2653_v54 = vadd.f32 %v2652_v9, %v2540_v51  ;;  %v2542_v53 = vadd.f32 %v2541_v58, %v6985_v11  ;;  %3475 = vmatpush1.bf16.msra.mxu1 %v5710_v27  ;;  %3320 = vmatprep.mubr.bf16.mxu1 %v6069_v18  ;;  %v5717_v18 = vld [vmem:[%s7821_s1 + $0x6f0] ss:$20 sps:$4 sm:$0xff]  }
 0x146   :  { %v2654_v12 = vpop.f32.mrf.mxu1  ;;  %v2543_v52 = vpop.f32.mrf.mxu0  ;;  %3476 = vmatprep.subr.bf16.mxu1 %v7937_v60 }
 0x147   :  { %v2655_v15 = vadd.f32 %v2654_v12, %v2542_v53  ;;  %v2544_v36 = vadd.f32 %v2543_v52, %v6994_v39  ;;  %5182 = vmatpush3.bf16.msra.mxu0 %v5712_v50  ;;  %v5716_v39 = vld [vmem:[%s7821_s1 + $0x858] ss:$20 sps:$4 sm:$0xff]  }
 0x148   :  { %v2656_v11 = vpop.f32.mrf.mxu1  ;;  %v2545_v27 = vpop.f32.mrf.mxu0  ;;  %5183 = vmatprep.subr.bf16.mxu0 %v5714_v10 }
 0x149   :  { %v2657_v51 = vadd.f32 %v2656_v11, %v2544_v36  ;;  %v2546_v9 = vadd.f32 %v2545_v27, %v7004_v17  ;;  %3477 = vmatpush1.bf16.msra.mxu1 %v5713_v14  ;;  %v5718_v17 = vld [vmem:[%s7821_s1 + $0x5b0] ss:$20 sps:$4 sm:$0xff]  }
 0x14a   :  { %v2658_v50 = vpop.f32.mrf.mxu1  ;;  %v2549_v58 = vpop.f32.mrf.mxu0  ;;  %3224 = vmatmul.mubr.bf16.gmra.mxu0 %v6096_v26  ;;  %3478 = vmatprep.subr.bf16.mxu1 %v7937_v60  ;;  %v5720_v26 = vld [vmem:[%s7821_s1 + $0x6c8] ss:$20 sps:$4 sm:$0xff]  }
 0x14b   :  { %v3571_v53 = vmax.f32 %v2653_v54, %v2657_v51  ;;  %v2659_v10 = vadd.f32 %v2658_v50, %v2546_v9  ;;  %v2550_v12 = vadd.f32 %v2549_v58, %v7015_v6  ;;  %3231 = vmatprep.mubr.bf16.mxu0 %v6107_v30  ;;  %5184 = vmatpush3.bf16.msra.mxu0 %v5715_v55  ;;  %v5719_v30 = vld [vmem:[%s7821_s1 + $0x830] ss:$20 sps:$4 sm:$0xff]  }
 0x14c   :  { %v2662_v14 = vpop.f32.mrf.mxu1  ;;  %3321 = vmatmul.mubr.bf16.gmra.mxu1 %v6109_v31  ;;  %v2551_v52 = vpop.f32.mrf.mxu0  ;;  %5185 = vmatprep.subr.bf16.mxu0 %v5717_v18 }
 0x14d   :  { %v3572_v54 = vrot.slane %v3571_v53, 4  ;;  %v3578_v36 = vmax.f32 %v2655_v15, %v2659_v10  ;;  %v2663_v11 = vadd.f32 %v2662_v14, %v2550_v12  ;;  %v2552_v6 = vadd.f32 %v2551_v52, %v7026_v4  ;;  %3328 = vmatprep.mubr.bf16.mxu1 %v6114_v33  ;;  %3479 = vmatpush1.bf16.msra.mxu1 %v5716_v39  ;;  %v5721_v4 = vld [vmem:[%s7821_s1 + $0x588] ss:$20 sps:$4 sm:$0xff]   ;;  %v5723_v39 = vld [vmem:[%s7821_s1 + $0x6a0] ss:$20 sps:$4 sm:$0xff]  }
 0x14e   :  { %v2664_v55 = vpop.f32.mrf.mxu1  ;;  %v2553_v31 = vpop.f32.mrf.mxu0  ;;  %3480 = vmatprep.subr.bf16.mxu1 %v7937_v60 }
 0x14f   :  { %v3573_v27 = vmax.f32 %v3571_v53, %v3572_v54  ;;  %v3579_v18 = vrot.slane %v3578_v36, 4  ;;  %v2665_v51 = vadd.f32 %v2664_v55, %v2552_v6  ;;  %v2554_v9 = vadd.f32 %v2553_v31, %v7035_v16  ;;  %5186 = vmatpush3.bf16.msra.mxu0 %v5718_v17  ;;  %v5722_v16 = vld [vmem:[%s7821_s1 + $0x808] ss:$20 sps:$4 sm:$0xff]  }
 0x150   :  { %v2666_v33 = vpop.f32.mrf.mxu1  ;;  %v2555_v15 = vpop.f32.mrf.mxu0  ;;  %5187 = vmatprep.subr.bf16.mxu0 %v5720_v26 }
 0x151   :  { %v3574_v50 = vrot.slane %v3573_v27, 2  ;;  %v3580_v58 = vmax.f32 %v3578_v36, %v3579_v18  ;;  %v2667_v10 = vadd.f32 %v2666_v33, %v2554_v9  ;;  %v2556_v53 = vadd.f32 %v2555_v15, %v7045_v2  ;;  %3481 = vmatpush1.bf16.msra.mxu1 %v5719_v30  ;;  %v5724_v2 = vld [vmem:[%s7821_s1 + $0x560] ss:$20 sps:$4 sm:$0xff]  }
 0x152   :  { %v2668_v12 = vpop.f32.mrf.mxu1  ;;  %v2559_v17 = vpop.f32.mrf.mxu0  ;;  %3232 = vmatmul.mubr.bf16.gmra.mxu0 %v6144_v42  ;;  %3482 = vmatprep.subr.bf16.mxu1 %v7937_v60  ;;  %v5726_v42 = vld [vmem:[%s7821_s1 + $0x678] ss:$20 sps:$4 sm:$0xff]  }
 0x153   :  { %v3575_v14 = vmax.f32 %v3573_v27, %v3574_v50  ;;  %v3581_v52 = vrot.slane %v3580_v58, 2  ;;  %v3609_v26 = vmax.f32 %v2663_v11, %v2667_v10  ;;  %v2669_v54 = vadd.f32 %v2668_v12, %v2556_v53  ;;  %3239 = vmatprep.mubr.bf16.mxu0 %v6155_v46  ;;  %5188 = vmatpush3.bf16.msra.mxu0 %v5721_v4 }
 0x154   :  { %v2560_v36 = vadd.f32 %v2559_v17, %v7056_v57  ;;  %v2672_v6 = vpop.f32.mrf.mxu1  ;;  %3329 = vmatmul.mubr.bf16.gmra.mxu1 %v6157_v47  ;;  %v2561_v30 = vpop.f32.mrf.mxu0  ;;  %5189 = vmatprep.subr.bf16.mxu0 %v5723_v39  ;;  %v5725_v57 = vld [vmem:[%s7821_s1 + $0x7e0] ss:$20 sps:$4 sm:$0xff]  }
 0x155   :  { %v3576_v11 = vrot.slane %v3575_v14, 1  ;;  %v3582_v55 = vmax.f32 %v3580_v58, %v3581_v52  ;;  %v3610_v31 = vrot.slane %v3609_v26, 4  ;;  %v3616_v46 = vmax.f32 %v2665_v51, %v2669_v54  ;;  %3336 = vmatprep.mubr.bf16.mxu1 %v6162_v49  ;;  %3483 = vmatpush1.bf16.msra.mxu1 %v5722_v16  ;;  %v5727_v49 = vld [vmem:[%s7821_s1 + $0x538] ss:$20 sps:$4 sm:$0xff]  }
 0x156   :  { %v2673_v27 = vadd.f32 %v2672_v6, %v2560_v36  ;;  %v2562_v47 = vadd.f32 %v2561_v30, %v7067_v45  ;;  %v2674_v18 = vpop.f32.mrf.mxu1  ;;  %v2563_v9 = vpop.f32.mrf.mxu0  ;;  %3484 = vmatprep.subr.bf16.mxu1 %v7937_v60  ;;  %v5729_v45 = vld [vmem:[%s7821_s1 + $0x650] ss:$20 sps:$4 sm:$0xff]  }
 0x157   :  { %v3577_v4 = vmax.f32 %v3575_v14, %v3576_v11  ;;  %v3583_v33 = vrot.slane %v3582_v55, 1  ;;  %v3611_v15 = vmax.f32 %v3609_v26, %v3610_v31  ;;  %v3617_v39 = vrot.slane %v3616_v46, 4  ;;  %5190 = vmatpush3.bf16.msra.mxu0 %v5724_v2  ;;  %v5728_v14 = vld [vmem:[%s7821_s1 + $0x7b8] ss:$20 sps:$4 sm:$0xff]   ;;  %v5730_v6 = vld [vmem:[%s7821_s1 + $0x510] ss:$20 sps:$4 sm:$0xff]  }
 0x158   :  { %v2675_v51 = vadd.f32 %v2674_v18, %v2562_v47  ;;  %v2564_v50 = vadd.f32 %v2563_v9, %v7076_v56  ;;  %v2676_v58 = vpop.f32.mrf.mxu1  ;;  %v2565_v10 = vpop.f32.mrf.mxu0  ;;  %5191 = vmatprep.subr.bf16.mxu0 %v5726_v42  ;;  %v5732_v31 = vld [vmem:[%s7821_s1 + $0x8d0] ss:$0 sps:$4 sm:$0x33]  }
 0x159   :  { %v3868_v53 = vmax.f32 %v3577_v4, 0.0  ;;  %v3584_v16 = vmax.f32 %v3582_v55, %v3583_v33  ;;  %v3612_v12 = vrot.slane %v3611_v15, 2  ;;  %v3618_v17 = vmax.f32 %v3616_v46, %v3617_v39  ;;  %3485 = vmatpush1.bf16.msra.mxu1 %v5725_v57 }
 0x15a   :  { %v2677_v52 = vadd.f32 %v2676_v58, %v2564_v50  ;;  %v2566_v26 = vadd.f32 %v2565_v10, %v7086_v35  ;;  %v2678_v56 = vpop.f32.mrf.mxu1  ;;  %v2569_v54 = vpop.f32.mrf.mxu0  ;;  %3240 = vmatmul.mubr.bf16.gmra.mxu0 %v6189_v59  ;;  %3486 = vmatprep.subr.bf16.mxu1 %v7937_v60 }
 0x15b   :  { %v3613_v2 = vmax.f32 %v3611_v15, %v3612_v12  ;;  %v3619_v36 = vrot.slane %v3618_v17, 2  ;;  %3247 = vmatprep.mubr.bf16.mxu0 %v6203_v0  ;;  %5192 = vmatpush3.bf16.msra.mxu0 %v5727_v49  ;;  %v3869_v30 = vmax.f32 %v3584_v16, 0.0  ;;  %v2570_v35 = vadd.f32 %v2569_v54, %v7097_v32  ;;  %v5733_v0 = vld [vmem:[%s7824_s3 + $0x78] sm:$0xff]  }
 0x15c   :  { %v3646_v42 = vmax.f32 %v2673_v27, %v2677_v52  ;;  %v2679_v11 = vadd.f32 %v2678_v56, %v2566_v26  ;;  %v2682_v55 = vpop.f32.mrf.mxu1  ;;  %3337 = vmatmul.mubr.bf16.gmra.mxu1 %v6205_v1  ;;  %v2571_v59 = vpop.f32.mrf.mxu0  ;;  %5193 = vmatprep.subr.bf16.mxu0 %v5729_v45  ;;  %v7287_v46 = vpack.c.bf16 %v3868_v53, %v3868_v53  ;;  %v5731_v1 = vld [vmem:[%s7821_s1 + $0x790] ss:$20 sps:$4 sm:$0xff]  }
 0x15d   :  { %v3614_v57 = vrot.slane %v3613_v2, 1  ;;  %v3620_v27 = vmax.f32 %v3618_v17, %v3619_v36  ;;  %3344 = vmatprep.mubr.bf16.mxu1 %v6210_v3  ;;  %3487 = vmatpush1.bf16.msra.mxu1 %v5728_v14  ;;  %v2683_v18 = vadd.f32 %v2682_v55, %v2570_v35  ;;  %v2572_v9 = vadd.f32 %v2571_v59, %v7105_v8 }
 0x15e   :  { %v3647_v32 = vrot.slane %v3646_v42, 4  ;;  %v3653_v47 = vmax.f32 %v2675_v51, %v2679_v11  ;;  %v2684_v4 = vpop.f32.mrf.mxu1  ;;  %v2573_v33 = vpop.f32.mrf.mxu0  ;;  %3488 = vmatprep.subr.bf16.mxu1 %v7937_v60  ;;  %v3909_v3 = vpack.c.bf16 %v3869_v30, %v3869_v30  ;;  %v2277_v51 = vsel %vm2263_vm0, %v5732_v31, 0 }
 0x15f   :  { %v3615_v15 = vmax.f32 %v3613_v2, %v3614_v57  ;;  %v3621_v39 = vrot.slane %v3620_v27, 1  ;;  %v2574_v49 = vadd.f32 %v2573_v33, %v7108_v19  ;;  %5194 = vmatpush3.bf16.msra.mxu0 %v5730_v6  ;;  %v4067_v17 = vunpack.c.l.b16 %v7287_v46 }
 0x160   :  { %v3648_v50 = vmax.f32 %v3646_v42, %v3647_v32  ;;  %v3654_v58 = vrot.slane %v3653_v47, 4  ;;  %v2686_v10 = vpop.f32.mrf.mxu1  ;;  %v2575_v45 = vpop.f32.mrf.mxu0  ;;  %5243 = vmatprep.subr.bf16.mxu0 %v5733_v0  ;;  %v2685_v19 = vadd.f32 %v2684_v4, %v2572_v9  ;;  %v4068_v30 = vunpack.c.l.b16 %v3909_v3  ;;  %v7938_v3 = vld [vmem:[#allocation43_spill] sm:$0xff] }
 0x161   :  { %v3873_v53 = vmax.f32 %v3615_v15, 0.0  ;;  %v3622_v8 = vmax.f32 %v3620_v27, %v3621_v39  ;;  %v2687_v16 = vadd.f32 %v2686_v10, %v2574_v49  ;;  %v2576_v12 = vadd.f32 %v2575_v45, %v7113_v61  ;;  %3489 = vmatpush1.bf16.msra.mxu1 %v5731_v1 }
 0x162   :  { %v3649_v14 = vrot.slane %v3648_v50, 2  ;;  %v3655_v52 = vmax.f32 %v3653_v47, %v3654_v58  ;;  %v2688_v26 = vpop.f32.mrf.mxu1  ;;  %v2579_v56 = vpop.f32.mrf.mxu0  ;;  %3248 = vmatmul.mubr.bf16.gmra.mxu0 %v6240_v13  ;;  %3504 = vmatprep.subr.bf16.mxu1 %v7937_v60 }
 0x163   :  { %v3913_v54 = vpack.c.bf16 %v3873_v53, %v3873_v53  ;;  %v3874_v2 = vmax.f32 %v3622_v8, 0.0  ;;  %v3683_v36 = vmax.f32 %v2683_v18, %v2687_v16  ;;  %v2689_v6 = vadd.f32 %v2688_v26, %v2576_v12  ;;  %3255 = vmatprep.mubr.bf16.mxu0 %v6251_v22  ;;  %v7939_v8 = vld [vmem:[#allocation2_spill] sm:$0xff] }
 0x164   :  { %v3650_v61 = vmax.f32 %v3648_v50, %v3649_v14  ;;  %v3656_v42 = vrot.slane %v3655_v52, 2  ;;  %v2580_v11 = vadd.f32 %v2579_v56, %v7118_v29  ;;  %v2692_v35 = vpop.f32.mrf.mxu1  ;;  %3345 = vmatmul.mubr.bf16.gmra.mxu1 %v6253_v23  ;;  %v2581_v55 = vpop.f32.mrf.mxu0  ;;  %v7940_v14 = vld [vmem:[#allocation3_spill] sm:$0xff] }
 0x165   :  { %v4072_v59 = vunpack.c.l.b16 %v3913_v54  ;;  %v3914_v31 = vpack.c.bf16 %v3874_v2, %v3874_v2  ;;  %v3684_v13 = vrot.slane %v3683_v36, 4  ;;  %v3690_v0 = vmax.f32 %v2685_v19, %v2689_v6  ;;  %3352 = vmatprep.mubr.bf16.mxu1 %v6258_v25  ;;  %3505 = vmatpush2.bf16.msra.mxu1 %v2277_v51  ;;  %v7941_v54 = vld [vmem:[#allocation4_spill] sm:$0xff] }
 0x166   :  { %v3651_v60 = vrot.slane %v3650_v61, 1  ;;  %v3657_v46 = vmax.f32 %v3655_v52, %v3656_v42  ;;  %v2693_v57 = vadd.f32 %v2692_v35, %v2580_v11  ;;  %v2582_v22 = vadd.f32 %v2581_v55, %v7123_v37  ;;  %v2694_v27 = vpop.f32.mrf.mxu1  ;;  %v2583_v1 = vpop.f32.mrf.mxu0  ;;  %v7943_v42 = vld [vmem:[#allocation42_spill] sm:$0xff] }
 0x167   :  { %v4108_v29 = vsel %vm4107_vm2, %v4072_v59, %v4067_v17  ;;  %v4073_v32 = vunpack.c.l.b16 %v3914_v31  ;;  %v3685_v47 = vmax.f32 %v3683_v36, %v3684_v13  ;;  %v3691_v23 = vrot.slane %v3690_v0, 4 }
 0x168   :  { %v3652_v18 = vmax.f32 %v3650_v61, %v3651_v60  ;;  %v3658_v9 = vrot.slane %v3657_v46, 1  ;;  %v2584_v4 = vadd.f32 %v2583_v1, %v7126_v7  ;;  %v2696_v33 = vpop.f32.mrf.mxu1  ;;  %v2585_v15 = vpop.f32.mrf.mxu0  ;;  %v2695_v10 = vadd.f32 %v2694_v27, %v2582_v22  ;;  %v7942_v61 = vld [vmem:[#allocation5_spill] sm:$0xff] }
 0x169   :  { %v4121_v25 = vsel %vm4107_vm2, %v4073_v32, %v4068_v30  ;;  %v3686_v39 = vrot.slane %v3685_v47, 2  ;;  %v3692_v49 = vmax.f32 %v3690_v0, %v3691_v23  ;;  %v2586_v50 = vadd.f32 %v2585_v15, %v7938_v3 }
 0x16a   :  { %v3878_v37 = vmax.f32 %v3652_v18, 0.0  ;;  %v3659_v58 = vmax.f32 %v3657_v46, %v3658_v9  ;;  %v2697_v45 = vadd.f32 %v2696_v33, %v2584_v4  ;;  %v2698_v51 = vpop.f32.mrf.mxu1  ;;  %v2589_v53 = vpop.f32.mrf.mxu0  ;;  %3256 = vmatmul.mubr.bf16.gmra.mxu0 %v7939_v8  ;;  %v442_v11 = vsub.s32 2, %v7943_v42 }
 0x16b   :  { %v3687_v16 = vmax.f32 %v3685_v47, %v3686_v39  ;;  %v3693_v12 = vrot.slane %v3692_v49, 2  ;;  %v2699_v17 = vadd.f32 %v2698_v51, %v2586_v50  ;;  %v2590_v7 = vadd.f32 %v2589_v53, %v7135_v40  ;;  %3263 = vmatprep.mubr.bf16.mxu0 %v7940_v14  ;;  %v7944_v50 = vld [vmem:[#allocation6_spill] sm:$0xff] }
 0x16c   :  { %v3918_v52 = vpack.c.bf16 %v3878_v37, %v3878_v37  ;;  %v3879_v19 = vmax.f32 %v3659_v58, 0.0  ;;  %v3720_v26 = vmax.f32 %v2693_v57, %v2697_v45  ;;  %v2702_v56 = vpop.f32.mrf.mxu1  ;;  %3353 = vmatmul.mubr.bf16.gmra.mxu1 %v7941_v54  ;;  %v2591_v2 = vpop.f32.mrf.mxu0 }
 0x16d   :  { %v3688_v36 = vrot.slane %v3687_v16, 1  ;;  %v3694_v6 = vmax.f32 %v3692_v49, %v3693_v12  ;;  %v3727_v30 = vmax.f32 %v2695_v10, %v2699_v17  ;;  %3360 = vmatprep.mubr.bf16.mxu1 %v7942_v61  ;;  %v2703_v59 = vadd.f32 %v2702_v56, %v2590_v7  ;;  %v7945_v10 = vld [vmem:[#allocation7_spill] sm:$0xff] }
 0x16e   :  { %v4077_v35 = vunpack.c.l.b16 %v3918_v52  ;;  %v3919_v55 = vpack.c.bf16 %v3879_v19, %v3879_v19  ;;  %v3721_v40 = vrot.slane %v3720_v26, 4  ;;  %v2704_v31 = vpop.f32.mrf.mxu1  ;;  %v2593_v13 = vpop.f32.mrf.mxu0  ;;  %v2592_v32 = vadd.f32 %v2591_v2, %v7140_v34  ;;  %v7947_v19 = vld [vmem:[#allocation9_spill] sm:$0xff] }
 0x16f   :  { %v3689_v0 = vmax.f32 %v3687_v16, %v3688_v36  ;;  %v3695_v60 = vrot.slane %v3694_v6, 1  ;;  %v3728_v46 = vrot.slane %v3727_v30, 4  ;;  %v2594_v57 = vadd.f32 %v2593_v13, %v7143_v41  ;;  %v7946_v16 = vld [vmem:[#allocation8_spill] sm:$0xff] }
 0x170   :  { %v4110_v22 = vsel %vm4109_vm3, %v4077_v35, %v4108_v29  ;;  %v4078_v27 = vunpack.c.l.b16 %v3919_v55  ;;  %v3722_v1 = vmax.f32 %v3720_v26, %v3721_v40  ;;  %v2706_v47 = vpop.f32.mrf.mxu1  ;;  %v2595_v23 = vpop.f32.mrf.mxu0  ;;  %v2705_v51 = vadd.f32 %v2704_v31, %v2592_v32 }
 0x171   :  { %v3883_v18 = vmax.f32 %v3689_v0, 0.0  ;;  %v3696_v9 = vmax.f32 %v3694_v6, %v3695_v60  ;;  %v3729_v4 = vmax.f32 %v3727_v30, %v3728_v46  ;;  %v2707_v33 = vadd.f32 %v2706_v47, %v2594_v57 }
 0x172   :  { %v3723_v15 = vrot.slane %v3722_v1, 2  ;;  %v2596_v39 = vadd.f32 %v2595_v23, %v7147_v5  ;;  %v2708_v49 = vpop.f32.mrf.mxu1  ;;  %v2599_v3 = vpop.f32.mrf.mxu0  ;;  %3264 = vmatmul.mubr.bf16.gmra.mxu0 %v7944_v50  ;;  %v4122_v41 = vsel %vm4109_vm3, %v4078_v27, %v4121_v25  ;;  %v5781_v5 = vld [vmem:[%s7823_s2] sm:$0x1f]  ;;  %v446_v0 = vsub.s32 3, %v7943_v42  ;;  %v7950_v50 = vld [vmem:[#allocation12_spill] sm:$0xff] }
 0x173   :  { %v3923_v29 = vpack.c.bf16 %v3883_v18, %v3883_v18  ;;  %v3884_v37 = vmax.f32 %v3696_v9, 0.0  ;;  %v3730_v58 = vrot.slane %v3729_v4, 2  ;;  %v3757_v34 = vmax.f32 %v2703_v59, %v2707_v33  ;;  %3271 = vmatprep.mubr.bf16.mxu0 %v7945_v10  ;;  %v7948_v23 = vld [vmem:[#allocation10_spill] sm:$0xff]  ;;  %v7949_v33 = vld [vmem:[#allocation11_spill] sm:$0xff] }
 0x174   :  { %v3724_v45 = vmax.f32 %v3722_v1, %v3723_v15  ;;  %v2709_v53 = vadd.f32 %v2708_v49, %v2596_v39  ;;  %v2712_v8 = vpop.f32.mrf.mxu1  ;;  %3361 = vmatmul.mubr.bf16.gmra.mxu1 %v7946_v16  ;;  %v2601_v12 = vpop.f32.mrf.mxu0  ;;  %v7327_v17 = vrot.slane %v5781_v5, %v442_v11  ;;  %v2600_v54 = vadd.f32 %v2599_v3, %v7152_v48 }
 0x175   :  { %v4082_v25 = vunpack.c.l.b16 %v3923_v29  ;;  %v3924_v7 = vpack.c.bf16 %v3884_v37, %v3884_v37  ;;  %v3731_v14 = vmax.f32 %v3729_v4, %v3730_v58  ;;  %v3758_v52 = vrot.slane %v3757_v34, 4  ;;  %3368 = vmatprep.mubr.bf16.mxu1 %v7947_v19 }
 0x176   :  { %v3725_v26 = vrot.slane %v3724_v45, 1  ;;  %v3764_v56 = vmax.f32 %v2705_v51, %v2709_v53  ;;  %v2602_v2 = vadd.f32 %v2601_v12, %v7157_v43  ;;  %v2714_v36 = vpop.f32.mrf.mxu1  ;;  %v2603_v6 = vpop.f32.mrf.mxu0  ;;  %v7343_v10 = vrot.slane %v5781_v5, %v446_v0  ;;  %v5734_v5 = vld [vmem:[%s7824_s3 + $0x38] sm:$0xff]  }
 0x177   :  { %v4112_v30 = vsel %vm4111_vm4, %v4082_v25, %v4110_v22  ;;  %v4083_v61 = vunpack.c.l.b16 %v3924_v7  ;;  %v3732_v11 = vrot.slane %v3731_v14, 1  ;;  %v3759_v35 = vmax.f32 %v3757_v34, %v3758_v52  ;;  %v7951_v34 = vld [vmem:[#allocation13_spill] sm:$0xff] }
 0x178   :  { %v3726_v55 = vmax.f32 %v3724_v45, %v3725_v26  ;;  %v3765_v40 = vrot.slane %v3764_v56, 4  ;;  %v2604_v59 = vadd.f32 %v2603_v6, %v7160_v20  ;;  %v2716_v31 = vpop.f32.mrf.mxu1  ;;  %v2605_v13 = vpop.f32.mrf.mxu0  ;;  %v2713_v22 = vadd.f32 %v2712_v8, %v2600_v54  ;;  %v5749_v45 = vld [vmem:[%s7824_s3 + $0xf8] sm:$0xff]  }
 0x179   :  { %v3733_v60 = vmax.f32 %v3731_v14, %v3732_v11  ;;  %v3760_v46 = vrot.slane %v3759_v35, 2  ;;  %v2606_v48 = vadd.f32 %v2605_v13, %v7164_v63  ;;  %v4123_v43 = vsel %vm4111_vm4, %v4083_v61, %v4122_v41  ;;  %5265 = vmatprep.subr.bf16.mxu1 %v5749_v45  ;;  %v7952_v13 = vld [vmem:[#allocation14_spill] sm:$0xff] }
 0x17a   :  { %v3888_v57 = vmax.f32 %v3726_v55, 0.0  ;;  %v3766_v27 = vmax.f32 %v3764_v56, %v3765_v40  ;;  %v2717_v1 = vadd.f32 %v2716_v31, %v2604_v59  ;;  %v2718_v32 = vpop.f32.mrf.mxu1  ;;  %v2609_v47 = vpop.f32.mrf.mxu0  ;;  %3272 = vmatmul.mubr.bf16.gmra.mxu0 %v7948_v23  ;;  %v2715_v9 = vadd.f32 %v2714_v36, %v2602_v2  ;;  %v7954_v23 = vld [vmem:[#allocation16_spill] sm:$0xff] }
 0x17b   :  { %v3889_v18 = vmax.f32 %v3733_v60, 0.0  ;;  %v3761_v20 = vmax.f32 %v3759_v35, %v3760_v46  ;;  %v2719_v4 = vadd.f32 %v2718_v32, %v2606_v48  ;;  %3409 = vmatprep.mubr.bf16.mxu0 %v7949_v33  ;;  %v2610_v63 = vadd.f32 %v2609_v47, %v7169_v62  ;;  %v5750_v35 = vld [vmem:[%s7824_s3 + $0xb8] sm:$0xff]   ;;  %v5751_v60 = vld [vmem:[%s7824_s3 + $0xf0] sm:$0xff]  }
 0x17c   :  { %v3928_v15 = vpack.c.bf16 %v3888_v57, %v3888_v57  ;;  %v3767_v39 = vrot.slane %v3766_v27, 2  ;;  %v3794_v49 = vmax.f32 %v2713_v22, %v2717_v1  ;;  %v2722_v3 = vpop.f32.mrf.mxu1  ;;  %3369 = vmatmul.mubr.bf16.gmra.mxu1 %v7950_v50  ;;  %v2611_v41 = vpop.f32.mrf.mxu0  ;;  %v5736_v22 = vld [vmem:[%s7824_s3 + $0x30] sm:$0xff]  }
 0x17d   :  { %v3929_v29 = vpack.c.bf16 %v3889_v18, %v3889_v18  ;;  %v3762_v37 = vrot.slane %v3761_v20, 1  ;;  %v3801_v58 = vmax.f32 %v2715_v9, %v2719_v4  ;;  %4996 = vmatprep.mubr.msk.bf16.mxu1 %vm2238_vm1, %v7951_v34  ;;  %v2612_v62 = vadd.f32 %v2611_v41, %v7173_v21  ;;  %v5735_v21 = vld [vmem:[%s7824_s3 + $0x70] sm:$0xff]  }
 0x17e   :  { %v4087_v51 = vunpack.c.l.b16 %v3928_v15  ;;  %v3768_v53 = vmax.f32 %v3766_v27, %v3767_v39  ;;  %v3795_v8 = vrot.slane %v3794_v49, 4  ;;  %v2724_v16 = vpop.f32.mrf.mxu1  ;;  %v2613_v12 = vpop.f32.mrf.mxu0  ;;  %v2723_v54 = vadd.f32 %v2722_v3, %v2610_v63  ;;  %v7953_v27 = vld [vmem:[#allocation15_spill] sm:$0xff]  ;;  %v7955_v39 = vld [vmem:[#allocation17_spill] sm:$0xff] }
 0x17f   :  { %v4088_v25 = vunpack.c.l.b16 %v3929_v29  ;;  %v3763_v7 = vmax.f32 %v3761_v20, %v3762_v37  ;;  %v3802_v14 = vrot.slane %v3801_v58, 4  ;;  %v2614_v52 = vadd.f32 %v2613_v12, %v7182_v44  ;;  %v5737_v20 = vld [vmem:[%s7824_s3 + $0x68] sm:$0xff]  }
 0x180   :  { %v4114_v19 = vsel %vm4113_vm5, %v4087_v51, %v4112_v30  ;;  %v3769_v26 = vrot.slane %v3768_v53, 1  ;;  %v3796_v56 = vmax.f32 %v3794_v49, %v3795_v8  ;;  %v2726_v2 = vpop.f32.mrf.mxu1  ;;  %v2615_v36 = vpop.f32.mrf.mxu0  ;;  %v2725_v40 = vadd.f32 %v2724_v16, %v2612_v62  ;;  %v5752_v49 = vld [vmem:[%s7824_s3 + $0xb0] sm:$0xff]   ;;  %v5738_v8 = vld [vmem:[%s7824_s3 + $0x28] sm:$0xff]  }
 0x181   :  { %v3893_v6 = vmax.f32 %v3763_v7, 0.0  ;;  %v3803_v61 = vmax.f32 %v3801_v58, %v3802_v14  ;;  %v2727_v11 = vadd.f32 %v2726_v2, %v2614_v52  ;;  %v2616_v44 = vadd.f32 %v2615_v36, %v7189_v24  ;;  %v5753_v58 = vld [vmem:[%s7824_s3 + $0xe8] sm:$0xff]   ;;  %v5739_v52 = vld [vmem:[%s7824_s3 + $0x60] sm:$0xff]  }
 0x182   :  { %v3770_v55 = vmax.f32 %v3768_v53, %v3769_v26  ;;  %v3797_v30 = vrot.slane %v3796_v56, 2  ;;  %v2728_v59 = vpop.f32.mrf.mxu1  ;;  %v2765_v31 = vpop.f32.mrf.mxu0  ;;  %3410 = vmatmul.mubr.bf16.vlgmr.msra.gmra.mxu0 %v7952_v13  ;;  %v4124_v0 = vsel %vm4113_vm5, %v4088_v25, %v4123_v43 }
 0x183   :  { %v3933_v46 = vpack.c.bf16 %v3893_v6, %v3893_v6  ;;  %v3804_v48 = vrot.slane %v3803_v61, 2  ;;  %v3831_v24 = vmax.f32 %v2723_v54, %v2727_v11  ;;  %v2729_v57 = vadd.f32 %v2728_v59, %v2616_v44  ;;  %3417 = vmatprep.mubr.bf16.mxu0 %v7953_v27  ;;  %5244 = vmatpush3.bf16.msra.mxu0 %v5734_v5  ;;  %v5754_v54 = vld [vmem:[%s7824_s3 + $0xa8] sm:$0xff]   ;;  %v5755_v44 = vld [vmem:[%s7824_s3 + $0xe0] sm:$0xff]  }
 0x184   :  { %v3894_v1 = vmax.f32 %v3770_v55, 0.0  ;;  %v3798_v32 = vmax.f32 %v3796_v56, %v3797_v30  ;;  %v2766_v43 = vadd.f32 %v2765_v31, %v7327_v17  ;;  %v2878_v47 = vpop.f32.mrf.mxu1  ;;  %3507 = vmatmul.mubr.bf16.vlgmr.msra.gmra.mxu1 %v7954_v23  ;;  %v2767_v18 = vpop.f32.mrf.mxu0  ;;  %5245 = vmatprep.subr.bf16.mxu0 %v5735_v21  ;;  %v7957_v59 = vld [vmem:[#allocation19_spill] sm:$0xff]  ;;  %v5740_v31 = vld [vmem:[%s7824_s3 + $0x20] sm:$0xff]  }
 0x185   :  { %v4092_v9 = vunpack.c.l.b16 %v3933_v46  ;;  %v3805_v4 = vmax.f32 %v3803_v61, %v3804_v48  ;;  %v3832_v33 = vrot.slane %v3831_v24, 4  ;;  %v3838_v15 = vmax.f32 %v2725_v40, %v2729_v57  ;;  %4997 = vmatprep.mubr.msk.bf16.mxu1 %vm2238_vm1, %v7955_v39  ;;  %5266 = vmatpush3.bf16.msra.mxu1 %v5750_v35  ;;  %v7956_v61 = vld [vmem:[#allocation18_spill] sm:$0xff]  ;;  %v7958_v46 = vld [vmem:[#allocation20_spill] sm:$0xff] }
 0x186   :  { %v3934_v63 = vpack.c.bf16 %v3894_v1, %v3894_v1  ;;  %v3799_v3 = vrot.slane %v3798_v32, 1  ;;  %v7380_v50 = vadd.f32 %v2878_v47, %v2766_v43  ;;  %v2768_v41 = vadd.f32 %v2767_v18, %v7343_v10  ;;  %v2880_v29 = vpop.f32.mrf.mxu1  ;;  %v2769_v37 = vpop.f32.mrf.mxu0  ;;  %5267 = vmatprep.subr.bf16.mxu1 %v5751_v60  ;;  %v5756_v43 = vld [vmem:[%s7824_s3 + $0xa0] sm:$0xff]  }
 0x187   :  { %v7387_v34 = vsel %vm4115_vm6, %v4092_v9, %v4114_v19  ;;  %v3806_v45 = vrot.slane %v3805_v4, 1  ;;  %v3833_v51 = vmax.f32 %v3831_v24, %v3832_v33  ;;  %v3839_v53 = vrot.slane %v3838_v15, 4  ;;  %5246 = vmatpush3.bf16.msra.mxu0 %v5736_v22  ;;  %v5741_v24 = vld [vmem:[%s7824_s3 + $0x58] sm:$0xff]  }
 0x188   :  { %v4093_v62 = vunpack.c.l.b16 %v3934_v63  ;;  %v3800_v16 = vmax.f32 %v3798_v32, %v3799_v3  ;;  %v7392_v12 = vadd.f32 %v2880_v29, %v2768_v41  ;;  %v2770_v25 = vadd.f32 %v2769_v37, %v7327_v17  ;;  %v2882_v7 = vpop.f32.mrf.mxu1  ;;  %v2771_v14 = vpop.f32.mrf.mxu0  ;;  %5247 = vmatprep.subr.bf16.mxu0 %v5737_v20  ;;  %v7959_v32 = vld [vmem:[#allocation21_spill] sm:$0xff]  ;;  %v5743_v41 = vld [vmem:[%s7824_s3 + $0x50] sm:$0xff]  }
 0x189   :  { %v3807_v5 = vmax.f32 %v3805_v4, %v3806_v45  ;;  %v3834_v19 = vrot.slane %v3833_v51, 2  ;;  %v3840_v26 = vmax.f32 %v3838_v15, %v3839_v53  ;;  %v2772_v56 = vadd.f32 %v2771_v14, %v7343_v10  ;;  %5268 = vmatpush3.bf16.msra.mxu1 %v5752_v49  ;;  %v5757_v9 = vld [vmem:[%s7824_s3 + $0xd8] sm:$0xff]  }
 0x18a   :  { %v3898_v2 = vmax.f32 %v3800_v16, 0.0  ;;  %v7402_v36 = vadd.f32 %v2882_v7, %v2770_v25  ;;  %v2884_v21 = vpop.f32.mrf.mxu1  ;;  %v2775_v6 = vpop.f32.mrf.mxu0  ;;  %3418 = vmatmul.mubr.bf16.gmra.mxu0 %v7956_v61  ;;  %v4125_v11 = vsel %vm4115_vm6, %v4093_v62, %v4124_v0  ;;  %5269 = vmatprep.subr.bf16.mxu1 %v5753_v58  ;;  %v5742_v49 = vld [vmem:[%s7824_s3 + $0x18] sm:$0xff]   ;;  %v7960_v25 = vld [vmem:[#allocation22_spill] sm:$0xff] }
 0x18b   :  { %v3899_v35 = vmax.f32 %v3807_v5, 0.0  ;;  %v3835_v55 = vmax.f32 %v3833_v51, %v3834_v19  ;;  %v3841_v30 = vrot.slane %v3840_v26, 2  ;;  %v7409_v40 = vadd.f32 %v2884_v21, %v2772_v56  ;;  %3425 = vmatprep.mubr.bf16.mxu0 %v7957_v59  ;;  %5248 = vmatpush3.bf16.msra.mxu0 %v5738_v8  ;;  %v5758_v8 = vld [vmem:[%s7824_s3 + $0x98] sm:$0xff]   ;;  %v7961_v19 = vld [vmem:[#allocation23_spill] sm:$0xff] }
 0x18c   :  { %v3938_v13 = vpack.c.bf16 %v3898_v2, %v3898_v2  ;;  %v2776_v0 = vadd.f32 %v2775_v6, %v7327_v17  ;;  %v2888_v60 = vpop.f32.mrf.mxu1  ;;  %3515 = vmatmul.mubr.bf16.gmra.mxu1 %v7958_v46  ;;  %v2777_v48 = vpop.f32.mrf.mxu0  ;;  %5249 = vmatprep.subr.bf16.mxu0 %v5739_v52  ;;  %v7962_v2 = vld [vmem:[#allocation24_spill] sm:$0xff]  ;;  %v5745_v6 = vld [vmem:[%s7824_s3 + $0x48] sm:$0xff]  }
 0x18d   :  { %v3939_v57 = vpack.c.bf16 %v3899_v35, %v3899_v35  ;;  %v3836_v27 = vrot.slane %v3835_v55, 1  ;;  %v3842_v22 = vmax.f32 %v3840_v26, %v3841_v30  ;;  %v2778_v1 = vadd.f32 %v2777_v48, %v7343_v10  ;;  %4998 = vmatprep.mubr.msk.bf16.mxu1 %vm2238_vm1, %v7959_v32  ;;  %5270 = vmatpush3.bf16.msra.mxu1 %v5754_v54  ;;  %v5744_v26 = vld [vmem:[%s7824_s3 + $0x10] sm:$0xff]   ;;  %v7963_v35 = vld [vmem:[#allocation25_spill] sm:$0xff]  ;;  %v5746_v46 = vld [vmem:[%s7824_s3 + $0x8] sm:$0xff]  }
 0x18e   :  { %v4097_v47 = vunpack.c.l.b16 %v3938_v13  ;;  %v7426_v23 = vadd.f32 %v2888_v60, %v2776_v0  ;;  %v2890_v18 = vpop.f32.mrf.mxu1  ;;  %v2779_v20 = vpop.f32.mrf.mxu0  ;;  %5271 = vmatprep.subr.bf16.mxu1 %v5755_v44  ;;  %v5760_v30 = vld [vmem:[%s7824_s3 + $0x90] sm:$0xff]   ;;  %v5761_v13 = vld [vmem:[%s7824_s3 + $0xc8] sm:$0xff]  }
 0x18f   :  { %v3837_v4 = vmax.f32 %v3835_v55, %v3836_v27  ;;  %v3843_v33 = vrot.slane %v3842_v22, 1  ;;  %v7431_v15 = vadd.f32 %v2890_v18, %v2778_v1  ;;  %v2780_v39 = vadd.f32 %v2779_v20, %v7327_v17  ;;  %5250 = vmatpush3.bf16.msra.mxu0 %v5740_v31 }
 0x190   :  { %v2892_v63 = vpop.f32.mrf.mxu1  ;;  %v2781_v3 = vpop.f32.mrf.mxu0  ;;  %5251 = vmatprep.subr.bf16.mxu0 %v5741_v24  ;;  %v4098_v29 = vunpack.c.l.b16 %v3939_v57  ;;  %v4118_v37 = vsel %vm4117_vm7, %v4097_v47, %v7387_v34  ;;  %v5759_v34 = vld [vmem:[%s7824_s3 + $0xd0] sm:$0xff]   ;;  %v5762_v47 = vld [vmem:[%s7824_s3 + $0x88] sm:$0xff]  }
 0x191   :  { %v3903_v58 = vmax.f32 %v3837_v4, 0.0  ;;  %v3844_v45 = vmax.f32 %v3842_v22, %v3843_v33  ;;  %v7442_v51 = vadd.f32 %v2892_v63, %v2780_v39  ;;  %v2782_v53 = vadd.f32 %v2781_v3, %v7343_v10  ;;  %5272 = vmatpush3.bf16.msra.mxu1 %v5756_v43  ;;  %v5747_v22 = vld [vmem:[%s7824_s3 + $0x40] sm:$0xff]  }
 0x192   :  { %v2894_v62 = vpop.f32.mrf.mxu1  ;;  %v2785_v16 = vpop.f32.mrf.mxu0  ;;  %3426 = vmatmul.mubr.bf16.gmra.mxu0 %v7960_v25  ;;  %v4126_v7 = vsel %vm4117_vm7, %v4098_v29, %v4125_v11  ;;  %5273 = vmatprep.subr.bf16.mxu1 %v5757_v9  ;;  %v7964_v9 = vld [vmem:[#allocation26_spill] sm:$0xff] }
 0x193   :  { %v3943_v14 = vpack.c.bf16 %v3903_v58, %v3903_v58  ;;  %v7453_v52 = vadd.f32 %v2894_v62, %v2782_v53  ;;  %v2786_v5 = vadd.f32 %v2785_v16, %v7327_v17  ;;  %3433 = vmatprep.mubr.bf16.mxu0 %v7961_v19  ;;  %5252 = vmatpush3.bf16.msra.mxu0 %v5742_v49  ;;  %v3904_v56 = vmax.f32 %v3844_v45, 0.0  ;;  %v5763_v4 = vld [vmem:[%s7824_s3 + $0xc0] sm:$0xff]   ;;  %v7965_v49 = vld [vmem:[#allocation27_spill] sm:$0xff]  ;;  %v7967_v45 = vld [vmem:[#allocation29_spill] sm:$0xff] }
 0x194   :  { %v2898_v54 = vpop.f32.mrf.mxu1  ;;  %3523 = vmatmul.mubr.bf16.gmra.mxu1 %v7962_v2  ;;  %v2787_v21 = vpop.f32.mrf.mxu0  ;;  %5253 = vmatprep.subr.bf16.mxu0 %v5743_v41  ;;  %v5748_v63 = vld [vmem:[%s7824_s3] sm:$0xff]   ;;  %v7966_v41 = vld [vmem:[#allocation28_spill] sm:$0xff] }
 0x195   :  { %v4102_v61 = vunpack.c.l.b16 %v3943_v14  ;;  %v7464_v11 = vadd.f32 %v2898_v54, %v2786_v5  ;;  %v2788_v44 = vadd.f32 %v2787_v21, %v7343_v10  ;;  %4999 = vmatprep.mubr.msk.bf16.mxu1 %vm2238_vm1, %v7963_v35  ;;  %v3944_v55 = vpack.c.bf16 %v3904_v56, %v3904_v56  ;;  %5274 = vmatpush3.bf16.msra.mxu1 %v5758_v8  ;;  %v5764_v53 = vld [vmem:[%s7824_s3 + $0x80] sm:$0xff]   ;;  %v7969_v21 = vld [vmem:[#allocation31_spill] sm:$0xff] }
 0x196   :  { %v2900_v59 = vpop.f32.mrf.mxu1  ;;  %v2789_v31 = vpop.f32.mrf.mxu0  ;;  %5275 = vmatprep.subr.bf16.mxu1 %v5759_v34  ;;  %v7968_v56 = vld [vmem:[#allocation30_spill] sm:$0xff] }
 0x197   :  { %v7475_v0 = vadd.f32 %v2900_v59, %v2788_v44  ;;  %v2790_v60 = vadd.f32 %v2789_v31, %v7327_v17  ;;  %5254 = vmatpush3.bf16.msra.mxu0 %v5744_v26  ;;  %v4103_v48 = vunpack.c.l.b16 %v3944_v55  ;;  %v7482_v24 = vsel %vm4119_vm8, %v4102_v61, %v4118_v37  ;;  %v7970_v61 = vld [vmem:[#allocation32_spill] sm:$0xff] }
 0x198   :  { %v2902_v57 = vpop.f32.mrf.mxu1  ;;  %v2791_v27 = vpop.f32.mrf.mxu0  ;;  %5255 = vmatprep.subr.bf16.mxu0 %v5745_v6 }
 0x199   :  { %v7487_v1 = vadd.f32 %v2902_v57, %v2790_v60  ;;  %v2792_v32 = vadd.f32 %v2791_v27, %v7343_v10  ;;  %v7491_v43 = vsel %vm4119_vm8, %v4103_v48, %v4126_v7  ;;  %5276 = vmatpush3.bf16.msra.mxu1 %v5760_v30  ;;  %v7971_v30 = vld [vmem:[#allocation33_spill] sm:$0xff] }
 0x19a   :  { %v2904_v18 = vpop.f32.mrf.mxu1  ;;  %v2795_v20 = vpop.f32.mrf.mxu0  ;;  %3434 = vmatmul.mubr.bf16.gmra.mxu0 %v7964_v9  ;;  %5277 = vmatprep.subr.bf16.mxu1 %v5761_v13  ;;  %v7974_v9 = vld [vmem:[#allocation36_spill] sm:$0xff] }
 0x19b   :  { %v7500_v33 = vadd.f32 %v2904_v18, %v2792_v32  ;;  %v2796_v39 = vadd.f32 %v2795_v20, %v7327_v17  ;;  %3441 = vmatprep.mubr.bf16.mxu0 %v7965_v49  ;;  %5256 = vmatpush3.bf16.msra.mxu0 %v5746_v46  ;;  %v7972_v32 = vld [vmem:[#allocation34_spill] sm:$0xff]  ;;  %v7973_v18 = vld [vmem:[#allocation35_spill] sm:$0xff] }
 0x19c   :  { %v2908_v3 = vpop.f32.mrf.mxu1  ;;  %3531 = vmatmul.mubr.bf16.gmra.mxu1 %v7966_v41  ;;  %v2797_v29 = vpop.f32.mrf.mxu0  ;;  %5257 = vmatprep.subr.bf16.mxu0 %v5747_v22 }
 0x19d   :  { %v7508_v37 = vadd.f32 %v2908_v3, %v2796_v39  ;;  %v2798_v58 = vadd.f32 %v2797_v29, %v7343_v10  ;;  %5000 = vmatprep.mubr.msk.bf16.mxu1 %vm2238_vm1, %v7967_v45  ;;  %5278 = vmatpush3.bf16.msra.mxu1 %v5762_v47 }
 0x19e   :  { %v2910_v8 = vpop.f32.mrf.mxu1  ;;  %v2799_v62 = vpop.f32.mrf.mxu0  ;;  %5279 = vmatprep.subr.bf16.mxu1 %v5763_v4 }
 0x19f   :  { %v7516_v16 = vadd.f32 %v2910_v8, %v2798_v58  ;;  %v2800_v25 = vadd.f32 %v2799_v62, %v7327_v17  ;;  %5258 = vmatpush3.bf16.msra.mxu0 %v5748_v63  ;;  %v7975_v63 = vld [vmem:[#allocation37_spill] sm:$0xff] }
 0x1a0   :  { %v2912_v7 = vpop.f32.mrf.mxu1  ;;  %v2801_v34 = vpop.f32.mrf.mxu0 }
 0x1a1   :  { %v7519_v14 = vadd.f32 %v2912_v7, %v2800_v25  ;;  %v2802_v5 = vadd.f32 %v2801_v34, %v7343_v10  ;;  %5280 = vmatpush3.bf16.msra.mxu1 %v5764_v53  ;;  %v7976_v7 = vld [vmem:[#allocation38_spill] sm:$0xff] }
 0x1a2   :  { %v2914_v19 = vpop.f32.mrf.mxu1  ;;  %v2805_v26 = vpop.f32.mrf.mxu0  ;;  %3442 = vmatmul.mubr.bf16.gmra.mxu0 %v7968_v56 }
 0x1a3   :  { %v7523_v54 = vadd.f32 %v2914_v19, %v2802_v5  ;;  %v2806_v2 = vadd.f32 %v2805_v26, %v7327_v17  ;;  %3449 = vmatprep.mubr.bf16.mxu0 %v7969_v21  ;;  %v7977_v5 = vld [vmem:[#allocation39_spill] sm:$0xff]  ;;  %v7978_v26 = vld [vmem:[#allocation40_spill] sm:$0xff] }
 0x1a4   :  { %v2918_v6 = vpop.f32.mrf.mxu1  ;;  %3539 = vmatmul.mubr.bf16.gmra.mxu1 %v7970_v61  ;;  %v2807_v44 = vpop.f32.mrf.mxu0 }
 0x1a5   :  { %v7528_v35 = vadd.f32 %v2918_v6, %v2806_v2  ;;  %v2808_v55 = vadd.f32 %v2807_v44, %v7343_v10  ;;  %5001 = vmatprep.mubr.msk.bf16.mxu1 %vm2238_vm1, %v7971_v30  ;;  %v7979_v6 = vld [vmem:[#allocation41_spill] sm:$0xff] }
 0x1a6   :  { %v2920_v59 = vpop.f32.mrf.mxu1  ;;  %v2809_v31 = vpop.f32.mrf.mxu0 }
 0x1a7   :  { %v7533_v13 = vadd.f32 %v2920_v59, %v2808_v55  ;;  %v2810_v60 = vadd.f32 %v2809_v31, %v7327_v17 }
 0x1a8   :  { %v2922_v46 = vpop.f32.mrf.mxu1  ;;  %v7536_v48 = vpop.f32.mrf.mxu0 }
 0x1a9   :  { %v7538_v57 = vadd.f32 %v2922_v46, %v2810_v60 }
 0x1aa   :  { %v7540_v27 = vpop.f32.mrf.mxu1  ;;  %v2815_v22 = vpop.f32.mrf.mxu0  ;;  %3450 = vmatmul.mubr.bf16.gmra.mxu0 %v7972_v32 }
 0x1ab   :  { %v2816_v47 = vadd.f32 %v2815_v22, %v7327_v17  ;;  %3457 = vmatprep.mubr.bf16.mxu0 %v7973_v18  ;;  %v4150_v22 = vpack.c.b16 %v7491_v43, %v7491_v43 }
 0x1ac   :  { %v2928_v20 = vpop.f32.mrf.mxu1  ;;  %3547 = vmatmul.mubr.bf16.gmra.mxu1 %v7974_v9  ;;  %v2817_v4 = vpop.f32.mrf.mxu0 }
 0x1ad   :  { %v7546_v39 = vadd.f32 %v2928_v20, %v2816_v47  ;;  %v2818_v49 = vadd.f32 %v2817_v4, %v7343_v10  ;;  %5002 = vmatprep.mubr.msk.bf16.mxu1 %vm2238_vm1, %v7975_v63 }
 0x1ae   :  { %v2930_v3 = vpop.f32.mrf.mxu1  ;;  %v2819_v41 = vpop.f32.mrf.mxu0 }
 0x1af   :  { %v7551_v29 = vadd.f32 %v2930_v3, %v2818_v49  ;;  %v2820_v58 = vadd.f32 %v2819_v41, %v7327_v17 }
 0x1b0   :  { %v2932_v45 = vpop.f32.mrf.mxu1  ;;  %v7554_v53 = vpop.f32.mrf.mxu0 }
 0x1b1   :  { %v7556_v8 = vadd.f32 %v2932_v45, %v2820_v58 }
 0x1b2   :  { %v7558_v62 = vpop.f32.mrf.mxu1  ;;  %v2825_v25 = vpop.f32.mrf.mxu0  ;;  %3458 = vmatmul.mubr.bf16.gmra.mxu0 %v7976_v7 }
 0x1b3   :  { %v2826_v34 = vadd.f32 %v2825_v25, %v7327_v17  ;;  %3465 = vmatprep.mubr.bf16.mxu0 %v7977_v5 }
 0x1b4   :  { %v2938_v19 = vpop.f32.mrf.mxu1  ;;  %3555 = vmatmul.mubr.bf16.gmra.mxu1 %v7978_v26  ;;  %v2827_v56 = vpop.f32.mrf.mxu0 }
 0x1b5   :  { %v7564_v2 = vadd.f32 %v2938_v19, %v2826_v34  ;;  %v2828_v21 = vadd.f32 %v2827_v56, %v7343_v10  ;;  %5003 = vmatprep.mubr.msk.bf16.mxu1 %vm2238_vm1, %v7979_v6 }
 0x1b6   :  { %v2940_v61 = vpop.f32.mrf.mxu1  ;;  %v2829_v44 = vpop.f32.mrf.mxu0 }
 0x1b7   :  { %v7569_v55 = vadd.f32 %v2940_v61, %v2828_v21  ;;  %v2830_v30 = vadd.f32 %v2829_v44, %v7327_v17 }
 0x1b8   :  { %v2942_v59 = vpop.f32.mrf.mxu1  ;;  %v2831_v31 = vpop.f32.mrf.mxu0 }
 0x1b9   :  { %v7572_v60 = vadd.f32 %v2942_v59, %v2830_v30  ;;  %v2832_v46 = vadd.f32 %v2831_v31, %v7343_v10 }
 0x1ba   :  { %v2944_v32 = vpop.f32.mrf.mxu1  ;;  %v2835_v47 = vpop.f32.mrf.mxu0  ;;  %3466 = vmatmul.mubr.bf16.gmra.mxu0 %v6724_v28  ;;  %v4149_v28 = vpack.c.b16 %v7482_v24, %v7482_v24 }
 0x1bb   :  { %v7578_v18 = vadd.f32 %v2944_v32, %v2832_v46  ;;  %v2836_v20 = vadd.f32 %v2835_v47, %v7327_v17  ;;  %4409 = vmatprep.mubr.bf16.mxu0 %v4150_v22 }
 0x1bc   :  { %v2948_v9 = vpop.f32.mrf.mxu1  ;;  %3563 = vmatmul.mubr.bf16.gmra.mxu1 %v6732_v38  ;;  %v2837_v4 = vpop.f32.mrf.mxu0 }
 0x1bd   :  { %v7582_v49 = vadd.f32 %v2948_v9, %v2836_v20  ;;  %v2838_v63 = vadd.f32 %v2837_v4, %v7343_v10 }
 0x1be   :  { %v2950_v3 = vpop.f32.mrf.mxu1  ;;  %v7585_v41 = vpop.f32.mrf.mxu0 }
 0x1bf   :  { %v7587_v43 = vadd.f32 %v2950_v3, %v2838_v63 }
 0x1c0   :  { %v7591_v58 = vpop.f32.mrf.mxu1  ;;  %v7593_v45 = vpop.f32.mrf.mxu0 }
 0x1c2   :  { %v7595_v25 = vpop.f32.mrf.mxu1  ;;  %v2991_v38 = vpop.f32.mrf.mxu0  ;;  %4410 = vmatmul.mubr.bf16.vlgmr.msra.gmra.mxu0 %v4149_v28 }
 0x1c3   :  { %v2992_v5 = vadd.f32 %v2991_v38, %v7380_v50 }
 0x1c4   :  { %v3104_v7 = vpop.f32.mrf.mxu1  ;;  %v2993_v34 = vpop.f32.mrf.mxu0 }
 0x1c5   :  { %v2994_v56 = vadd.f32 %v2993_v34, %v7392_v12  ;;  %v3105_v61 = vadd.f32 %v3104_v7, %v2992_v5 }
 0x1c6   :  { %v3106_v19 = vpop.f32.mrf.mxu1  ;;  %v2995_v26 = vpop.f32.mrf.mxu0 }
 0x1c7   :  { %v2996_v21 = vadd.f32 %v2995_v26, %v7402_v36  ;;  %v3107_v46 = vadd.f32 %v3106_v19, %v2994_v56 }
 0x1c8   :  { %v3108_v6 = vpop.f32.mrf.mxu1  ;;  %v2997_v24 = vpop.f32.mrf.mxu0 }
 0x1c9   :  { %v3109_v44 = vadd.f32 %v3108_v6, %v2996_v21  ;;  %v2998_v30 = vadd.f32 %v2997_v24, %v7409_v40 }
 0x1ca   :  { %v3110_v59 = vpop.f32.mrf.mxu1  ;;  %v3001_v31 = vpop.f32.mrf.mxu0 }
 0x1cb   :  { %v3585_v22 = vmax.f32 %v3105_v61, %v3109_v44  ;;  %v3111_v32 = vadd.f32 %v3110_v59, %v2998_v30  ;;  %v3002_v47 = vadd.f32 %v3001_v31, %v7426_v23 }
 0x1cc   :  { %v3114_v50 = vpop.f32.mrf.mxu1  ;;  %v3003_v20 = vpop.f32.mrf.mxu0 }
 0x1cd   :  { %v3586_v9 = vrot.slane %v3585_v22, 4  ;;  %v3592_v4 = vmax.f32 %v3107_v46, %v3111_v32  ;;  %v3004_v12 = vadd.f32 %v3003_v20, %v7431_v15  ;;  %v3115_v40 = vadd.f32 %v3114_v50, %v3002_v47 }
 0x1ce   :  { %v3116_v36 = vpop.f32.mrf.mxu1  ;;  %v3005_v63 = vpop.f32.mrf.mxu0 }
 0x1cf   :  { %v3587_v3 = vmax.f32 %v3585_v22, %v3586_v9  ;;  %v3593_v28 = vrot.slane %v3592_v4, 4  ;;  %v3006_v38 = vadd.f32 %v3005_v63, %v7442_v51  ;;  %v3117_v56 = vadd.f32 %v3116_v36, %v3004_v12 }
 0x1d0   :  { %v3118_v7 = vpop.f32.mrf.mxu1  ;;  %v3007_v34 = vpop.f32.mrf.mxu0 }
 0x1d1   :  { %v3588_v5 = vrot.slane %v3587_v3, 2  ;;  %v3594_v19 = vmax.f32 %v3592_v4, %v3593_v28  ;;  %v3119_v26 = vadd.f32 %v3118_v7, %v3006_v38  ;;  %v3008_v23 = vadd.f32 %v3007_v34, %v7453_v52 }
 0x1d2   :  { %v3120_v21 = vpop.f32.mrf.mxu1  ;;  %v3011_v6 = vpop.f32.mrf.mxu0  ;;  %v2812_v28 = vadd.f32 %v7536_v48, %v7343_v10 }
 0x1d3   :  { %v3589_v24 = vmax.f32 %v3587_v3, %v3588_v5  ;;  %v3595_v61 = vrot.slane %v3594_v19, 2  ;;  %v3623_v15 = vmax.f32 %v3115_v40, %v3119_v26  ;;  %v3121_v44 = vadd.f32 %v3120_v21, %v3008_v23 }
 0x1d4   :  { %v3124_v30 = vpop.f32.mrf.mxu1  ;;  %v3013_v59 = vpop.f32.mrf.mxu0  ;;  %v3012_v32 = vadd.f32 %v3011_v6, %v7464_v11  ;;  %v2925_v48 = vadd.f32 %v7540_v27, %v2812_v28 }
 0x1d5   :  { %v3590_v31 = vrot.slane %v3589_v24, 1  ;;  %v3596_v46 = vmax.f32 %v3594_v19, %v3595_v61  ;;  %v3624_v51 = vrot.slane %v3623_v15, 4  ;;  %v3630_v22 = vmax.f32 %v3117_v56, %v3121_v44 }
 0x1d6   :  { %v3126_v47 = vpop.f32.mrf.mxu1  ;;  %v3015_v50 = vpop.f32.mrf.mxu0  ;;  %v3014_v4 = vadd.f32 %v3013_v59, %v7475_v0  ;;  %v3125_v34 = vadd.f32 %v3124_v30, %v3012_v32  ;;  %v7616_v32 = vadd.f32 %v7554_v53, %v7343_v10 }
 0x1d7   :  { %v3597_v20 = vrot.slane %v3596_v46, 1  ;;  %v3625_v9 = vmax.f32 %v3623_v15, %v3624_v51  ;;  %v3631_v52 = vrot.slane %v3630_v22, 4  ;;  %v3591_v12 = vmax.f32 %v3589_v24, %v3590_v31 }
 0x1d8   :  { %v3016_v36 = vadd.f32 %v3015_v50, %v7487_v1  ;;  %v3128_v63 = vpop.f32.mrf.mxu1  ;;  %v3017_v3 = vpop.f32.mrf.mxu0  ;;  %v3127_v0 = vadd.f32 %v3126_v47, %v3014_v4 }
 0x1d9   :  { %v3626_v38 = vrot.slane %v3625_v9, 2  ;;  %v3632_v40 = vmax.f32 %v3630_v22, %v3631_v52  ;;  %v3598_v7 = vmax.f32 %v3596_v46, %v3597_v20  ;;  %v3018_v5 = vadd.f32 %v3017_v3, %v7500_v33 }
 0x1da   :  { %v3129_v11 = vadd.f32 %v3128_v63, %v3016_v36  ;;  %v3130_v19 = vpop.f32.mrf.mxu1  ;;  %v3021_v26 = vpop.f32.mrf.mxu0  ;;  %v3870_v21 = vmax.f32 %v3591_v12, 0.0 }
 0x1db   :  { %v3627_v23 = vmax.f32 %v3625_v9, %v3626_v38  ;;  %v3633_v56 = vrot.slane %v3632_v40, 2  ;;  %v3131_v1 = vadd.f32 %v3130_v19, %v3018_v5  ;;  %v3022_v24 = vadd.f32 %v3021_v26, %v7508_v37 }
 0x1dc   :  { %v3660_v6 = vmax.f32 %v3125_v34, %v3129_v11  ;;  %v3134_v61 = vpop.f32.mrf.mxu1  ;;  %v3023_v15 = vpop.f32.mrf.mxu0  ;;  %v3871_v30 = vmax.f32 %v3598_v7, 0.0  ;;  %v3910_v20 = vpack.c.bf16 %v3870_v21, %v3870_v21 }
 0x1dd   :  { %v3628_v44 = vrot.slane %v3627_v23, 1  ;;  %v3634_v59 = vmax.f32 %v3632_v40, %v3633_v56  ;;  %v3667_v46 = vmax.f32 %v3127_v0, %v3131_v1  ;;  %v3024_v33 = vadd.f32 %v3023_v15, %v7516_v16 }
 0x1de   :  { %v3661_v31 = vrot.slane %v3660_v6, 4  ;;  %v3136_v51 = vpop.f32.mrf.mxu1  ;;  %v3025_v22 = vpop.f32.mrf.mxu0  ;;  %v3135_v52 = vadd.f32 %v3134_v61, %v3022_v24  ;;  %v3911_v28 = vpack.c.bf16 %v3871_v30, %v3871_v30  ;;  %v4069_v26 = vunpack.c.l.b16 %v3910_v20 }
 0x1df   :  { %v3629_v47 = vmax.f32 %v3627_v23, %v3628_v44  ;;  %v3635_v50 = vrot.slane %v3634_v59, 1  ;;  %v3026_v37 = vadd.f32 %v3025_v22, %v7519_v14  ;;  %v3668_v27 = vrot.slane %v3667_v46, 4 }
 0x1e0   :  { %v3662_v9 = vmax.f32 %v3660_v6, %v3661_v31  ;;  %v3138_v4 = vpop.f32.mrf.mxu1  ;;  %v3027_v12 = vpop.f32.mrf.mxu0  ;;  %v3137_v53 = vadd.f32 %v3136_v51, %v3024_v33  ;;  %v4070_v15 = vunpack.c.l.b16 %v3911_v28 }
 0x1e1   :  { %v3875_v36 = vmax.f32 %v3629_v47, 0.0  ;;  %v3636_v63 = vmax.f32 %v3634_v59, %v3635_v50  ;;  %v3139_v3 = vadd.f32 %v3138_v4, %v3026_v37  ;;  %v3028_v16 = vadd.f32 %v3027_v12, %v7523_v54 }
 0x1e2   :  { %v3663_v38 = vrot.slane %v3662_v9, 2  ;;  %v3669_v40 = vmax.f32 %v3667_v46, %v3668_v27  ;;  %v3140_v7 = vpop.f32.mrf.mxu1  ;;  %v3031_v34 = vpop.f32.mrf.mxu0 }
 0x1e3   :  { %v3915_v11 = vpack.c.bf16 %v3875_v36, %v3875_v36  ;;  %v3876_v5 = vmax.f32 %v3636_v63, 0.0  ;;  %v3697_v14 = vmax.f32 %v3135_v52, %v3139_v3  ;;  %v3141_v19 = vadd.f32 %v3140_v7, %v3028_v16 }
 0x1e4   :  { %v3664_v23 = vmax.f32 %v3662_v9, %v3663_v38  ;;  %v3670_v56 = vrot.slane %v3669_v40, 2  ;;  %v3032_v0 = vadd.f32 %v3031_v34, %v7528_v35  ;;  %v3144_v21 = vpop.f32.mrf.mxu1  ;;  %v3033_v6 = vpop.f32.mrf.mxu0 }
 0x1e5   :  { %v4074_v1 = vunpack.c.l.b16 %v3915_v11  ;;  %v3916_v24 = vpack.c.bf16 %v3876_v5, %v3876_v5  ;;  %v3698_v54 = vrot.slane %v3697_v14, 4  ;;  %v3704_v61 = vmax.f32 %v3137_v53, %v3141_v19 }
 0x1e6   :  { %v3665_v44 = vrot.slane %v3664_v23, 1  ;;  %v3671_v59 = vmax.f32 %v3669_v40, %v3670_v56  ;;  %v3034_v30 = vadd.f32 %v3033_v6, %v7533_v13  ;;  %v3146_v31 = vpop.f32.mrf.mxu1  ;;  %v3035_v46 = vpop.f32.mrf.mxu0  ;;  %v3145_v37 = vadd.f32 %v3144_v21, %v3032_v0 }
 0x1e7   :  { %v4128_v33 = vsel %vm4107_vm2, %v4074_v1, %v4069_v26  ;;  %v4075_v51 = vunpack.c.l.b16 %v3916_v24  ;;  %v3699_v22 = vmax.f32 %v3697_v14, %v3698_v54  ;;  %v3705_v47 = vrot.slane %v3704_v61, 4 }
 0x1e8   :  { %v3666_v50 = vmax.f32 %v3664_v23, %v3665_v44  ;;  %v3672_v35 = vrot.slane %v3671_v59, 1  ;;  %v3036_v20 = vadd.f32 %v3035_v46, %v7538_v57  ;;  %v3148_v9 = vpop.f32.mrf.mxu1  ;;  %v3037_v27 = vpop.f32.mrf.mxu0  ;;  %v3147_v3 = vadd.f32 %v3146_v31, %v3034_v30 }
 0x1e9   :  { %v4135_v52 = vsel %vm4107_vm2, %v4075_v51, %v4070_v15  ;;  %v3700_v4 = vrot.slane %v3699_v22, 2  ;;  %v3706_v12 = vmax.f32 %v3704_v61, %v3705_v47  ;;  %v3038_v36 = vadd.f32 %v3037_v27, %v2925_v48 }
 0x1ea   :  { %v3880_v13 = vmax.f32 %v3666_v50, 0.0  ;;  %v3673_v63 = vmax.f32 %v3671_v59, %v3672_v35  ;;  %v3149_v16 = vadd.f32 %v3148_v9, %v3036_v20  ;;  %v3150_v28 = vpop.f32.mrf.mxu1  ;;  %v3041_v38 = vpop.f32.mrf.mxu0  ;;  %v2935_v57 = vadd.f32 %v7558_v62, %v7616_v32 }
 0x1eb   :  { %v3701_v40 = vmax.f32 %v3699_v22, %v3700_v4  ;;  %v3707_v53 = vrot.slane %v3706_v12, 2  ;;  %v3151_v7 = vadd.f32 %v3150_v28, %v3038_v36  ;;  %v3042_v34 = vadd.f32 %v3041_v38, %v7546_v39 }
 0x1ec   :  { %v3920_v11 = vpack.c.bf16 %v3880_v13, %v3880_v13  ;;  %v3881_v5 = vmax.f32 %v3673_v63, 0.0  ;;  %v3734_v14 = vmax.f32 %v3145_v37, %v3149_v16  ;;  %v3154_v19 = vpop.f32.mrf.mxu1  ;;  %v3043_v26 = vpop.f32.mrf.mxu0  ;;  %v2840_v48 = vadd.f32 %v7585_v41, %v7327_v17 }
 0x1ed   :  { %v3702_v23 = vrot.slane %v3701_v40, 1  ;;  %v3708_v56 = vmax.f32 %v3706_v12, %v3707_v53  ;;  %v3741_v0 = vmax.f32 %v3147_v3, %v3151_v7  ;;  %v3155_v24 = vadd.f32 %v3154_v19, %v3042_v34 }
 0x1ee   :  { %v4079_v21 = vunpack.c.l.b16 %v3920_v11  ;;  %v3921_v6 = vpack.c.bf16 %v3881_v5, %v3881_v5  ;;  %v3735_v1 = vrot.slane %v3734_v14, 4  ;;  %v3156_v54 = vpop.f32.mrf.mxu1  ;;  %v3045_v39 = vpop.f32.mrf.mxu0  ;;  %v3044_v17 = vadd.f32 %v3043_v26, %v7551_v29 }
 0x1ef   :  { %v3703_v61 = vmax.f32 %v3701_v40, %v3702_v23  ;;  %v3709_v15 = vrot.slane %v3708_v56, 1  ;;  %v3742_v62 = vrot.slane %v3741_v0, 4  ;;  %v3046_v32 = vadd.f32 %v3045_v39, %v7556_v8 }
 0x1f0   :  { %v4129_v44 = vsel %vm4109_vm3, %v4079_v21, %v4128_v33  ;;  %v4080_v59 = vunpack.c.l.b16 %v3921_v6  ;;  %v3736_v30 = vmax.f32 %v3734_v14, %v3735_v1  ;;  %v3158_v41 = vpop.f32.mrf.mxu1  ;;  %v3047_v31 = vpop.f32.mrf.mxu0  ;;  %v450_v8 = vsub.s32 4, %v7943_v42 }
 0x1f1   :  { %v3885_v46 = vmax.f32 %v3703_v61, 0.0  ;;  %v3710_v51 = vmax.f32 %v3708_v56, %v3709_v15  ;;  %v3743_v22 = vmax.f32 %v3741_v0, %v3742_v62  ;;  %v3159_v47 = vadd.f32 %v3158_v41, %v3046_v32 }
 0x1f2   :  { %v4136_v50 = vsel %vm4109_vm3, %v4080_v59, %v4135_v52  ;;  %v3737_v35 = vrot.slane %v3736_v30, 2  ;;  %v3048_v37 = vadd.f32 %v3047_v31, %v2935_v57  ;;  %v3160_v20 = vpop.f32.mrf.mxu1  ;;  %v3051_v9 = vpop.f32.mrf.mxu0  ;;  %v2953_v29 = vadd.f32 %v7591_v58, %v2840_v48 }
 0x1f3   :  { %v3925_v27 = vpack.c.bf16 %v3885_v46, %v3885_v46  ;;  %v3886_v33 = vmax.f32 %v3710_v51, 0.0  ;;  %v3744_v4 = vrot.slane %v3743_v22, 2  ;;  %v3771_v12 = vmax.f32 %v3155_v24, %v3159_v47 }
 0x1f4   :  { %v3738_v36 = vmax.f32 %v3736_v30, %v3737_v35  ;;  %v3157_v13 = vadd.f32 %v3156_v54, %v3044_v17  ;;  %v3161_v63 = vadd.f32 %v3160_v20, %v3048_v37  ;;  %v3164_v3 = vpop.f32.mrf.mxu1  ;;  %v3053_v16 = vpop.f32.mrf.mxu0  ;;  %v3052_v34 = vadd.f32 %v3051_v9, %v7564_v2 }
 0x1f5   :  { %v4084_v28 = vunpack.c.l.b16 %v3925_v27  ;;  %v3926_v38 = vpack.c.bf16 %v3886_v33, %v3886_v33  ;;  %v3745_v52 = vmax.f32 %v3743_v22, %v3744_v4  ;;  %v3772_v40 = vrot.slane %v3771_v12, 4 }
 0x1f6   :  { %v3739_v53 = vrot.slane %v3738_v36, 1  ;;  %v3778_v7 = vmax.f32 %v3157_v13, %v3161_v63  ;;  %v3054_v57 = vadd.f32 %v3053_v16, %v7569_v55  ;;  %v3166_v11 = vpop.f32.mrf.mxu1  ;;  %v3055_v5 = vpop.f32.mrf.mxu0  ;;  %v2842_v48 = vadd.f32 %v7593_v45, %v7343_v10 }
 0x1f7   :  { %v4130_v14 = vsel %vm4111_vm4, %v4084_v28, %v4129_v44  ;;  %v4085_v58 = vunpack.c.l.b16 %v3926_v38  ;;  %v3746_v19 = vrot.slane %v3745_v52, 1  ;;  %v3773_v26 = vmax.f32 %v3771_v12, %v3772_v40 }
 0x1f8   :  { %v3740_v23 = vmax.f32 %v3738_v36, %v3739_v53  ;;  %v3779_v56 = vrot.slane %v3778_v7, 4  ;;  %v3056_v0 = vadd.f32 %v3055_v5, %v7572_v60  ;;  %v3168_v21 = vpop.f32.mrf.mxu1  ;;  %v3057_v6 = vpop.f32.mrf.mxu0  ;;  %v3165_v61 = vadd.f32 %v3164_v3, %v3052_v34 }
 0x1f9   :  { %v3747_v1 = vmax.f32 %v3745_v52, %v3746_v19  ;;  %v3774_v2 = vrot.slane %v3773_v26, 2  ;;  %v3058_v55 = vadd.f32 %v3057_v6, %v7578_v18  ;;  %v4137_v24 = vsel %vm4111_vm4, %v4085_v58, %v4136_v50 }
 0x1fa   :  { %v3890_v54 = vmax.f32 %v3740_v23, 0.0  ;;  %v3780_v39 = vmax.f32 %v3778_v7, %v3779_v56  ;;  %v3169_v15 = vadd.f32 %v3168_v21, %v3056_v0  ;;  %v3170_v62 = vpop.f32.mrf.mxu1  ;;  %v3061_v32 = vpop.f32.mrf.mxu0  ;;  %v3167_v45 = vadd.f32 %v3166_v11, %v3054_v57  ;;  %v5782_v23 = vld [vmem:[%s7823_s2] sm:$0x1f] }
 0x1fb   :  { %v3891_v44 = vmax.f32 %v3747_v1, 0.0  ;;  %v3775_v10 = vmax.f32 %v3773_v26, %v3774_v2  ;;  %v3171_v59 = vadd.f32 %v3170_v62, %v3058_v55  ;;  %v3062_v41 = vadd.f32 %v3061_v32, %v7582_v49 }
 0x1fc   :  { %v3930_v30 = vpack.c.bf16 %v3890_v54, %v3890_v54  ;;  %v3781_v60 = vrot.slane %v3780_v39, 2  ;;  %v3808_v17 = vmax.f32 %v3165_v61, %v3169_v15  ;;  %v3174_v31 = vpop.f32.mrf.mxu1  ;;  %v3063_v46 = vpop.f32.mrf.mxu0  ;;  %v2955_v18 = vadd.f32 %v7595_v25, %v2842_v48 }
 0x1fd   :  { %v3931_v51 = vpack.c.bf16 %v3891_v44, %v3891_v44  ;;  %v3776_v22 = vrot.slane %v3775_v10, 1  ;;  %v3815_v47 = vmax.f32 %v3167_v45, %v3171_v59  ;;  %v3064_v20 = vadd.f32 %v3063_v46, %v7587_v43 }
 0x1fe   :  { %v4089_v50 = vunpack.c.l.b16 %v3930_v30  ;;  %v3782_v35 = vmax.f32 %v3780_v39, %v3781_v60  ;;  %v3809_v37 = vrot.slane %v3808_v17, 4  ;;  %v3176_v9 = vpop.f32.mrf.mxu1  ;;  %v3065_v27 = vpop.f32.mrf.mxu0  ;;  %v3175_v3 = vadd.f32 %v3174_v31, %v3062_v41 }
 0x1ff   :  { %v4090_v33 = vunpack.c.l.b16 %v3931_v51  ;;  %v3777_v4 = vmax.f32 %v3775_v10, %v3776_v22  ;;  %v3816_v12 = vrot.slane %v3815_v47, 4  ;;  %v3066_v36 = vadd.f32 %v3065_v27, %v2953_v29 }
 0x200   :  { %v4131_v49 = vsel %vm4113_vm5, %v4089_v50, %v4130_v14  ;;  %v3783_v13 = vrot.slane %v3782_v35, 1  ;;  %v3810_v63 = vmax.f32 %v3808_v17, %v3809_v37  ;;  %v3178_v25 = vpop.f32.mrf.mxu1  ;;  %v3067_v16 = vpop.f32.mrf.mxu0  ;;  %v3177_v43 = vadd.f32 %v3176_v9, %v3064_v20 }
 0x201   :  { %v3895_v28 = vmax.f32 %v3777_v4, 0.0  ;;  %v3817_v38 = vmax.f32 %v3815_v47, %v3816_v12  ;;  %v3179_v52 = vadd.f32 %v3178_v25, %v3066_v36  ;;  %v3068_v40 = vadd.f32 %v3067_v16, %v2955_v18 }
 0x202   :  { %v3784_v53 = vmax.f32 %v3782_v35, %v3783_v13  ;;  %v3811_v7 = vrot.slane %v3810_v63, 2  ;;  %v3180_v34 = vpop.f32.mrf.mxu1  ;;  %v5067_v57 = vpop.f32.mrf.mxu0  ;;  %v4138_v11 = vsel %vm4113_vm5, %v4090_v33, %v4137_v24  ;;  %v7654_v56 = vrot.slane %v5782_v23, %v450_v8 }
 0x203   :  { %v3935_v5 = vpack.c.bf16 %v3895_v28, %v3895_v28  ;;  %v3818_v29 = vrot.slane %v3817_v38, 2  ;;  %v3845_v58 = vmax.f32 %v3175_v3, %v3179_v52  ;;  %v3181_v14 = vadd.f32 %v3180_v34, %v3068_v40 }
 0x204   :  { %v3896_v19 = vmax.f32 %v3784_v53, 0.0  ;;  %v3812_v26 = vmax.f32 %v3810_v63, %v3811_v7  ;;  %v5131_v48 = vpop.f32.mrf.mxu1  ;;  %v5068_v0 = vpop.f32.mrf.mxu0 }
 0x205   :  { %v4094_v21 = vunpack.c.l.b16 %v3935_v5  ;;  %v3819_v6 = vmax.f32 %v3817_v38, %v3818_v29  ;;  %v3846_v1 = vrot.slane %v3845_v58, 4  ;;  %v3852_v2 = vmax.f32 %v3177_v43, %v3181_v14 }
 0x206   :  { %v3936_v55 = vpack.c.bf16 %v3896_v19, %v3896_v19  ;;  %v3813_v24 = vrot.slane %v3812_v26, 1  ;;  %v5069_v54 = vadd.f32 %v5068_v0, %v5067_v57  ;;  %v5132_v39 = vpop.f32.mrf.mxu1  ;;  %v5070_v61 = vpop.f32.mrf.mxu0 }
 0x207   :  { %v4132_v15 = vsel %vm4115_vm6, %v4094_v21, %v4131_v49  ;;  %v3820_v62 = vrot.slane %v3819_v6, 1  ;;  %v3847_v32 = vmax.f32 %v3845_v58, %v3846_v1  ;;  %v3853_v44 = vrot.slane %v3852_v2, 4  ;;  %v5765_v58 = vld [vmem:[%s7824_s3 + $0x118] sm:$0xff]  }
 0x208   :  { %v4095_v10 = vunpack.c.l.b16 %v3936_v55  ;;  %v3814_v45 = vmax.f32 %v3812_v26, %v3813_v24  ;;  %v3218_v42 = vadd.f32 %v5069_v54, %v7654_v56  ;;  %v5133_v8 = vadd.f32 %v5132_v39, %v5131_v48  ;;  %v5134_v59 = vpop.f32.mrf.mxu1  ;;  %v5071_v30 = vpop.f32.mrf.mxu0 }
 0x209   :  { %v3821_v60 = vmax.f32 %v3819_v6, %v3820_v62  ;;  %v3848_v17 = vrot.slane %v3847_v32, 2  ;;  %v3854_v41 = vmax.f32 %v3852_v2, %v3853_v44  ;;  %v5072_v31 = vadd.f32 %v5071_v30, %v5070_v61  ;;  %v5766_v61 = vld [vmem:[%s7824_s3 + $0x110] sm:$0xff]  }
 0x20a   :  { %v3900_v46 = vmax.f32 %v3814_v45, 0.0  ;;  %v7658_v18 = vadd.f32 %v5133_v8, %v3218_v42  ;;  %v5135_v51 = vpop.f32.mrf.mxu1  ;;  %v5073_v22 = vpop.f32.mrf.mxu0  ;;  %v4139_v47 = vsel %vm4115_vm6, %v4095_v10, %v4138_v11  ;;  %v5784_v6 = vmov 0.0  }
 0x20b   :  { %v3901_v50 = vmax.f32 %v3821_v60, 0.0  ;;  %v3849_v35 = vmax.f32 %v3847_v32, %v3848_v17  ;;  %v3855_v37 = vrot.slane %v3854_v41, 2  ;;  %v3221_v20 = vadd.f32 %v5072_v31, %v7654_v56  ;;  %5301 = vmatprep.subr.bf16.mxu0 %v5784_v6  ;;  %5313 = vmatprep.subr.bf16.mxu1 %v5784_v6  ;;  %v5767_v17 = vld [vmem:[%s7824_s3 + $0x108] sm:$0xff]  }
 0x20c   :  { %v3940_v9 = vpack.c.bf16 %v3900_v46, %v3900_v46  ;;  %v5136_v27 = vadd.f32 %v5135_v51, %v5134_v59  ;;  %v5137_v33 = vpop.f32.mrf.mxu1  ;;  %v5074_v4 = vpop.f32.mrf.mxu0  ;;  %5302 = vmatpush3.bf16.msra.mxu0 %v5765_v58  ;;  %5309 = vmatprep.mubr.msk.bf16.mxu0 %vm5785_vm9, %v5784_v6 }
 0x20d   :  { %v3941_v12 = vpack.c.bf16 %v3901_v50, %v3901_v50  ;;  %v3850_v36 = vrot.slane %v3849_v35, 1  ;;  %v3856_v49 = vmax.f32 %v3854_v41, %v3855_v37  ;;  %v5075_v13 = vadd.f32 %v5074_v4, %v5073_v22  ;;  %5303 = vmatprep.subr.bf16.mxu0 %v5784_v6  ;;  %v5768_v37 = vld [vmem:[%s7824_s3 + $0x100] sm:$0xff]  }
 0x20e   :  { %v4099_v63 = vunpack.c.l.b16 %v3940_v9  ;;  %v7662_v3 = vadd.f32 %v5136_v27, %v3221_v20  ;;  %v5138_v25 = vpop.f32.mrf.mxu1  ;;  %v5076_v16 = vpop.f32.mrf.mxu0 }
 0x20f   :  { %v4100_v28 = vunpack.c.l.b16 %v3941_v12  ;;  %v3851_v38 = vmax.f32 %v3849_v35, %v3850_v36  ;;  %v3857_v52 = vrot.slane %v3856_v49, 1  ;;  %v3226_v40 = vadd.f32 %v5075_v13, %v7654_v56 }
 0x210   :  { %v4133_v53 = vsel %vm4117_vm7, %v4099_v63, %v4132_v15  ;;  %v5139_v7 = vadd.f32 %v5138_v25, %v5137_v33  ;;  %v5140_v43 = vpop.f32.mrf.mxu1  ;;  %v5077_v34 = vpop.f32.mrf.mxu0  ;;  %5304 = vmatpush3.bf16.msra.mxu0 %v5766_v61 }
 0x211   :  { %v3905_v57 = vmax.f32 %v3851_v38, 0.0  ;;  %v3858_v11 = vmax.f32 %v3856_v49, %v3857_v52  ;;  %v5078_v5 = vadd.f32 %v5077_v34, %v5076_v16  ;;  %v4140_v29 = vsel %vm4117_vm7, %v4100_v28, %v4139_v47  ;;  %5305 = vmatprep.subr.bf16.mxu0 %v5784_v6 }
 0x212   :  { %v7670_v14 = vadd.f32 %v5139_v7, %v3226_v40  ;;  %v5141_v19 = vpop.f32.mrf.mxu1  ;;  %v5079_v26 = vpop.f32.mrf.mxu0 }
 0x213   :  { %v3945_v48 = vpack.c.bf16 %v3905_v57, %v3905_v57  ;;  %v3906_v23 = vmax.f32 %v3858_v11, 0.0  ;;  %v3229_v0 = vadd.f32 %v5078_v5, %v7654_v56  ;;  %v5142_v21 = vadd.f32 %v5141_v19, %v5140_v43 }
 0x214   :  { %v5143_v1 = vpop.f32.mrf.mxu1  ;;  %v5080_v2 = vpop.f32.mrf.mxu0  ;;  %5306 = vmatpush3.bf16.msra.mxu0 %v5767_v17 }
 0x215   :  { %v4104_v55 = vunpack.c.l.b16 %v3945_v48  ;;  %v7675_v24 = vadd.f32 %v5142_v21, %v3229_v0  ;;  %v5081_v54 = vadd.f32 %v5080_v2, %v5079_v26  ;;  %v3946_v39 = vpack.c.bf16 %v3906_v23, %v3906_v23  ;;  %5307 = vmatprep.subr.bf16.mxu0 %v5784_v6 }
 0x216   :  { %v5144_v15 = vpop.f32.mrf.mxu1  ;;  %v5082_v62 = vpop.f32.mrf.mxu0 }
 0x217   :  { %v4134_v32 = vsel %vm4119_vm8, %v4104_v55, %v4133_v53  ;;  %v3234_v44 = vadd.f32 %v5081_v54, %v7654_v56  ;;  %v5145_v10 = vadd.f32 %v5144_v15, %v5143_v1  ;;  %v4105_v45 = vunpack.c.l.b16 %v3946_v39 }
 0x218   :  { %v5146_v42 = vpop.f32.mrf.mxu1  ;;  %v5083_v8 = vpop.f32.mrf.mxu0  ;;  %v4151_v51 = vpack.c.b16 %v4134_v32, %v4134_v32  ;;  %5308 = vmatpush3.bf16.msra.mxu0 %v5768_v37 }
 0x219   :  { %v7683_v59 = vadd.f32 %v5145_v10, %v3234_v44  ;;  %v5084_v30 = vadd.f32 %v5083_v8, %v5082_v62  ;;  %v4141_v60 = vsel %vm4119_vm8, %v4105_v45, %v4140_v29 }
 0x21a   :  { %v5147_v41 = vpop.f32.mrf.mxu1  ;;  %v5085_v31 = vpop.f32.mrf.mxu0  ;;  %v4152_v46 = vpack.c.b16 %v4141_v60, %v4141_v60 }
 0x21b   :  { %v3237_v22 = vadd.f32 %v5084_v30, %v7654_v56  ;;  %v5148_v47 = vadd.f32 %v5147_v41, %v5146_v42 }
 0x21c   :  { %v5149_v50 = vpop.f32.mrf.mxu1  ;;  %v5086_v35 = vpop.f32.mrf.mxu0  ;;  %4449 = vmatprep.mubr.bf16.mxu1 %v4152_v46 }
 0x21d   :  { %v7695_v20 = vadd.f32 %v5148_v47, %v3237_v22  ;;  %v5087_v9 = vadd.f32 %v5086_v35, %v5085_v31  ;;  %4450 = vmatmul.mubr.bf16.vlgmr.msra.gmra.mxu1 %v4151_v51 }
 0x21e   :  { %v5150_v27 = vpop.f32.mrf.mxu1  ;;  %v5088_v33 = vpop.f32.mrf.mxu0  ;;  %5329 = vmatprep.mubr.msk.bf16.mxu1 %vm5785_vm9, %v5784_v6 }
 0x21f   :  { %v3242_v4 = vadd.f32 %v5087_v9, %v7654_v56  ;;  %v5151_v12 = vadd.f32 %v5150_v27, %v5149_v50 }
 0x220   :  { %v5152_v36 = vpop.f32.mrf.mxu1  ;;  %v5089_v49 = vpop.f32.mrf.mxu0 }
 0x221   :  { %v7700_v13 = vadd.f32 %v5151_v12, %v3242_v4  ;;  %v5090_v63 = vadd.f32 %v5089_v49, %v5088_v33 }
 0x222   :  { %v5153_v25 = vpop.f32.mrf.mxu1  ;;  %v5091_v16 = vpop.f32.mrf.mxu0 }
 0x223   :  { %v3245_v28 = vadd.f32 %v5090_v63, %v7654_v56  ;;  %v5154_v38 = vadd.f32 %v5153_v25, %v5152_v36 }
 0x224   :  { %v5155_v52 = vpop.f32.mrf.mxu1  ;;  %v5092_v40 = vpop.f32.mrf.mxu0 }
 0x225   :  { %v7703_v53 = vadd.f32 %v5154_v38, %v3245_v28  ;;  %v5093_v7 = vadd.f32 %v5092_v40, %v5091_v16 }
 0x226   :  { %v5156_v43 = vpop.f32.mrf.mxu1  ;;  %v5094_v34 = vpop.f32.mrf.mxu0 }
 0x227   :  { %v3250_v57 = vadd.f32 %v5093_v7, %v7654_v56  ;;  %v5157_v11 = vadd.f32 %v5156_v43, %v5155_v52 }
 0x228   :  { %v5158_v5 = vpop.f32.mrf.mxu1  ;;  %v5095_v29 = vpop.f32.mrf.mxu0 }
 0x229   :  { %v7706_v58 = vadd.f32 %v5157_v11, %v3250_v57  ;;  %v5096_v19 = vadd.f32 %v5095_v29, %v5094_v34 }
 0x22a   :  { %v5159_v26 = vpop.f32.mrf.mxu1  ;;  %v5097_v48 = vpop.f32.mrf.mxu0 }
 0x22b   :  { %v3253_v23 = vadd.f32 %v5096_v19, %v7654_v56  ;;  %v5160_v0 = vadd.f32 %v5159_v26, %v5158_v5 }
 0x22c   :  { %v5161_v21 = vpop.f32.mrf.mxu1  ;;  %v5098_v1 = vpop.f32.mrf.mxu0 }
 0x22d   :  { %v7709_v2 = vadd.f32 %v5160_v0, %v3253_v23  ;;  %v5099_v55 = vadd.f32 %v5098_v1, %v5097_v48 }
 0x22e   :  { %v5162_v54 = vpop.f32.mrf.mxu1  ;;  %v5100_v39 = vpop.f32.mrf.mxu0 }
 0x22f   :  { %v3258_v61 = vadd.f32 %v5099_v55, %v7654_v56  ;;  %v5163_v15 = vadd.f32 %v5162_v54, %v5161_v21 }
 0x230   :  { %v5164_v62 = vpop.f32.mrf.mxu1  ;;  %v5101_v32 = vpop.f32.mrf.mxu0 }
 0x231   :  { %v7712_v44 = vadd.f32 %v5163_v15, %v3258_v61  ;;  %v5102_v10 = vadd.f32 %v5101_v32, %v5100_v39 }
 0x232   :  { %v5165_v45 = vpop.f32.mrf.mxu1  ;;  %v5103_v42 = vpop.f32.mrf.mxu0 }
 0x233   :  { %v3261_v8 = vadd.f32 %v5102_v10, %v7654_v56  ;;  %v5166_v30 = vadd.f32 %v5165_v45, %v5164_v62 }
 0x234   :  { %v5167_v60 = vpop.f32.mrf.mxu1  ;;  %v5104_v17 = vpop.f32.mrf.mxu0 }
 0x235   :  { %v7715_v41 = vadd.f32 %v5166_v30, %v3261_v8  ;;  %v5105_v31 = vadd.f32 %v5104_v17, %v5103_v42 }
 0x236   :  { %v5168_v46 = vpop.f32.mrf.mxu1  ;;  %v5106_v51 = vpop.f32.mrf.mxu0 }
 0x237   :  { %v3266_v22 = vadd.f32 %v5105_v31, %v7654_v56  ;;  %v5169_v47 = vadd.f32 %v5168_v46, %v5167_v60 }
 0x238   :  { %v5170_v50 = vpop.f32.mrf.mxu1  ;;  %v5107_v35 = vpop.f32.mrf.mxu0 }
 0x239   :  { %v7718_v37 = vadd.f32 %v5169_v47, %v3266_v22  ;;  %v5108_v9 = vadd.f32 %v5107_v35, %v5106_v51 }
 0x23a   :  { %v5171_v27 = vpop.f32.mrf.mxu1  ;;  %v5109_v33 = vpop.f32.mrf.mxu0 }
 0x23b   :  { %v3269_v4 = vadd.f32 %v5108_v9, %v7654_v56  ;;  %v5172_v12 = vadd.f32 %v5171_v27, %v5170_v50 }
 0x23c   :  { %v5173_v36 = vpop.f32.mrf.mxu1  ;;  %v5110_v49 = vpop.f32.mrf.mxu0 }
 0x23d   :  { %v7721_v63 = vadd.f32 %v5172_v12, %v3269_v4  ;;  %v5111_v25 = vadd.f32 %v5110_v49, %v5109_v33 }
 0x23e   :  { %v5174_v16 = vpop.f32.mrf.mxu1  ;;  %v7723_v28 = vpop.f32.mrf.mxu0 }
 0x23f   :  { %v3274_v38 = vadd.f32 %v5111_v25, %v7654_v56  ;;  %v5175_v52 = vadd.f32 %v5174_v16, %v5173_v36 }
 0x240   :  { %v7726_v40 = vpop.f32.mrf.mxu1  ;;  %v7728_v7 = vpop.f32.mrf.mxu0 }
 0x241   :  { %v7730_v43 = vadd.f32 %v5175_v52, %v3274_v38 }
 0x242   :  { %v7732_v34 = vpop.f32.mrf.mxu1  ;;  %v5195_v57 = vpop.f32.mrf.mxu0 }
 0x244   :  { %v3508_v11 = vpop.f32.mrf.mxu1  ;;  %v5196_v5 = vpop.f32.mrf.mxu0 }
 0x245   :  { %v5197_v29 = vadd.f32 %v5196_v5, %v5195_v57 }
 0x246   :  { %v3510_v19 = vpop.f32.mrf.mxu1  ;;  %v5198_v26 = vpop.f32.mrf.mxu0 }
 0x247   :  { %v3412_v48 = vadd.f32 %v5197_v29, %v7658_v18 }
 0x248   :  { %v3511_v23 = vpop.f32.mrf.mxu1  ;;  %v5199_v0 = vpop.f32.mrf.mxu0 }
 0x249   :  { %v5200_v21 = vadd.f32 %v5199_v0, %v5198_v26  ;;  %v3509_v54 = vadd.f32 %v3508_v11, %v3412_v48 }
 0x24a   :  { %v3513_v1 = vpop.f32.mrf.mxu1  ;;  %v5201_v55 = vpop.f32.mrf.mxu0 }
 0x24b   :  { %v3415_v39 = vadd.f32 %v5200_v21, %v7662_v3  ;;  %v3600_v42 = vsel %vm3599_vm10, %v3509_v54, -inf }
 0x24c   :  { %v3516_v61 = vpop.f32.mrf.mxu1  ;;  %v5202_v15 = vpop.f32.mrf.mxu0 }
 0x24d   :  { %v3512_v62 = vadd.f32 %v3511_v23, %v3415_v39  ;;  %v5203_v32 = vadd.f32 %v5202_v15, %v5201_v55 }
 0x24e   :  { %v3518_v10 = vpop.f32.mrf.mxu1  ;;  %v5204_v45 = vpop.f32.mrf.mxu0 }
 0x24f   :  { %v3601_v8 = vsel %vm3599_vm10, %v3512_v62, -inf  ;;  %v3420_v18 = vadd.f32 %v5203_v32, %v7670_v14 }
 0x250   :  { %v3602_v30 = vmax.f32 %v3600_v42, %v3601_v8  ;;  %v3519_v60 = vpop.f32.mrf.mxu1  ;;  %v5205_v17 = vpop.f32.mrf.mxu0 }
 0x251   :  { %v5206_v31 = vadd.f32 %v5205_v17, %v5204_v45  ;;  %v3517_v22 = vadd.f32 %v3516_v61, %v3420_v18 }
 0x252   :  { %v3603_v46 = vrot.slane %v3602_v30, 4  ;;  %v3521_v51 = vpop.f32.mrf.mxu1  ;;  %v5207_v3 = vpop.f32.mrf.mxu0 }
 0x253   :  { %v3423_v47 = vadd.f32 %v5206_v31, %v7675_v24  ;;  %v3637_v14 = vsel %vm3599_vm10, %v3517_v22, -inf }
 0x254   :  { %v3604_v50 = vmax.f32 %v3602_v30, %v3603_v46  ;;  %v3524_v35 = vpop.f32.mrf.mxu1  ;;  %v5208_v9 = vpop.f32.mrf.mxu0 }
 0x255   :  { %v3520_v27 = vadd.f32 %v3519_v60, %v3423_v47  ;;  %v5209_v33 = vadd.f32 %v5208_v9, %v5207_v3 }
 0x256   :  { %v3605_v4 = vrot.slane %v3604_v50, 2  ;;  %v3526_v12 = vpop.f32.mrf.mxu1  ;;  %v5210_v36 = vpop.f32.mrf.mxu0 }
 0x257   :  { %v3638_v49 = vsel %vm3599_vm10, %v3520_v27, -inf  ;;  %v3428_v25 = vadd.f32 %v5209_v33, %v7683_v59  ;;  %v5770_v27 = vld [vmem:[%s7825_s5 + $0x30] sm:$0xff]  }
 0x258   :  { %v3606_v16 = vmax.f32 %v3604_v50, %v3605_v4  ;;  %v3639_v38 = vmax.f32 %v3637_v14, %v3638_v49  ;;  %v3527_v52 = vpop.f32.mrf.mxu1  ;;  %v5211_v57 = vpop.f32.mrf.mxu0 }
 0x259   :  { %v5212_v11 = vadd.f32 %v5211_v57, %v5210_v36  ;;  %v3525_v26 = vadd.f32 %v3524_v35, %v3428_v25 }
 0x25a   :  { %v3607_v24 = vrot.slane %v3606_v16, 1  ;;  %v3640_v5 = vrot.slane %v3639_v38, 4  ;;  %v3529_v29 = vpop.f32.mrf.mxu1  ;;  %v5213_v19 = vpop.f32.mrf.mxu0 }
 0x25b   :  { %v3431_v48 = vadd.f32 %v5212_v11, %v7695_v20  ;;  %v3674_v15 = vsel %vm3599_vm10, %v3525_v26, -inf }
 0x25c   :  { %v3641_v23 = vmax.f32 %v3639_v38, %v3640_v5  ;;  %v3532_v0 = vpop.f32.mrf.mxu1  ;;  %v5214_v21 = vpop.f32.mrf.mxu0  ;;  %v3608_v54 = vmax.f32 %v3606_v16, %v3607_v24 }
 0x25d   :  { %v3528_v1 = vadd.f32 %v3527_v52, %v3431_v48  ;;  %v5215_v55 = vadd.f32 %v5214_v21, %v5213_v19 }
 0x25e   :  { %v3642_v39 = vrot.slane %v3641_v23, 2  ;;  %v3534_v59 = vpop.f32.mrf.mxu1  ;;  %v5216_v61 = vpop.f32.mrf.mxu0  ;;  %v3872_v18 = vmax.f32 %v3608_v54, 0.0 }
 0x25f   :  { %v3675_v62 = vsel %vm3599_vm10, %v3528_v1, -inf  ;;  %v3436_v32 = vadd.f32 %v5215_v55, %v7700_v13  ;;  %v5769_v13 = vld [vmem:[%s7825_s5 + $0x38] sm:$0xff]  }
 0x260   :  { %v3643_v10 = vmax.f32 %v3641_v23, %v3642_v39  ;;  %v3676_v45 = vmax.f32 %v3674_v15, %v3675_v62  ;;  %v3535_v42 = vpop.f32.mrf.mxu1  ;;  %v5217_v8 = vpop.f32.mrf.mxu0  ;;  %v3912_v33 = vpack.c.bf16 %v3872_v18, %v3872_v18  ;;  %5314 = vmatpush3.bf16.msra.mxu1 %v5769_v13  ;;  %v5773_v13 = vld [vmem:[%s7825_s5 + $0x18] sm:$0xff]  }
 0x261   :  { %v5218_v20 = vadd.f32 %v5217_v8, %v5216_v61  ;;  %v3533_v46 = vadd.f32 %v3532_v0, %v3436_v32  ;;  %5315 = vmatprep.subr.bf16.mxu1 %v5784_v6  ;;  %v5771_v0 = vld [vmem:[%s7825_s5 + $0x28] sm:$0xff]  }
 0x262   :  { %v3644_v30 = vrot.slane %v3643_v10, 1  ;;  %v3677_v60 = vrot.slane %v3676_v45, 4  ;;  %v3537_v17 = vpop.f32.mrf.mxu1  ;;  %v5219_v31 = vpop.f32.mrf.mxu0  ;;  %v4071_v5 = vunpack.c.l.b16 %v3912_v33 }
 0x263   :  { %v3439_v51 = vadd.f32 %v5218_v20, %v7703_v53  ;;  %v3711_v53 = vsel %vm3599_vm10, %v3533_v46, -inf }
 0x264   :  { %v3645_v3 = vmax.f32 %v3643_v10, %v3644_v30  ;;  %v3678_v22 = vmax.f32 %v3676_v45, %v3677_v60  ;;  %v3540_v47 = vpop.f32.mrf.mxu1  ;;  %v5220_v50 = vpop.f32.mrf.mxu0  ;;  %5316 = vmatpush3.bf16.msra.mxu1 %v5770_v27 }
 0x265   :  { %v3536_v35 = vadd.f32 %v3535_v42, %v3439_v51  ;;  %v5221_v9 = vadd.f32 %v5220_v50, %v5219_v31  ;;  %5317 = vmatprep.subr.bf16.mxu1 %v5784_v6  ;;  %v5772_v42 = vld [vmem:[%s7825_s5 + $0x20] sm:$0xff]  }
 0x266   :  { %v3877_v4 = vmax.f32 %v3645_v3, 0.0  ;;  %v3679_v12 = vrot.slane %v3678_v22, 2  ;;  %v3542_v36 = vpop.f32.mrf.mxu1  ;;  %v5222_v14 = vpop.f32.mrf.mxu0 }
 0x267   :  { %v3712_v49 = vsel %vm3599_vm10, %v3536_v35, -inf  ;;  %v3444_v25 = vadd.f32 %v5221_v9, %v7706_v58 }
 0x268   :  { %v3917_v16 = vpack.c.bf16 %v3877_v4, %v3877_v4  ;;  %v3680_v38 = vmax.f32 %v3678_v22, %v3679_v12  ;;  %v3713_v52 = vmax.f32 %v3711_v53, %v3712_v49  ;;  %v3543_v57 = vpop.f32.mrf.mxu1  ;;  %v5223_v11 = vpop.f32.mrf.mxu0  ;;  %5318 = vmatpush3.bf16.msra.mxu1 %v5771_v0 }
 0x269   :  { %v5224_v24 = vadd.f32 %v5223_v11, %v5222_v14  ;;  %v3541_v58 = vadd.f32 %v3540_v47, %v3444_v25  ;;  %5319 = vmatprep.subr.bf16.mxu1 %v5784_v6 }
 0x26a   :  { %v4076_v29 = vunpack.c.l.b16 %v3917_v16  ;;  %v3681_v19 = vrot.slane %v3680_v38, 1  ;;  %v3714_v26 = vrot.slane %v3713_v52, 4  ;;  %v3545_v48 = vpop.f32.mrf.mxu1  ;;  %v5225_v23 = vpop.f32.mrf.mxu0 }
 0x26b   :  { %v3447_v21 = vadd.f32 %v5224_v24, %v7709_v2  ;;  %v3748_v2 = vsel %vm3599_vm10, %v3541_v58, -inf }
 0x26c   :  { %v4142_v1 = vsel %vm4107_vm2, %v4076_v29, %v4071_v5  ;;  %v3682_v55 = vmax.f32 %v3680_v38, %v3681_v19  ;;  %v3715_v54 = vmax.f32 %v3713_v52, %v3714_v26  ;;  %v3548_v39 = vpop.f32.mrf.mxu1  ;;  %v5226_v59 = vpop.f32.mrf.mxu0  ;;  %5320 = vmatpush3.bf16.msra.mxu1 %v5772_v42  ;;  %v5774_v38 = vld [vmem:[%s7825_s5 + $0x10] sm:$0xff]   ;;  %v5114_v26 = vadd.f32 %v7728_v7, %v7723_v28 }
 0x26d   :  { %v3544_v61 = vadd.f32 %v3543_v57, %v3447_v21  ;;  %v5227_v15 = vadd.f32 %v5226_v59, %v5225_v23  ;;  %5321 = vmatprep.subr.bf16.mxu1 %v5784_v6 }
 0x26e   :  { %v3882_v62 = vmax.f32 %v3682_v55, 0.0  ;;  %v3716_v32 = vrot.slane %v3715_v54, 2  ;;  %v3550_v10 = vpop.f32.mrf.mxu1  ;;  %v5228_v45 = vpop.f32.mrf.mxu0  ;;  %v3277_v28 = vadd.f32 %v5114_v26, %v7654_v56 }
 0x26f   :  { %v3749_v8 = vsel %vm3599_vm10, %v3544_v61, -inf  ;;  %v3452_v20 = vadd.f32 %v5227_v15, %v7712_v44 }
 0x270   :  { %v3922_v18 = vpack.c.bf16 %v3882_v62, %v3882_v62  ;;  %v3717_v30 = vmax.f32 %v3715_v54, %v3716_v32  ;;  %v3750_v60 = vmax.f32 %v3748_v2, %v3749_v8  ;;  %v3551_v17 = vpop.f32.mrf.mxu1  ;;  %v5229_v31 = vpop.f32.mrf.mxu0  ;;  %5322 = vmatpush3.bf16.msra.mxu1 %v5773_v13  ;;  %v5178_v2 = vadd.f32 %v7732_v34, %v7726_v40 }
 0x271   :  { %v5230_v46 = vadd.f32 %v5229_v31, %v5228_v45  ;;  %v3549_v35 = vadd.f32 %v3548_v39, %v3452_v20  ;;  %5323 = vmatprep.subr.bf16.mxu1 %v5784_v6 }
 0x272   :  { %v4081_v51 = vunpack.c.l.b16 %v3922_v18  ;;  %v3718_v3 = vrot.slane %v3717_v30, 1  ;;  %v3751_v22 = vrot.slane %v3750_v60, 4  ;;  %v3553_v47 = vpop.f32.mrf.mxu1  ;;  %v5231_v50 = vpop.f32.mrf.mxu0  ;;  %v3374_v31 = vadd.f32 %v5178_v2, %v3277_v28 }
 0x273   :  { %v3455_v44 = vadd.f32 %v5230_v46, %v7715_v41  ;;  %v3785_v41 = vsel %vm3599_vm10, %v3549_v35, -inf }
 0x274   :  { %v4143_v9 = vsel %vm4109_vm3, %v4081_v51, %v4142_v1  ;;  %v3719_v27 = vmax.f32 %v3717_v30, %v3718_v3  ;;  %v3752_v33 = vmax.f32 %v3750_v60, %v3751_v22  ;;  %v3556_v4 = vpop.f32.mrf.mxu1  ;;  %v5232_v12 = vpop.f32.mrf.mxu0  ;;  %5324 = vmatpush3.bf16.msra.mxu1 %v5774_v38 }
 0x275   :  { %v3552_v36 = vadd.f32 %v3551_v17, %v3455_v44  ;;  %v5233_v14 = vadd.f32 %v5232_v12, %v5231_v50  ;;  %5325 = vmatprep.subr.bf16.mxu1 %v5784_v6 }
 0x276   :  { %v3887_v53 = vmax.f32 %v3719_v27, 0.0  ;;  %v3753_v49 = vrot.slane %v3752_v33, 2  ;;  %v3558_v25 = vpop.f32.mrf.mxu1  ;;  %v5234_v16 = vpop.f32.mrf.mxu0 }
 0x277   :  { %v3786_v52 = vsel %vm3599_vm10, %v3552_v36, -inf  ;;  %v3460_v57 = vadd.f32 %v5233_v14, %v7718_v37 }
 0x278   :  { %v3927_v11 = vpack.c.bf16 %v3887_v53, %v3887_v53  ;;  %v3754_v24 = vmax.f32 %v3752_v33, %v3753_v49  ;;  %v3787_v5 = vmax.f32 %v3785_v41, %v3786_v52  ;;  %v3559_v29 = vpop.f32.mrf.mxu1  ;;  %v5235_v19 = vpop.f32.mrf.mxu0 }
 0x279   :  { %v5236_v48 = vadd.f32 %v5235_v19, %v5234_v16  ;;  %v3557_v55 = vadd.f32 %v3556_v4, %v3460_v57 }
 0x27a   :  { %v4086_v23 = vunpack.c.l.b16 %v3927_v11  ;;  %v3755_v0 = vrot.slane %v3754_v24, 1  ;;  %v3788_v58 = vrot.slane %v3787_v5, 4  ;;  %v3561_v21 = vpop.f32.mrf.mxu1  ;;  %v5237_v1 = vpop.f32.mrf.mxu0 }
 0x27b   :  { %v3463_v37 = vadd.f32 %v5236_v48, %v7721_v63  ;;  %v3822_v63 = vsel %vm3599_vm10, %v3557_v55, -inf }
 0x27c   :  { %v4144_v54 = vsel %vm4111_vm4, %v4086_v23, %v4143_v9  ;;  %v3756_v39 = vmax.f32 %v3754_v24, %v3755_v0  ;;  %v3789_v59 = vmax.f32 %v3787_v5, %v3788_v58  ;;  %v3564_v61 = vpop.f32.mrf.mxu1  ;;  %v5238_v15 = vpop.f32.mrf.mxu0 }
 0x27d   :  { %v3560_v7 = vadd.f32 %v3559_v29, %v3463_v37  ;;  %v5239_v62 = vadd.f32 %v5238_v15, %v5237_v1 }
 0x27e   :  { %v3892_v32 = vmax.f32 %v3756_v39, 0.0  ;;  %v3790_v10 = vrot.slane %v3789_v59, 2  ;;  %v3566_v45 = vpop.f32.mrf.mxu1  ;;  %v5240_v42 = vpop.f32.mrf.mxu0  ;;  %v5004_v39 = vld [vmem:[%s7826_s4] ss:$0 sm:$0xff] }
 0x27f   :  { %v3823_v8 = vsel %vm3599_vm10, %v3560_v7, -inf  ;;  %v3468_v20 = vadd.f32 %v5239_v62, %v7730_v43  ;;  %v5775_v7 = vld [vmem:[%s7825_s5 + $0x8] sm:$0xff]   ;;  %v5776_v45 = vld [vmem:[%s7825_s5] sm:$0xff]  }
 0x280   :  { %v3932_v18 = vpack.c.bf16 %v3892_v32, %v3892_v32  ;;  %v3791_v30 = vmax.f32 %v3789_v59, %v3790_v10  ;;  %v3824_v60 = vmax.f32 %v3822_v63, %v3823_v8  ;;  %v3567_v17 = vpop.f32.mrf.mxu1  ;;  %v5241_v56 = vpop.f32.mrf.mxu0  ;;  %5326 = vmatpush3.bf16.msra.mxu1 %v5775_v7 }
 0x281   :  { %v5242_v46 = vadd.f32 %v5241_v56, %v5240_v42  ;;  %v3565_v13 = vadd.f32 %v3564_v61, %v3468_v20  ;;  %5327 = vmatprep.subr.bf16.mxu1 %v5784_v6 }
 0x282   :  { %v4091_v51 = vunpack.c.l.b16 %v3932_v18  ;;  %v3792_v3 = vrot.slane %v3791_v30, 1  ;;  %v3825_v22 = vrot.slane %v3824_v60, 4  ;;  %v3569_v47 = vpop.f32.mrf.mxu1  ;;  %v5259_v50 = vpop.f32.mrf.mxu0 }
 0x283   :  { %v3471_v40 = vadd.f32 %v5242_v46, %v3374_v31  ;;  %v3859_v36 = vsel %vm3599_vm10, %v3565_v13, -inf }
 0x284   :  { %v4145_v34 = vsel %vm4113_vm5, %v4091_v51, %v4144_v54  ;;  %v3793_v35 = vmax.f32 %v3791_v30, %v3792_v3  ;;  %v3826_v44 = vmax.f32 %v3824_v60, %v3825_v22  ;;  %v5260_v9 = vpop.f32.mrf.mxu0  ;;  %5328 = vmatpush3.bf16.msra.mxu1 %v5776_v45  ;;  %v5042_v60 = vld [vmem:[%s7827_s6] ss:$0 sm:$0xff] }
 0x285   :  { %v3568_v43 = vadd.f32 %v3567_v17, %v3471_v40  ;;  %v5261_v27 = vadd.f32 %v5260_v9, %v5259_v50 }
 0x286   :  { %v3897_v33 = vmax.f32 %v3793_v35, 0.0  ;;  %v3827_v4 = vrot.slane %v3826_v44, 2  ;;  %v5262_v12 = vpop.f32.mrf.mxu0 }
 0x287   :  { %v3860_v14 = vsel %vm3599_vm10, %v3568_v43, -inf  ;;  %v4412_v15 = vadd.f32 %v5261_v27, %v5004_v39 }
 0x288   :  { %v3937_v53 = vpack.c.bf16 %v3897_v33, %v3897_v33  ;;  %v3828_v49 = vmax.f32 %v3826_v44, %v3827_v4  ;;  %v3861_v25 = vmax.f32 %v3859_v36, %v3860_v14  ;;  %v5263_v16 = vpop.f32.mrf.mxu0 }
 0x28a   :  { %v4096_v38 = vunpack.c.l.b16 %v3937_v53  ;;  %v3829_v41 = vrot.slane %v3828_v49, 1  ;;  %v3862_v52 = vrot.slane %v3861_v25, 4 }
 0x28c   :  { %v4146_v57 = vsel %vm4115_vm6, %v4096_v38, %v4145_v34  ;;  %v3830_v11 = vmax.f32 %v3828_v49, %v3829_v41  ;;  %v3863_v24 = vmax.f32 %v3861_v25, %v3862_v52 }
 0x28e   :  { %v3902_v5 = vmax.f32 %v3830_v11, 0.0  ;;  %v3864_v29 = vrot.slane %v3863_v24, 2 }
 0x290   :  { %v3942_v19 = vpack.c.bf16 %v3902_v5, %v3902_v5  ;;  %v3865_v26 = vmax.f32 %v3863_v24, %v3864_v29 }
 0x292   :  { %v4101_v48 = vunpack.c.l.b16 %v3942_v19  ;;  %v3866_v23 = vrot.slane %v3865_v26, 1 }
 0x294   :  { %v4147_v0 = vsel %vm4117_vm7, %v4101_v48, %v4146_v57  ;;  %v3867_v58 = vmax.f32 %v3865_v26, %v3866_v23 }
 0x296   :  { %v3907_v21 = vmax.f32 %v3867_v58, 0.0 }
 0x298   :  { %v3947_v1 = vpack.c.bf16 %v3907_v21, %v3907_v21 }
 0x29a   :  { %v4106_v55 = vunpack.c.l.b16 %v3947_v1 }
 0x29c   :  { %v4148_v37 = vsel %vm4119_vm8, %v4106_v55, %v4147_v0 }
 0x29d   :  { %v4153_v54 = vpack.c.b16 %v4148_v37, %v4148_v37 }
 0x29f   :  { %5310 = vmatmul.mubr.msk.bf16.vlgmr.msra.gmra.mxu0 %vm3599_vm10, %v4153_v54 }
 0x2dd   :  { %v5281_v59 = vpop.f32.mrf.mxu1 }
 0x2df   :  { %v5282_v61 = vpop.f32.mrf.mxu1 }
 0x2e0   :  { %v5283_v28 = vadd.f32 %v5282_v61, %v5281_v59 }
 0x2e1   :  { %v5284_v62 = vpop.f32.mrf.mxu1 }
 0x2e2   :  { %v4452_v32 = vadd.f32 %v5283_v28, %v4412_v15 }
 0x2e3   :  { %v5285_v10 = vpop.f32.mrf.mxu1 }
 0x35f   :  { %v4491_v42 = vpop.f32.mrf.mxu0 }
 0x360   :  { %v4492_v2 = vadd.f32 %v4491_v42, %v4452_v32 }
 0x361   :  { %v5311_v63 = vpop.f32.mrf.mxu0 }
 0x362   :  { %v4497_v8 = vmax.f32 %v4492_v2, 0.0 }
 0x363   :  { %v4494_v20 = vpop.f32.mrf.mxu0 }
 0x364   :  { %v4498_v18 = vpack.c.bf16 %v4497_v8, %v4497_v8 }
 0x365   :  { %v5312_v30 = vpop.f32.mrf.mxu0 }
 0x366   :  { %5330 = vmatmul.mubr.bf16.vlgmr.msra.gmra.mxu1 %v4498_v18 }
 0x426   :  { %v4604_v17 = vpop.f32.mrf.mxu1 }
 0x427   :  { %v4605_v6 = vadd.f32 %v5042_v60, %v4604_v17 }
 0x428   :  { %v5331_v56 = vpop.f32.mrf.mxu1 }
 0x429   :  { %v4611_v31 = vsel %vm4610_vm11, %v4605_v6, -inf }
 0x42a   :  { %4612 = vmax.xlane.f32.xlu0 %v4611_v31  ;;  %v4607_v46 = vpop.f32.mrf.mxu1 }
 0x42c   :  { %v5332_v51 = vpop.f32.mrf.mxu1 }
 0x4b3   :  { %v4613_v3 = vpop.xlane.xlu0 %4612 }
 0x4b4   :  { %v4614_v22 = vsub.f32 %v4605_v6, %v4613_v3 }
 0x4b6   :  { %v4615_v47 = vmul.f32 1.442695, %v4614_v22 }
 0x4b8   :  { %5777 = vpow2.f32 %v4615_v47 }
 0x4c5   :  { %v5778_v50 = vpop.eup %5777 }
 0x4c6   :  { %v4617_v13 = vsel %vm4610_vm11, %v5778_v50, 0.0 }
 0x4c7   :  { %4618 = vadd.xlane.f32.xlu0 %v4617_v13 }
 0x550   :  { %v4619_v40 = vpop.xlane.xlu0 %4618 }
 0x551   :  { %5779 = vlog2.f32 %v4619_v40 }
 0x55e   :  { %v5780_v34 = vpop.eup %5779 }
 0x55f   :  { %v4621_v35 = vmul.f32 0.6931472, %v5780_v34 }
 0x561   :  { %v4622_v44 = vadd.f32 %v4621_v35, %v4613_v3 }
 0x563   :  { %v4623_v9 = vsub.f32 %v4605_v6, %v4622_v44 }
 0x565   :  { %4624 = vst.msk [vmem:[%s7828_s7] sm:$0xff] %vm4610_vm11, %v4623_v9 }

</bundles_post_ra>
